<compile_context>
chip_gen: v6e
topology: v6e:2x2x1
jax: 0.10.0
libtpu: 0.0.40
codegen_flags: <defaults>
</compile_context>

<pallas_src>
import jax
import jax.numpy as jnp
from jax.experimental import pallas as pl
from jax.experimental.pallas import tpu as pltpu

SELU_ALPHA = 1.6732632423543772
SELU_SCALE = 1.0507009873554805
LANE = 128
BATCH_ALIGN = 16          # bf16 sublane packing -> keep batch tiles multiples of 16


def _round_up(x, m):
    return ((x + m - 1) // m) * m


def _cdiv(a, b):
    return -(-a // b)


def _selu(x):
    # torch.nn.SELU in f32; exp(x)-1 keeps the Mosaic lowering simple.
    return SELU_SCALE * jnp.where(x > 0.0, x, SELU_ALPHA * (jnp.exp(x) - 1.0))


def _vmem_capacity_bytes():
    try:
        return int(pltpu.get_tpu_info().vmem_capacity_bytes)
    except Exception:
        return 64 * 1024 * 1024      # conservative (v7x-sized) fallback


# --------------------------------------------------------------------------------------
# Kernel: full forward for one batch tile (user AE, item AE, NCF head).
# --------------------------------------------------------------------------------------
def ae_ncf_kernel(*refs):
    (u_ref, i_ref,
     ue1w, ue1b, ue2w, ue2b, ue3w, ue3b, ue4w, ue4b,
     ud1w, ud1b, ud2w, ud2b, ud3w, ud3b, ud4w, ud4b,
     ie1w, ie1b, ie2w, ie2b, ie3w, ie3b, ie4w, ie4b,
     id1w, id1b, id2w, id2b, id3w, id3b, id4w, id4b,
     f1wu, f1wv, f1b, f2w, f2b, f3w, f3b, ow, ob,
     uae_ref, iae_ref, ncf_ref) = refs

    def lin(x, w_ref, b_ref):
        # bf16 MXU operands, f32 accumulation, f32 bias add.
        return (jnp.dot(x.astype(jnp.bfloat16), w_ref[...],
                        preferred_element_type=jnp.float32) + b_ref[...])

    # ---------------- user autoencoder ----------------
    h = _selu(lin(u_ref[...], ue1w, ue1b))
    h = _selu(lin(h, ue2w, ue2b))
    h = _selu(lin(h, ue3w, ue3b))
    U = _selu(lin(h, ue4w, ue4b))            # bottleneck embedding; dropout = identity
    h = _selu(lin(U, ud1w, ud1b))
    h = _selu(lin(h, ud2w, ud2b))
    h = _selu(lin(h, ud3w, ud3b))
    uae_ref[...] = lin(h, ud4w, ud4b).astype(uae_ref.dtype)   # u_decode4: no activation

    # ---------------- item autoencoder ----------------
    h = _selu(lin(i_ref[...], ie1w, ie1b))
    h = _selu(lin(h, ie2w, ie2b))
    h = _selu(lin(h, ie3w, ie3b))
    V = _selu(lin(h, ie4w, ie4b))
    h = _selu(lin(V, id1w, id1b))
    h = _selu(lin(h, id2w, id2b))
    h = _selu(lin(h, id3w, id3b))
    iae_ref[...] = lin(h, id4w, id4b).astype(iae_ref.dtype)   # i_decode4: no activation

    # ---------------- NCF head: cat([U, V]) @ fc1 fused as two dots ----------------
    h = (jnp.dot(U.astype(jnp.bfloat16), f1wu[...], preferred_element_type=jnp.float32)
         + jnp.dot(V.astype(jnp.bfloat16), f1wv[...], preferred_element_type=jnp.float32)
         + f1b[...])
    h = jnp.maximum(h, 0.0)                                   # relu(fc1)
    h = jnp.maximum(lin(h, f2w, f2b), 0.0)                    # relu(fc2)
    h = jnp.maximum(lin(h, f3w, f3b), 0.0)                    # relu(fc3)
    ncf_ref[...] = lin(h, ow, ob).astype(ncf_ref.dtype)       # outLayer (128-lane padded)


# --------------------------------------------------------------------------------------
# VMEM budgeting and wrapper.
# --------------------------------------------------------------------------------------
def _derive_tile_and_vmem(B, NI, NU, out_w, weight_bytes, requested=None):
    cap = _vmem_capacity_bytes()
    # Per batch-row bytes: double-buffered bf16 in/out streams + f32 ncf tile + rough
    # in-kernel f32 intermediates/casts.
    per_row = 2 * 2 * 2 * (NI + NU)          # u/i inputs + uae/iae outputs, bf16, x2 bufs
    per_row += 2 * 4 * out_w                 # ncf output tile, f32, x2 bufs
    per_row += 12 * max(NI, NU)              # live f32 intermediates inside the kernel
    budget = int(cap * 0.7) - int(weight_bytes) - (2 << 20)
    fit = budget // per_row if budget > 0 else 0
    fit = max(BATCH_ALIGN, (fit // BATCH_ALIGN) * BATCH_ALIGN)

    tile_b = 512 if requested is None else int(requested)
    tile_b = min(_round_up(tile_b, BATCH_ALIGN), fit)
    # Keep >= 2 grid steps so the "parallel" batch axis can shard over both v7x cores.
    tile_b = min(tile_b, _round_up(max(1, _cdiv(B, 2)), BATCH_ALIGN))
    tile_b = max(BATCH_ALIGN, tile_b)

    need = int(weight_bytes) + tile_b * per_row + (8 << 20)
    vmem_limit = int(min(0.9 * cap, max(need, 32 << 20)))
    return tile_b, vmem_limit


def ae_ncf_forward(u, i, pp, num_users, num_items, output_size, *, tile_b=None):
    """autoencoderInformedNCF.forward (eval mode).

    u: (B, num_items), i: (B, num_users).  pp: prepared params from prepare_params().
    Returns (uae_out[bf16], iae_out[bf16], ncf_out[f32]) at the original widths.
    """
    B, NI = u.shape
    NU = i.shape[1]
    OUTp = pp["out_w"].shape[1]

    weight_bytes = sum(int(a.size) * a.dtype.itemsize for a in pp.values())
    tile_b, vmem_limit = _derive_tile_and_vmem(B, NI, NU, OUTp, weight_bytes, tile_b)

    u_in = u if u.dtype == jnp.bfloat16 else u.astype(jnp.bfloat16)
    i_in = i if i.dtype == jnp.bfloat16 else i.astype(jnp.bfloat16)

    Bp = _round_up(B, tile_b)
    if Bp != B:                       # pad only the small batch tail
        u_in = jnp.pad(u_in, ((0, Bp - B), (0, 0)))
        i_in = jnp.pad(i_in, ((0, Bp - B), (0, 0)))

    ae_names = ["ue1", "ue2", "ue3", "ue4", "ud1", "ud2", "ud3", "ud4",
                "ie1", "ie2", "ie3", "ie4", "id1", "id2", "id3", "id4"]
    args = [u_in, i_in]
    for n in ae_names:
        args += [pp[n + "_w"], pp[n + "_b"]]
    args += [pp["fc1_wu"], pp["fc1_wv"], pp["fc1_b"],
             pp["fc2_w"], pp["fc2_b"], pp["fc3_w"], pp["fc3_b"],
             pp["out_w"], pp["out_b"]]

    in_specs = [pl.BlockSpec((tile_b, NI), lambda b: (b, 0)),
                pl.BlockSpec((tile_b, NU), lambda b: (b, 0))]
    # Weights/biases: fully resident in VMEM, single copy (no grid windowing).
    in_specs += [pl.BlockSpec(memory_space=pltpu.MemorySpace.VMEM)] * (len(args) - 2)

    out_shape = (jax.ShapeDtypeStruct((Bp, NI), jnp.bfloat16),
                 jax.ShapeDtypeStruct((Bp, NU), jnp.bfloat16),
                 jax.ShapeDtypeStruct((Bp, OUTp), jnp.float32))
    out_specs = (pl.BlockSpec((tile_b, NI), lambda b: (b, 0)),
                 pl.BlockSpec((tile_b, NU), lambda b: (b, 0)),
                 pl.BlockSpec((tile_b, OUTp), lambda b: (b, 0)))

    uae, iae, ncf = pl.pallas_call(
        ae_ncf_kernel,
        out_shape=out_shape,
        grid=(Bp // tile_b,),
        in_specs=in_specs,
        out_specs=out_specs,
        compiler_params=pltpu.CompilerParams(
            dimension_semantics=("parallel",),
            vmem_limit_bytes=vmem_limit),
    )(*args)

    return uae[:B], iae[:B], ncf[:B, :output_size]


# --------------------------------------------------------------------------------------
# Parameters.
# --------------------------------------------------------------------------------------
def init_params(key, num_users, num_items, embed_size, num_hidden, output_size):
    """PyTorch-shaped parameters, stored transposed as (in_features, out_features)."""
    H0, H1, H2 = num_hidden
    sizes = {
        "ue1": (num_items, H0), "ue2": (H0, H1), "ue3": (H1, H2), "ue4": (H2, embed_size),
        "ud1": (embed_size, H2), "ud2": (H2, H1), "ud3": (H1, H0), "ud4": (H0, num_items),
        "ie1": (num_users, H0), "ie2": (H0, H1), "ie3": (H1, H2), "ie4": (H2, embed_size),
        "id1": (embed_size, H2), "id2": (H2, H1), "id3": (H1, H0), "id4": (H0, num_users),
        "fc1": (2 * embed_size, H0), "fc2": (H0, H1), "fc3": (H1, H2),
        "out": (H2, output_size),
    }
    params = {}
    keys = jax.random.split(key, 2 * len(sizes))
    for idx, (name, (fi, fo)) in enumerate(sizes.items()):
        kw, kb = keys[2 * idx], keys[2 * idx + 1]
        bound = 1.0 / (fi ** 0.5)
        params[name + "_w"] = jax.random.uniform(kw, (fi, fo), jnp.float32, -bound, bound)
        params[name + "_b"] = jax.random.uniform(kb, (1, fo), jnp.float32, -bound, bound)
    return params


def prepare_params(params, embed_size, num_hidden, output_size):
    """Pad hidden/embed/output widths to 128 lanes (once), cast weights to bf16,
    keep biases f32, split fc1 into the U/V halves.  num_items/num_users dims are NOT
    padded (full-dim blocks are legal)."""
    H0, H1, H2 = num_hidden
    E = embed_size
    H0p, H1p, H2p, Ep = (_round_up(x, LANE) for x in (H0, H1, H2, E))
    OUTp = _round_up(output_size, LANE)
    NI = params["ue1_w"].shape[0]
    NU = params["ie1_w"].shape[0]

    def w(name, rows, cols):
        a = params[name + "_w"]
        a = jnp.pad(a, ((0, rows - a.shape[0]), (0, cols - a.shape[1])))
        return a.astype(jnp.bfloat16)

    def b(name, cols):
        a = params[name + "_b"]
        return jnp.pad(a, ((0, 0), (0, cols - a.shape[1]))).astype(jnp.float32)

    pp = {
        "ue1_w": w("ue1", NI, H0p),   "ue1_b": b("ue1", H0p),
        "ue2_w": w("ue2", H0p, H1p),  "ue2_b": b("ue2", H1p),
        "ue3_w": w("ue3", H1p, H2p),  "ue3_b": b("ue3", H2p),
        "ue4_w": w("ue4", H2p, Ep),   "ue4_b": b("ue4", Ep),
        "ud1_w": w("ud1", Ep, H2p),   "ud1_b": b("ud1", H2p),
        "ud2_w": w("ud2", H2p, H1p),  "ud2_b": b("ud2", H1p),
        "ud3_w": w("ud3", H1p, H0p),  "ud3_b": b("ud3", H0p),
        "ud4_w": w("ud4", H0p, NI),   "ud4_b": b("ud4", NI),
        "ie1_w": w("ie1", NU, H0p),   "ie1_b": b("ie1", H0p),
        "ie2_w": w("ie2", H0p, H1p),  "ie2_b": b("ie2", H1p),
        "ie3_w": w("ie3", H1p, H2p),  "ie3_b": b("ie3", H2p),
        "ie4_w": w("ie4", H2p, Ep),   "ie4_b": b("ie4", Ep),
        "id1_w": w("id1", Ep, H2p),   "id1_b": b("id1", H2p),
        "id2_w": w("id2", H2p, H1p),  "id2_b": b("id2", H1p),
        "id3_w": w("id3", H1p, H0p),  "id3_b": b("id3", H0p),
        "id4_w": w("id4", H0p, NU),   "id4_b": b("id4", NU),
        "fc2_w": w("fc2", H0p, H1p),  "fc2_b": b("fc2", H1p),
        "fc3_w": w("fc3", H1p, H2p),  "fc3_b": b("fc3", H2p),
        "out_w": w("out", H2p, OUTp), "out_b": b("out", OUTp),
    }
    fc1 = params["fc1_w"]
    pp["fc1_wu"] = jnp.pad(fc1[:E, :], ((0, Ep - E), (0, H0p - H0))).astype(jnp.bfloat16)
    pp["fc1_wv"] = jnp.pad(fc1[E:, :], ((0, Ep - E), (0, H0p - H0))).astype(jnp.bfloat16)
    pp["fc1_b"] = b("fc1", H0p)
    return pp


# --------------------------------------------------------------------------------------
# Pure-JAX references.
# --------------------------------------------------------------------------------------
def reference_forward_f32(u, i, p):
    """Full-f32 reference of the PyTorch forward (eval mode)."""
    lin = lambda x, w, b: x @ w + b
    h = _selu(lin(u, p["ue1_w"], p["ue1_b"]))
    h = _selu(lin(h, p["ue2_w"], p["ue2_b"]))
    h = _selu(lin(h, p["ue3_w"], p["ue3_b"]))
    U = _selu(lin(h, p["ue4_w"], p["ue4_b"]))
    h = _selu(lin(U, p["ud1_w"], p["ud1_b"]))
    h = _selu(lin(h, p["ud2_w"], p["ud2_b"]))
    h = _selu(lin(h, p["ud3_w"], p["ud3_b"]))
    uae = lin(h, p["ud4_w"], p["ud4_b"])

    h = _selu(lin(i, p["ie1_w"], p["ie1_b"]))
    h = _selu(lin(h, p["ie2_w"], p["ie2_b"]))
    h = _selu(lin(h, p["ie3_w"], p["ie3_b"]))
    V = _selu(lin(h, p["ie4_w"], p["ie4_b"]))
    h = _selu(lin(V, p["id1_w"], p["id1_b"]))
    h = _selu(lin(h, p["id2_w"], p["id2_b"]))
    h = _selu(lin(h, p["id3_w"], p["id3_b"]))
    iae = lin(h, p["id4_w"], p["id4_b"])

    x = jnp.concatenate([U, V], axis=1)
    h = jnp.maximum(lin(x, p["fc1_w"], p["fc1_b"]), 0.0)
    h = jnp.maximum(lin(h, p["fc2_w"], p["fc2_b"]), 0.0)
    h = jnp.maximum(lin(h, p["fc3_w"], p["fc3_b"]), 0.0)
    ncf = lin(h, p["out_w"], p["out_b"])
    return uae, iae, ncf


def reference_forward_mixed(u, i, p, embed_size):
    """Reference with the kernel's exact cast placement (bf16 MXU operands, f32 acc)."""
    bf16, f32 = jnp.bfloat16, jnp.float32

    def lin(x, w, b):
        return jnp.dot(x.astype(bf16), w.astype(bf16), preferred_element_type=f32) + b

    u = u.astype(bf16)
    i = i.astype(bf16)
    h = _selu(lin(u, p["ue1_w"], p["ue1_b"]))
    h = _selu(lin(h, p["ue2_w"], p["ue2_b"]))
    h = _selu(lin(h, p["ue3_w"], p["ue3_b"]))
    U = _selu(lin(h, p["ue4_w"], p["ue4_b"]))
    h = _selu(lin(U, p["ud1_w"], p["ud1_b"]))
    h = _selu(lin(h, p["ud2_w"], p["ud2_b"]))
    h = _selu(lin(h, p["ud3_w"], p["ud3_b"]))
    uae = lin(h, p["ud4_w"], p["ud4_b"]).astype(bf16)

    h = _selu(lin(i, p["ie1_w"], p["ie1_b"]))
    h = _selu(lin(h, p["ie2_w"], p["ie2_b"]))
    h = _selu(lin(h, p["ie3_w"], p["ie3_b"]))
    V = _selu(lin(h, p["ie4_w"], p["ie4_b"]))
    h = _selu(lin(V, p["id1_w"], p["id1_b"]))
    h = _selu(lin(h, p["id2_w"], p["id2_b"]))
    h = _selu(lin(h, p["id3_w"], p["id3_b"]))
    iae = lin(h, p["id4_w"], p["id4_b"]).astype(bf16)

    E = embed_size
    fc1 = p["fc1_w"].astype(bf16)
    h = (jnp.dot(U.astype(bf16), fc1[:E, :], preferred_element_type=f32)
         + jnp.dot(V.astype(bf16), fc1[E:, :], preferred_element_type=f32)
         + p["fc1_b"])
    h = jnp.maximum(h, 0.0)
    h = jnp.maximum(lin(h, p["fc2_w"], p["fc2_b"]), 0.0)
    h = jnp.maximum(lin(h, p["fc3_w"], p["fc3_b"]), 0.0)
    ncf = lin(h, p["out_w"], p["out_b"])
    return uae, iae, ncf


# --------------------------------------------------------------------------------------
if __name__ == "__main__":
    # Small, module-consistent shapes.
    num_users, num_items = 96, 160
    embed_size = 16
    num_hidden = (64, 32, 16)
    d_out = 0.1          # dropout rate — identity at inference
    output_size = 1
    batch = 32           # -> 2 grid steps at the derived tile_b (both v7x cores busy)

    key = jax.random.PRNGKey(0)
    kp, ku, ki = jax.random.split(key, 3)
    params = init_params(kp, num_users, num_items, embed_size, num_hidden, output_size)
    proc = prepare_params(params, embed_size, num_hidden, output_size)

    u = jax.random.normal(ku, (batch, num_items), jnp.float32)   # per-user item ratings
    i = jax.random.normal(ki, (batch, num_users), jnp.float32)   # per-item user ratings

    uae, iae, ncf = ae_ncf_forward(u, i, proc, num_users, num_items, output_size)
    uae, iae, ncf = jax.block_until_ready((uae, iae, ncf))

    m_uae, m_iae, m_ncf = reference_forward_mixed(u, i, params, embed_size)
    f_uae, f_iae, f_ncf = reference_forward_f32(u, i, params)

    assert uae.shape == (batch, num_items)
    assert iae.shape == (batch, num_users)
    assert ncf.shape == (batch, output_size)

    def _close(a, b, tol):
        return bool(jnp.allclose(jnp.asarray(a, jnp.float32), jnp.asarray(b, jnp.float32),
                                 atol=tol, rtol=tol))

    # Tight check vs the precision-matched reference (same bf16 cast placement).
    assert _close(uae, m_uae, 1e-2), "uae_out mismatch vs mixed-precision reference"
    assert _close(iae, m_iae, 1e-2), "iae_out mismatch vs mixed-precision reference"
    assert _close(ncf, m_ncf, 1e-2), "ncf_out mismatch vs mixed-precision reference"
    # Loose sanity check vs the full-f32 reference (bf16 weight/input quantization drift).
    assert _close(uae, f_uae, 1e-1), "uae_out mismatch vs f32 reference"
    assert _close(iae, f_iae, 1e-1), "iae_out mismatch vs f32 reference"
    assert _close(ncf, f_ncf, 1e-1), "ncf_out mismatch vs f32 reference"

    print("KERNEL_OK")
</pallas_src>

<mosaic_0001>
module attributes {stable_mosaic.version = 11 : i64} {
  func.func @ae_ncf_kernel(%arg0: i32, %arg1: memref<16x160xbf16, #tpu.memory_space<vmem>>, %arg2: memref<16x96xbf16, #tpu.memory_space<vmem>>, %arg3: memref<160x128xbf16, #tpu.memory_space<vmem>>, %arg4: memref<1x128xf32, #tpu.memory_space<vmem>>, %arg5: memref<128x128xbf16, #tpu.memory_space<vmem>>, %arg6: memref<1x128xf32, #tpu.memory_space<vmem>>, %arg7: memref<128x128xbf16, #tpu.memory_space<vmem>>, %arg8: memref<1x128xf32, #tpu.memory_space<vmem>>, %arg9: memref<128x128xbf16, #tpu.memory_space<vmem>>, %arg10: memref<1x128xf32, #tpu.memory_space<vmem>>, %arg11: memref<128x128xbf16, #tpu.memory_space<vmem>>, %arg12: memref<1x128xf32, #tpu.memory_space<vmem>>, %arg13: memref<128x128xbf16, #tpu.memory_space<vmem>>, %arg14: memref<1x128xf32, #tpu.memory_space<vmem>>, %arg15: memref<128x128xbf16, #tpu.memory_space<vmem>>, %arg16: memref<1x128xf32, #tpu.memory_space<vmem>>, %arg17: memref<128x160xbf16, #tpu.memory_space<vmem>>, %arg18: memref<1x160xf32, #tpu.memory_space<vmem>>, %arg19: memref<96x128xbf16, #tpu.memory_space<vmem>>, %arg20: memref<1x128xf32, #tpu.memory_space<vmem>>, %arg21: memref<128x128xbf16, #tpu.memory_space<vmem>>, %arg22: memref<1x128xf32, #tpu.memory_space<vmem>>, %arg23: memref<128x128xbf16, #tpu.memory_space<vmem>>, %arg24: memref<1x128xf32, #tpu.memory_space<vmem>>, %arg25: memref<128x128xbf16, #tpu.memory_space<vmem>>, %arg26: memref<1x128xf32, #tpu.memory_space<vmem>>, %arg27: memref<128x128xbf16, #tpu.memory_space<vmem>>, %arg28: memref<1x128xf32, #tpu.memory_space<vmem>>, %arg29: memref<128x128xbf16, #tpu.memory_space<vmem>>, %arg30: memref<1x128xf32, #tpu.memory_space<vmem>>, %arg31: memref<128x128xbf16, #tpu.memory_space<vmem>>, %arg32: memref<1x128xf32, #tpu.memory_space<vmem>>, %arg33: memref<128x96xbf16, #tpu.memory_space<vmem>>, %arg34: memref<1x96xf32, #tpu.memory_space<vmem>>, %arg35: memref<128x128xbf16, #tpu.memory_space<vmem>>, %arg36: memref<128x128xbf16, #tpu.memory_space<vmem>>, %arg37: memref<1x128xf32, #tpu.memory_space<vmem>>, %arg38: memref<128x128xbf16, #tpu.memory_space<vmem>>, %arg39: memref<1x128xf32, #tpu.memory_space<vmem>>, %arg40: memref<128x128xbf16, #tpu.memory_space<vmem>>, %arg41: memref<1x128xf32, #tpu.memory_space<vmem>>, %arg42: memref<128x128xbf16, #tpu.memory_space<vmem>>, %arg43: memref<1x128xf32, #tpu.memory_space<vmem>>, %arg44: memref<16x160xbf16, #tpu.memory_space<vmem>>, %arg45: memref<16x96xbf16, #tpu.memory_space<vmem>>, %arg46: memref<16x128xf32, #tpu.memory_space<vmem>>) attributes {dimension_semantics = [#tpu.dimension_semantics<parallel>], iteration_bounds = array<i64: 2>, scalar_prefetch = 0 : i64, scratch_operands = 0 : i64, tpu.core_type = #tpu.core_type<tc>, window_params = [{transform_indices = @transform_0, window_bounds = array<i64: 16, 160>}, {transform_indices = @transform_1, window_bounds = array<i64: 16, 96>}, {pipeline_mode = #tpu.pipeline_mode<synchronous>, transform_indices = @transform_2, window_bounds = array<i64: 160, 128>}, {pipeline_mode = #tpu.pipeline_mode<synchronous>, transform_indices = @transform_3, window_bounds = array<i64: 1, 128>}, {pipeline_mode = #tpu.pipeline_mode<synchronous>, transform_indices = @transform_4, window_bounds = array<i64: 128, 128>}, {pipeline_mode = #tpu.pipeline_mode<synchronous>, transform_indices = @transform_5, window_bounds = array<i64: 1, 128>}, {pipeline_mode = #tpu.pipeline_mode<synchronous>, transform_indices = @transform_6, window_bounds = array<i64: 128, 128>}, {pipeline_mode = #tpu.pipeline_mode<synchronous>, transform_indices = @transform_7, window_bounds = array<i64: 1, 128>}, {pipeline_mode = #tpu.pipeline_mode<synchronous>, transform_indices = @transform_8, window_bounds = array<i64: 128, 128>}, {pipeline_mode = #tpu.pipeline_mode<synchronous>, transform_indices = @transform_9, window_bounds = array<i64: 1, 128>}, {pipeline_mode = #tpu.pipeline_mode<synchronous>, transform_indices = @transform_10, window_bounds = array<i64: 128, 128>}, {pipeline_mode = #tpu.pipeline_mode<synchronous>, transform_indices = @transform_11, window_bounds = array<i64: 1, 128>}, {pipeline_mode = #tpu.pipeline_mode<synchronous>, transform_indices = @transform_12, window_bounds = array<i64: 128, 128>}, {pipeline_mode = #tpu.pipeline_mode<synchronous>, transform_indices = @transform_13, window_bounds = array<i64: 1, 128>}, {pipeline_mode = #tpu.pipeline_mode<synchronous>, transform_indices = @transform_14, window_bounds = array<i64: 128, 128>}, {pipeline_mode = #tpu.pipeline_mode<synchronous>, transform_indices = @transform_15, window_bounds = array<i64: 1, 128>}, {pipeline_mode = #tpu.pipeline_mode<synchronous>, transform_indices = @transform_16, window_bounds = array<i64: 128, 160>}, {pipeline_mode = #tpu.pipeline_mode<synchronous>, transform_indices = @transform_17, window_bounds = array<i64: 1, 160>}, {pipeline_mode = #tpu.pipeline_mode<synchronous>, transform_indices = @transform_18, window_bounds = array<i64: 96, 128>}, {pipeline_mode = #tpu.pipeline_mode<synchronous>, transform_indices = @transform_19, window_bounds = array<i64: 1, 128>}, {pipeline_mode = #tpu.pipeline_mode<synchronous>, transform_indices = @transform_20, window_bounds = array<i64: 128, 128>}, {pipeline_mode = #tpu.pipeline_mode<synchronous>, transform_indices = @transform_21, window_bounds = array<i64: 1, 128>}, {pipeline_mode = #tpu.pipeline_mode<synchronous>, transform_indices = @transform_22, window_bounds = array<i64: 128, 128>}, {pipeline_mode = #tpu.pipeline_mode<synchronous>, transform_indices = @transform_23, window_bounds = array<i64: 1, 128>}, {pipeline_mode = #tpu.pipeline_mode<synchronous>, transform_indices = @transform_24, window_bounds = array<i64: 128, 128>}, {pipeline_mode = #tpu.pipeline_mode<synchronous>, transform_indices = @transform_25, window_bounds = array<i64: 1, 128>}, {pipeline_mode = #tpu.pipeline_mode<synchronous>, transform_indices = @transform_26, window_bounds = array<i64: 128, 128>}, {pipeline_mode = #tpu.pipeline_mode<synchronous>, transform_indices = @transform_27, window_bounds = array<i64: 1, 128>}, {pipeline_mode = #tpu.pipeline_mode<synchronous>, transform_indices = @transform_28, window_bounds = array<i64: 128, 128>}, {pipeline_mode = #tpu.pipeline_mode<synchronous>, transform_indices = @transform_29, window_bounds = array<i64: 1, 128>}, {pipeline_mode = #tpu.pipeline_mode<synchronous>, transform_indices = @transform_30, window_bounds = array<i64: 128, 128>}, {pipeline_mode = #tpu.pipeline_mode<synchronous>, transform_indices = @transform_31, window_bounds = array<i64: 1, 128>}, {pipeline_mode = #tpu.pipeline_mode<synchronous>, transform_indices = @transform_32, window_bounds = array<i64: 128, 96>}, {pipeline_mode = #tpu.pipeline_mode<synchronous>, transform_indices = @transform_33, window_bounds = array<i64: 1, 96>}, {pipeline_mode = #tpu.pipeline_mode<synchronous>, transform_indices = @transform_34, window_bounds = array<i64: 128, 128>}, {pipeline_mode = #tpu.pipeline_mode<synchronous>, transform_indices = @transform_35, window_bounds = array<i64: 128, 128>}, {pipeline_mode = #tpu.pipeline_mode<synchronous>, transform_indices = @transform_36, window_bounds = array<i64: 1, 128>}, {pipeline_mode = #tpu.pipeline_mode<synchronous>, transform_indices = @transform_37, window_bounds = array<i64: 128, 128>}, {pipeline_mode = #tpu.pipeline_mode<synchronous>, transform_indices = @transform_38, window_bounds = array<i64: 1, 128>}, {pipeline_mode = #tpu.pipeline_mode<synchronous>, transform_indices = @transform_39, window_bounds = array<i64: 128, 128>}, {pipeline_mode = #tpu.pipeline_mode<synchronous>, transform_indices = @transform_40, window_bounds = array<i64: 1, 128>}, {pipeline_mode = #tpu.pipeline_mode<synchronous>, transform_indices = @transform_41, window_bounds = array<i64: 128, 128>}, {pipeline_mode = #tpu.pipeline_mode<synchronous>, transform_indices = @transform_42, window_bounds = array<i64: 1, 128>}, {transform_indices = @transform_43, window_bounds = array<i64: 16, 160>}, {transform_indices = @transform_44, window_bounds = array<i64: 16, 96>}, {transform_indices = @transform_45, window_bounds = array<i64: 16, 128>}]} {
    %c0 = arith.constant 0 : index
    %c0_0 = arith.constant 0 : index
    %0 = vector.load %arg1[%c0, %c0_0] : memref<16x160xbf16, #tpu.memory_space<vmem>>, vector<16x160xbf16>
    %c0_1 = arith.constant 0 : index
    %c0_2 = arith.constant 0 : index
    %1 = vector.load %arg3[%c0_1, %c0_2] : memref<160x128xbf16, #tpu.memory_space<vmem>>, vector<160x128xbf16>
    %cst = arith.constant dense<0.000000e+00> : vector<16x128xf32>
    %2 = tpu.matmul %0, %1, %cst {dimension_numbers = #tpu.dot_dimension_numbers<[1], [0], [0], [1], [0, 0, 1, 1], [], []>} : vector<16x160xbf16>, vector<160x128xbf16>, vector<16x128xf32> -> vector<16x128xf32>
    %c0_3 = arith.constant 0 : index
    %c0_4 = arith.constant 0 : index
    %3 = vector.load %arg4[%c0_3, %c0_4] : memref<1x128xf32, #tpu.memory_space<vmem>>, vector<1x128xf32>
    %4 = vector.broadcast %3 : vector<1x128xf32> to vector<16x128xf32>
    %5 = arith.addf %2, %4 : vector<16x128xf32>
    %cst_5 = arith.constant 0.000000e+00 : f32
    %6 = vector.broadcast %cst_5 : f32 to vector<16x128xf32>
    %7 = arith.cmpf ogt, %5, %6 : vector<16x128xf32>
    %8 = math.exp %5 : vector<16x128xf32>
    %cst_6 = arith.constant 1.000000e+00 : f32
    %9 = vector.broadcast %cst_6 : f32 to vector<16x128xf32>
    %10 = arith.subf %8, %9 : vector<16x128xf32>
    %cst_7 = arith.constant 1.67326319 : f32
    %11 = vector.broadcast %cst_7 : f32 to vector<16x128xf32>
    %12 = arith.mulf %11, %10 : vector<16x128xf32>
    %13 = arith.select %7, %5, %12 : vector<16x128xi1>, vector<16x128xf32>
    %cst_8 = arith.constant 1.05070102 : f32
    %14 = vector.broadcast %cst_8 : f32 to vector<16x128xf32>
    %15 = arith.mulf %14, %13 : vector<16x128xf32>
    %16 = arith.truncf %15 : vector<16x128xf32> to vector<16x128xbf16>
    %c0_9 = arith.constant 0 : index
    %c0_10 = arith.constant 0 : index
    %17 = vector.load %arg5[%c0_9, %c0_10] : memref<128x128xbf16, #tpu.memory_space<vmem>>, vector<128x128xbf16>
    %cst_11 = arith.constant dense<0.000000e+00> : vector<16x128xf32>
    %18 = tpu.matmul %16, %17, %cst_11 {dimension_numbers = #tpu.dot_dimension_numbers<[1], [0], [0], [1], [0, 0, 1, 1], [], []>} : vector<16x128xbf16>, vector<128x128xbf16>, vector<16x128xf32> -> vector<16x128xf32>
    %c0_12 = arith.constant 0 : index
    %c0_13 = arith.constant 0 : index
    %19 = vector.load %arg6[%c0_12, %c0_13] : memref<1x128xf32, #tpu.memory_space<vmem>>, vector<1x128xf32>
    %20 = vector.broadcast %19 : vector<1x128xf32> to vector<16x128xf32>
    %21 = arith.addf %18, %20 : vector<16x128xf32>
    %cst_14 = arith.constant 0.000000e+00 : f32
    %22 = vector.broadcast %cst_14 : f32 to vector<16x128xf32>
    %23 = arith.cmpf ogt, %21, %22 : vector<16x128xf32>
    %24 = math.exp %21 : vector<16x128xf32>
    %cst_15 = arith.constant 1.000000e+00 : f32
    %25 = vector.broadcast %cst_15 : f32 to vector<16x128xf32>
    %26 = arith.subf %24, %25 : vector<16x128xf32>
    %cst_16 = arith.constant 1.67326319 : f32
    %27 = vector.broadcast %cst_16 : f32 to vector<16x128xf32>
    %28 = arith.mulf %27, %26 : vector<16x128xf32>
    %29 = arith.select %23, %21, %28 : vector<16x128xi1>, vector<16x128xf32>
    %cst_17 = arith.constant 1.05070102 : f32
    %30 = vector.broadcast %cst_17 : f32 to vector<16x128xf32>
    %31 = arith.mulf %30, %29 : vector<16x128xf32>
    %32 = arith.truncf %31 : vector<16x128xf32> to vector<16x128xbf16>
    %c0_18 = arith.constant 0 : index
    %c0_19 = arith.constant 0 : index
    %33 = vector.load %arg7[%c0_18, %c0_19] : memref<128x128xbf16, #tpu.memory_space<vmem>>, vector<128x128xbf16>
    %cst_20 = arith.constant dense<0.000000e+00> : vector<16x128xf32>
    %34 = tpu.matmul %32, %33, %cst_20 {dimension_numbers = #tpu.dot_dimension_numbers<[1], [0], [0], [1], [0, 0, 1, 1], [], []>} : vector<16x128xbf16>, vector<128x128xbf16>, vector<16x128xf32> -> vector<16x128xf32>
    %c0_21 = arith.constant 0 : index
    %c0_22 = arith.constant 0 : index
    %35 = vector.load %arg8[%c0_21, %c0_22] : memref<1x128xf32, #tpu.memory_space<vmem>>, vector<1x128xf32>
    %36 = vector.broadcast %35 : vector<1x128xf32> to vector<16x128xf32>
    %37 = arith.addf %34, %36 : vector<16x128xf32>
    %cst_23 = arith.constant 0.000000e+00 : f32
    %38 = vector.broadcast %cst_23 : f32 to vector<16x128xf32>
    %39 = arith.cmpf ogt, %37, %38 : vector<16x128xf32>
    %40 = math.exp %37 : vector<16x128xf32>
    %cst_24 = arith.constant 1.000000e+00 : f32
    %41 = vector.broadcast %cst_24 : f32 to vector<16x128xf32>
    %42 = arith.subf %40, %41 : vector<16x128xf32>
    %cst_25 = arith.constant 1.67326319 : f32
    %43 = vector.broadcast %cst_25 : f32 to vector<16x128xf32>
    %44 = arith.mulf %43, %42 : vector<16x128xf32>
    %45 = arith.select %39, %37, %44 : vector<16x128xi1>, vector<16x128xf32>
    %cst_26 = arith.constant 1.05070102 : f32
    %46 = vector.broadcast %cst_26 : f32 to vector<16x128xf32>
    %47 = arith.mulf %46, %45 : vector<16x128xf32>
    %48 = arith.truncf %47 : vector<16x128xf32> to vector<16x128xbf16>
    %c0_27 = arith.constant 0 : index
    %c0_28 = arith.constant 0 : index
    %49 = vector.load %arg9[%c0_27, %c0_28] : memref<128x128xbf16, #tpu.memory_space<vmem>>, vector<128x128xbf16>
    %cst_29 = arith.constant dense<0.000000e+00> : vector<16x128xf32>
    %50 = tpu.matmul %48, %49, %cst_29 {dimension_numbers = #tpu.dot_dimension_numbers<[1], [0], [0], [1], [0, 0, 1, 1], [], []>} : vector<16x128xbf16>, vector<128x128xbf16>, vector<16x128xf32> -> vector<16x128xf32>
    %c0_30 = arith.constant 0 : index
    %c0_31 = arith.constant 0 : index
    %51 = vector.load %arg10[%c0_30, %c0_31] : memref<1x128xf32, #tpu.memory_space<vmem>>, vector<1x128xf32>
    %52 = vector.broadcast %51 : vector<1x128xf32> to vector<16x128xf32>
    %53 = arith.addf %50, %52 : vector<16x128xf32>
    %cst_32 = arith.constant 0.000000e+00 : f32
    %54 = vector.broadcast %cst_32 : f32 to vector<16x128xf32>
    %55 = arith.cmpf ogt, %53, %54 : vector<16x128xf32>
    %56 = math.exp %53 : vector<16x128xf32>
    %cst_33 = arith.constant 1.000000e+00 : f32
    %57 = vector.broadcast %cst_33 : f32 to vector<16x128xf32>
    %58 = arith.subf %56, %57 : vector<16x128xf32>
    %cst_34 = arith.constant 1.67326319 : f32
    %59 = vector.broadcast %cst_34 : f32 to vector<16x128xf32>
    %60 = arith.mulf %59, %58 : vector<16x128xf32>
    %61 = arith.select %55, %53, %60 : vector<16x128xi1>, vector<16x128xf32>
    %cst_35 = arith.constant 1.05070102 : f32
    %62 = vector.broadcast %cst_35 : f32 to vector<16x128xf32>
    %63 = arith.mulf %62, %61 : vector<16x128xf32>
    %64 = arith.truncf %63 : vector<16x128xf32> to vector<16x128xbf16>
    %c0_36 = arith.constant 0 : index
    %c0_37 = arith.constant 0 : index
    %65 = vector.load %arg11[%c0_36, %c0_37] : memref<128x128xbf16, #tpu.memory_space<vmem>>, vector<128x128xbf16>
    %cst_38 = arith.constant dense<0.000000e+00> : vector<16x128xf32>
    %66 = tpu.matmul %64, %65, %cst_38 {dimension_numbers = #tpu.dot_dimension_numbers<[1], [0], [0], [1], [0, 0, 1, 1], [], []>} : vector<16x128xbf16>, vector<128x128xbf16>, vector<16x128xf32> -> vector<16x128xf32>
    %c0_39 = arith.constant 0 : index
    %c0_40 = arith.constant 0 : index
    %67 = vector.load %arg12[%c0_39, %c0_40] : memref<1x128xf32, #tpu.memory_space<vmem>>, vector<1x128xf32>
    %68 = vector.broadcast %67 : vector<1x128xf32> to vector<16x128xf32>
    %69 = arith.addf %66, %68 : vector<16x128xf32>
    %cst_41 = arith.constant 0.000000e+00 : f32
    %70 = vector.broadcast %cst_41 : f32 to vector<16x128xf32>
    %71 = arith.cmpf ogt, %69, %70 : vector<16x128xf32>
    %72 = math.exp %69 : vector<16x128xf32>
    %cst_42 = arith.constant 1.000000e+00 : f32
    %73 = vector.broadcast %cst_42 : f32 to vector<16x128xf32>
    %74 = arith.subf %72, %73 : vector<16x128xf32>
    %cst_43 = arith.constant 1.67326319 : f32
    %75 = vector.broadcast %cst_43 : f32 to vector<16x128xf32>
    %76 = arith.mulf %75, %74 : vector<16x128xf32>
    %77 = arith.select %71, %69, %76 : vector<16x128xi1>, vector<16x128xf32>
    %cst_44 = arith.constant 1.05070102 : f32
    %78 = vector.broadcast %cst_44 : f32 to vector<16x128xf32>
    %79 = arith.mulf %78, %77 : vector<16x128xf32>
    %80 = arith.truncf %79 : vector<16x128xf32> to vector<16x128xbf16>
    %c0_45 = arith.constant 0 : index
    %c0_46 = arith.constant 0 : index
    %81 = vector.load %arg13[%c0_45, %c0_46] : memref<128x128xbf16, #tpu.memory_space<vmem>>, vector<128x128xbf16>
    %cst_47 = arith.constant dense<0.000000e+00> : vector<16x128xf32>
    %82 = tpu.matmul %80, %81, %cst_47 {dimension_numbers = #tpu.dot_dimension_numbers<[1], [0], [0], [1], [0, 0, 1, 1], [], []>} : vector<16x128xbf16>, vector<128x128xbf16>, vector<16x128xf32> -> vector<16x128xf32>
    %c0_48 = arith.constant 0 : index
    %c0_49 = arith.constant 0 : index
    %83 = vector.load %arg14[%c0_48, %c0_49] : memref<1x128xf32, #tpu.memory_space<vmem>>, vector<1x128xf32>
    %84 = vector.broadcast %83 : vector<1x128xf32> to vector<16x128xf32>
    %85 = arith.addf %82, %84 : vector<16x128xf32>
    %cst_50 = arith.constant 0.000000e+00 : f32
    %86 = vector.broadcast %cst_50 : f32 to vector<16x128xf32>
    %87 = arith.cmpf ogt, %85, %86 : vector<16x128xf32>
    %88 = math.exp %85 : vector<16x128xf32>
    %cst_51 = arith.constant 1.000000e+00 : f32
    %89 = vector.broadcast %cst_51 : f32 to vector<16x128xf32>
    %90 = arith.subf %88, %89 : vector<16x128xf32>
    %cst_52 = arith.constant 1.67326319 : f32
    %91 = vector.broadcast %cst_52 : f32 to vector<16x128xf32>
    %92 = arith.mulf %91, %90 : vector<16x128xf32>
    %93 = arith.select %87, %85, %92 : vector<16x128xi1>, vector<16x128xf32>
    %cst_53 = arith.constant 1.05070102 : f32
    %94 = vector.broadcast %cst_53 : f32 to vector<16x128xf32>
    %95 = arith.mulf %94, %93 : vector<16x128xf32>
    %96 = arith.truncf %95 : vector<16x128xf32> to vector<16x128xbf16>
    %c0_54 = arith.constant 0 : index
    %c0_55 = arith.constant 0 : index
    %97 = vector.load %arg15[%c0_54, %c0_55] : memref<128x128xbf16, #tpu.memory_space<vmem>>, vector<128x128xbf16>
    %cst_56 = arith.constant dense<0.000000e+00> : vector<16x128xf32>
    %98 = tpu.matmul %96, %97, %cst_56 {dimension_numbers = #tpu.dot_dimension_numbers<[1], [0], [0], [1], [0, 0, 1, 1], [], []>} : vector<16x128xbf16>, vector<128x128xbf16>, vector<16x128xf32> -> vector<16x128xf32>
    %c0_57 = arith.constant 0 : index
    %c0_58 = arith.constant 0 : index
    %99 = vector.load %arg16[%c0_57, %c0_58] : memref<1x128xf32, #tpu.memory_space<vmem>>, vector<1x128xf32>
    %100 = vector.broadcast %99 : vector<1x128xf32> to vector<16x128xf32>
    %101 = arith.addf %98, %100 : vector<16x128xf32>
    %cst_59 = arith.constant 0.000000e+00 : f32
    %102 = vector.broadcast %cst_59 : f32 to vector<16x128xf32>
    %103 = arith.cmpf ogt, %101, %102 : vector<16x128xf32>
    %104 = math.exp %101 : vector<16x128xf32>
    %cst_60 = arith.constant 1.000000e+00 : f32
    %105 = vector.broadcast %cst_60 : f32 to vector<16x128xf32>
    %106 = arith.subf %104, %105 : vector<16x128xf32>
    %cst_61 = arith.constant 1.67326319 : f32
    %107 = vector.broadcast %cst_61 : f32 to vector<16x128xf32>
    %108 = arith.mulf %107, %106 : vector<16x128xf32>
    %109 = arith.select %103, %101, %108 : vector<16x128xi1>, vector<16x128xf32>
    %cst_62 = arith.constant 1.05070102 : f32
    %110 = vector.broadcast %cst_62 : f32 to vector<16x128xf32>
    %111 = arith.mulf %110, %109 : vector<16x128xf32>
    %112 = arith.truncf %111 : vector<16x128xf32> to vector<16x128xbf16>
    %c0_63 = arith.constant 0 : index
    %c0_64 = arith.constant 0 : index
    %113 = vector.load %arg17[%c0_63, %c0_64] : memref<128x160xbf16, #tpu.memory_space<vmem>>, vector<128x160xbf16>
    %cst_65 = arith.constant dense<0.000000e+00> : vector<16x160xf32>
    %114 = tpu.matmul %112, %113, %cst_65 {dimension_numbers = #tpu.dot_dimension_numbers<[1], [0], [0], [1], [0, 0, 1, 1], [], []>} : vector<16x128xbf16>, vector<128x160xbf16>, vector<16x160xf32> -> vector<16x160xf32>
    %c0_66 = arith.constant 0 : index
    %c0_67 = arith.constant 0 : index
    %115 = vector.load %arg18[%c0_66, %c0_67] : memref<1x160xf32, #tpu.memory_space<vmem>>, vector<1x160xf32>
    %116 = vector.broadcast %115 : vector<1x160xf32> to vector<16x160xf32>
    %117 = arith.addf %114, %116 : vector<16x160xf32>
    %118 = arith.truncf %117 : vector<16x160xf32> to vector<16x160xbf16>
    %c0_68 = arith.constant 0 : index
    %c0_69 = arith.constant 0 : index
    %119 = vector.load %arg44[%c0_68, %c0_69] : memref<16x160xbf16, #tpu.memory_space<vmem>>, vector<16x160xbf16>
    tpu.vector_store %arg44[%c0_68, %c0_69], %118 {strides = array<i32>} : memref<16x160xbf16, #tpu.memory_space<vmem>>, vector<16x160xbf16>,
    %c0_70 = arith.constant 0 : index
    %c0_71 = arith.constant 0 : index
    %120 = vector.load %arg2[%c0_70, %c0_71] : memref<16x96xbf16, #tpu.memory_space<vmem>>, vector<16x96xbf16>
    %c0_72 = arith.constant 0 : index
    %c0_73 = arith.constant 0 : index
    %121 = vector.load %arg19[%c0_72, %c0_73] : memref<96x128xbf16, #tpu.memory_space<vmem>>, vector<96x128xbf16>
    %cst_74 = arith.constant dense<0.000000e+00> : vector<16x128xf32>
    %122 = tpu.matmul %120, %121, %cst_74 {dimension_numbers = #tpu.dot_dimension_numbers<[1], [0], [0], [1], [0, 0, 1, 1], [], []>} : vector<16x96xbf16>, vector<96x128xbf16>, vector<16x128xf32> -> vector<16x128xf32>
    %c0_75 = arith.constant 0 : index
    %c0_76 = arith.constant 0 : index
    %123 = vector.load %arg20[%c0_75, %c0_76] : memref<1x128xf32, #tpu.memory_space<vmem>>, vector<1x128xf32>
    %124 = vector.broadcast %123 : vector<1x128xf32> to vector<16x128xf32>
    %125 = arith.addf %122, %124 : vector<16x128xf32>
    %cst_77 = arith.constant 0.000000e+00 : f32
    %126 = vector.broadcast %cst_77 : f32 to vector<16x128xf32>
    %127 = arith.cmpf ogt, %125, %126 : vector<16x128xf32>
    %128 = math.exp %125 : vector<16x128xf32>
    %cst_78 = arith.constant 1.000000e+00 : f32
    %129 = vector.broadcast %cst_78 : f32 to vector<16x128xf32>
    %130 = arith.subf %128, %129 : vector<16x128xf32>
    %cst_79 = arith.constant 1.67326319 : f32
    %131 = vector.broadcast %cst_79 : f32 to vector<16x128xf32>
    %132 = arith.mulf %131, %130 : vector<16x128xf32>
    %133 = arith.select %127, %125, %132 : vector<16x128xi1>, vector<16x128xf32>
    %cst_80 = arith.constant 1.05070102 : f32
    %134 = vector.broadcast %cst_80 : f32 to vector<16x128xf32>
    %135 = arith.mulf %134, %133 : vector<16x128xf32>
    %136 = arith.truncf %135 : vector<16x128xf32> to vector<16x128xbf16>
    %c0_81 = arith.constant 0 : index
    %c0_82 = arith.constant 0 : index
    %137 = vector.load %arg21[%c0_81, %c0_82] : memref<128x128xbf16, #tpu.memory_space<vmem>>, vector<128x128xbf16>
    %cst_83 = arith.constant dense<0.000000e+00> : vector<16x128xf32>
    %138 = tpu.matmul %136, %137, %cst_83 {dimension_numbers = #tpu.dot_dimension_numbers<[1], [0], [0], [1], [0, 0, 1, 1], [], []>} : vector<16x128xbf16>, vector<128x128xbf16>, vector<16x128xf32> -> vector<16x128xf32>
    %c0_84 = arith.constant 0 : index
    %c0_85 = arith.constant 0 : index
    %139 = vector.load %arg22[%c0_84, %c0_85] : memref<1x128xf32, #tpu.memory_space<vmem>>, vector<1x128xf32>
    %140 = vector.broadcast %139 : vector<1x128xf32> to vector<16x128xf32>
    %141 = arith.addf %138, %140 : vector<16x128xf32>
    %cst_86 = arith.constant 0.000000e+00 : f32
    %142 = vector.broadcast %cst_86 : f32 to vector<16x128xf32>
    %143 = arith.cmpf ogt, %141, %142 : vector<16x128xf32>
    %144 = math.exp %141 : vector<16x128xf32>
    %cst_87 = arith.constant 1.000000e+00 : f32
    %145 = vector.broadcast %cst_87 : f32 to vector<16x128xf32>
    %146 = arith.subf %144, %145 : vector<16x128xf32>
    %cst_88 = arith.constant 1.67326319 : f32
    %147 = vector.broadcast %cst_88 : f32 to vector<16x128xf32>
    %148 = arith.mulf %147, %146 : vector<16x128xf32>
    %149 = arith.select %143, %141, %148 : vector<16x128xi1>, vector<16x128xf32>
    %cst_89 = arith.constant 1.05070102 : f32
    %150 = vector.broadcast %cst_89 : f32 to vector<16x128xf32>
    %151 = arith.mulf %150, %149 : vector<16x128xf32>
    %152 = arith.truncf %151 : vector<16x128xf32> to vector<16x128xbf16>
    %c0_90 = arith.constant 0 : index
    %c0_91 = arith.constant 0 : index
    %153 = vector.load %arg23[%c0_90, %c0_91] : memref<128x128xbf16, #tpu.memory_space<vmem>>, vector<128x128xbf16>
    %cst_92 = arith.constant dense<0.000000e+00> : vector<16x128xf32>
    %154 = tpu.matmul %152, %153, %cst_92 {dimension_numbers = #tpu.dot_dimension_numbers<[1], [0], [0], [1], [0, 0, 1, 1], [], []>} : vector<16x128xbf16>, vector<128x128xbf16>, vector<16x128xf32> -> vector<16x128xf32>
    %c0_93 = arith.constant 0 : index
    %c0_94 = arith.constant 0 : index
    %155 = vector.load %arg24[%c0_93, %c0_94] : memref<1x128xf32, #tpu.memory_space<vmem>>, vector<1x128xf32>
    %156 = vector.broadcast %155 : vector<1x128xf32> to vector<16x128xf32>
    %157 = arith.addf %154, %156 : vector<16x128xf32>
    %cst_95 = arith.constant 0.000000e+00 : f32
    %158 = vector.broadcast %cst_95 : f32 to vector<16x128xf32>
    %159 = arith.cmpf ogt, %157, %158 : vector<16x128xf32>
    %160 = math.exp %157 : vector<16x128xf32>
    %cst_96 = arith.constant 1.000000e+00 : f32
    %161 = vector.broadcast %cst_96 : f32 to vector<16x128xf32>
    %162 = arith.subf %160, %161 : vector<16x128xf32>
    %cst_97 = arith.constant 1.67326319 : f32
    %163 = vector.broadcast %cst_97 : f32 to vector<16x128xf32>
    %164 = arith.mulf %163, %162 : vector<16x128xf32>
    %165 = arith.select %159, %157, %164 : vector<16x128xi1>, vector<16x128xf32>
    %cst_98 = arith.constant 1.05070102 : f32
    %166 = vector.broadcast %cst_98 : f32 to vector<16x128xf32>
    %167 = arith.mulf %166, %165 : vector<16x128xf32>
    %168 = arith.truncf %167 : vector<16x128xf32> to vector<16x128xbf16>
    %c0_99 = arith.constant 0 : index
    %c0_100 = arith.constant 0 : index
    %169 = vector.load %arg25[%c0_99, %c0_100] : memref<128x128xbf16, #tpu.memory_space<vmem>>, vector<128x128xbf16>
    %cst_101 = arith.constant dense<0.000000e+00> : vector<16x128xf32>
    %170 = tpu.matmul %168, %169, %cst_101 {dimension_numbers = #tpu.dot_dimension_numbers<[1], [0], [0], [1], [0, 0, 1, 1], [], []>} : vector<16x128xbf16>, vector<128x128xbf16>, vector<16x128xf32> -> vector<16x128xf32>
    %c0_102 = arith.constant 0 : index
    %c0_103 = arith.constant 0 : index
    %171 = vector.load %arg26[%c0_102, %c0_103] : memref<1x128xf32, #tpu.memory_space<vmem>>, vector<1x128xf32>
    %172 = vector.broadcast %171 : vector<1x128xf32> to vector<16x128xf32>
    %173 = arith.addf %170, %172 : vector<16x128xf32>
    %cst_104 = arith.constant 0.000000e+00 : f32
    %174 = vector.broadcast %cst_104 : f32 to vector<16x128xf32>
    %175 = arith.cmpf ogt, %173, %174 : vector<16x128xf32>
    %176 = math.exp %173 : vector<16x128xf32>
    %cst_105 = arith.constant 1.000000e+00 : f32
    %177 = vector.broadcast %cst_105 : f32 to vector<16x128xf32>
    %178 = arith.subf %176, %177 : vector<16x128xf32>
    %cst_106 = arith.constant 1.67326319 : f32
    %179 = vector.broadcast %cst_106 : f32 to vector<16x128xf32>
    %180 = arith.mulf %179, %178 : vector<16x128xf32>
    %181 = arith.select %175, %173, %180 : vector<16x128xi1>, vector<16x128xf32>
    %cst_107 = arith.constant 1.05070102 : f32
    %182 = vector.broadcast %cst_107 : f32 to vector<16x128xf32>
    %183 = arith.mulf %182, %181 : vector<16x128xf32>
    %184 = arith.truncf %183 : vector<16x128xf32> to vector<16x128xbf16>
    %c0_108 = arith.constant 0 : index
    %c0_109 = arith.constant 0 : index
    %185 = vector.load %arg27[%c0_108, %c0_109] : memref<128x128xbf16, #tpu.memory_space<vmem>>, vector<128x128xbf16>
    %cst_110 = arith.constant dense<0.000000e+00> : vector<16x128xf32>
    %186 = tpu.matmul %184, %185, %cst_110 {dimension_numbers = #tpu.dot_dimension_numbers<[1], [0], [0], [1], [0, 0, 1, 1], [], []>} : vector<16x128xbf16>, vector<128x128xbf16>, vector<16x128xf32> -> vector<16x128xf32>
    %c0_111 = arith.constant 0 : index
    %c0_112 = arith.constant 0 : index
    %187 = vector.load %arg28[%c0_111, %c0_112] : memref<1x128xf32, #tpu.memory_space<vmem>>, vector<1x128xf32>
    %188 = vector.broadcast %187 : vector<1x128xf32> to vector<16x128xf32>
    %189 = arith.addf %186, %188 : vector<16x128xf32>
    %cst_113 = arith.constant 0.000000e+00 : f32
    %190 = vector.broadcast %cst_113 : f32 to vector<16x128xf32>
    %191 = arith.cmpf ogt, %189, %190 : vector<16x128xf32>
    %192 = math.exp %189 : vector<16x128xf32>
    %cst_114 = arith.constant 1.000000e+00 : f32
    %193 = vector.broadcast %cst_114 : f32 to vector<16x128xf32>
    %194 = arith.subf %192, %193 : vector<16x128xf32>
    %cst_115 = arith.constant 1.67326319 : f32
    %195 = vector.broadcast %cst_115 : f32 to vector<16x128xf32>
    %196 = arith.mulf %195, %194 : vector<16x128xf32>
    %197 = arith.select %191, %189, %196 : vector<16x128xi1>, vector<16x128xf32>
    %cst_116 = arith.constant 1.05070102 : f32
    %198 = vector.broadcast %cst_116 : f32 to vector<16x128xf32>
    %199 = arith.mulf %198, %197 : vector<16x128xf32>
    %200 = arith.truncf %199 : vector<16x128xf32> to vector<16x128xbf16>
    %c0_117 = arith.constant 0 : index
    %c0_118 = arith.constant 0 : index
    %201 = vector.load %arg29[%c0_117, %c0_118] : memref<128x128xbf16, #tpu.memory_space<vmem>>, vector<128x128xbf16>
    %cst_119 = arith.constant dense<0.000000e+00> : vector<16x128xf32>
    %202 = tpu.matmul %200, %201, %cst_119 {dimension_numbers = #tpu.dot_dimension_numbers<[1], [0], [0], [1], [0, 0, 1, 1], [], []>} : vector<16x128xbf16>, vector<128x128xbf16>, vector<16x128xf32> -> vector<16x128xf32>
    %c0_120 = arith.constant 0 : index
    %c0_121 = arith.constant 0 : index
    %203 = vector.load %arg30[%c0_120, %c0_121] : memref<1x128xf32, #tpu.memory_space<vmem>>, vector<1x128xf32>
    %204 = vector.broadcast %203 : vector<1x128xf32> to vector<16x128xf32>
    %205 = arith.addf %202, %204 : vector<16x128xf32>
    %cst_122 = arith.constant 0.000000e+00 : f32
    %206 = vector.broadcast %cst_122 : f32 to vector<16x128xf32>
    %207 = arith.cmpf ogt, %205, %206 : vector<16x128xf32>
    %208 = math.exp %205 : vector<16x128xf32>
    %cst_123 = arith.constant 1.000000e+00 : f32
    %209 = vector.broadcast %cst_123 : f32 to vector<16x128xf32>
    %210 = arith.subf %208, %209 : vector<16x128xf32>
    %cst_124 = arith.constant 1.67326319 : f32
    %211 = vector.broadcast %cst_124 : f32 to vector<16x128xf32>
    %212 = arith.mulf %211, %210 : vector<16x128xf32>
    %213 = arith.select %207, %205, %212 : vector<16x128xi1>, vector<16x128xf32>
    %cst_125 = arith.constant 1.05070102 : f32
    %214 = vector.broadcast %cst_125 : f32 to vector<16x128xf32>
    %215 = arith.mulf %214, %213 : vector<16x128xf32>
    %216 = arith.truncf %215 : vector<16x128xf32> to vector<16x128xbf16>
    %c0_126 = arith.constant 0 : index
    %c0_127 = arith.constant 0 : index
    %217 = vector.load %arg31[%c0_126, %c0_127] : memref<128x128xbf16, #tpu.memory_space<vmem>>, vector<128x128xbf16>
    %cst_128 = arith.constant dense<0.000000e+00> : vector<16x128xf32>
    %218 = tpu.matmul %216, %217, %cst_128 {dimension_numbers = #tpu.dot_dimension_numbers<[1], [0], [0], [1], [0, 0, 1, 1], [], []>} : vector<16x128xbf16>, vector<128x128xbf16>, vector<16x128xf32> -> vector<16x128xf32>
    %c0_129 = arith.constant 0 : index
    %c0_130 = arith.constant 0 : index
    %219 = vector.load %arg32[%c0_129, %c0_130] : memref<1x128xf32, #tpu.memory_space<vmem>>, vector<1x128xf32>
    %220 = vector.broadcast %219 : vector<1x128xf32> to vector<16x128xf32>
    %221 = arith.addf %218, %220 : vector<16x128xf32>
    %cst_131 = arith.constant 0.000000e+00 : f32
    %222 = vector.broadcast %cst_131 : f32 to vector<16x128xf32>
    %223 = arith.cmpf ogt, %221, %222 : vector<16x128xf32>
    %224 = math.exp %221 : vector<16x128xf32>
    %cst_132 = arith.constant 1.000000e+00 : f32
    %225 = vector.broadcast %cst_132 : f32 to vector<16x128xf32>
    %226 = arith.subf %224, %225 : vector<16x128xf32>
    %cst_133 = arith.constant 1.67326319 : f32
    %227 = vector.broadcast %cst_133 : f32 to vector<16x128xf32>
    %228 = arith.mulf %227, %226 : vector<16x128xf32>
    %229 = arith.select %223, %221, %228 : vector<16x128xi1>, vector<16x128xf32>
    %cst_134 = arith.constant 1.05070102 : f32
    %230 = vector.broadcast %cst_134 : f32 to vector<16x128xf32>
    %231 = arith.mulf %230, %229 : vector<16x128xf32>
    %232 = arith.truncf %231 : vector<16x128xf32> to vector<16x128xbf16>
    %c0_135 = arith.constant 0 : index
    %c0_136 = arith.constant 0 : index
    %233 = vector.load %arg33[%c0_135, %c0_136] : memref<128x96xbf16, #tpu.memory_space<vmem>>, vector<128x96xbf16>
    %cst_137 = arith.constant dense<0.000000e+00> : vector<16x96xf32>
    %234 = tpu.matmul %232, %233, %cst_137 {dimension_numbers = #tpu.dot_dimension_numbers<[1], [0], [0], [1], [0, 0, 1, 1], [], []>} : vector<16x128xbf16>, vector<128x96xbf16>, vector<16x96xf32> -> vector<16x96xf32>
    %c0_138 = arith.constant 0 : index
    %c0_139 = arith.constant 0 : index
    %235 = vector.load %arg34[%c0_138, %c0_139] : memref<1x96xf32, #tpu.memory_space<vmem>>, vector<1x96xf32>
    %236 = vector.broadcast %235 : vector<1x96xf32> to vector<16x96xf32>
    %237 = arith.addf %234, %236 : vector<16x96xf32>
    %238 = arith.truncf %237 : vector<16x96xf32> to vector<16x96xbf16>
    %c0_140 = arith.constant 0 : index
    %c0_141 = arith.constant 0 : index
    %239 = vector.load %arg45[%c0_140, %c0_141] : memref<16x96xbf16, #tpu.memory_space<vmem>>, vector<16x96xbf16>
    tpu.vector_store %arg45[%c0_140, %c0_141], %238 {strides = array<i32>} : memref<16x96xbf16, #tpu.memory_space<vmem>>, vector<16x96xbf16>,
    %240 = arith.truncf %63 : vector<16x128xf32> to vector<16x128xbf16>
    %c0_142 = arith.constant 0 : index
    %c0_143 = arith.constant 0 : index
    %241 = vector.load %arg35[%c0_142, %c0_143] : memref<128x128xbf16, #tpu.memory_space<vmem>>, vector<128x128xbf16>
    %cst_144 = arith.constant dense<0.000000e+00> : vector<16x128xf32>
    %242 = tpu.matmul %240, %241, %cst_144 {dimension_numbers = #tpu.dot_dimension_numbers<[1], [0], [0], [1], [0, 0, 1, 1], [], []>} : vector<16x128xbf16>, vector<128x128xbf16>, vector<16x128xf32> -> vector<16x128xf32>
    %243 = arith.truncf %183 : vector<16x128xf32> to vector<16x128xbf16>
    %c0_145 = arith.constant 0 : index
    %c0_146 = arith.constant 0 : index
    %244 = vector.load %arg36[%c0_145, %c0_146] : memref<128x128xbf16, #tpu.memory_space<vmem>>, vector<128x128xbf16>
    %cst_147 = arith.constant dense<0.000000e+00> : vector<16x128xf32>
    %245 = tpu.matmul %243, %244, %cst_147 {dimension_numbers = #tpu.dot_dimension_numbers<[1], [0], [0], [1], [0, 0, 1, 1], [], []>} : vector<16x128xbf16>, vector<128x128xbf16>, vector<16x128xf32> -> vector<16x128xf32>
    %246 = arith.addf %242, %245 : vector<16x128xf32>
    %c0_148 = arith.constant 0 : index
    %c0_149 = arith.constant 0 : index
    %247 = vector.load %arg37[%c0_148, %c0_149] : memref<1x128xf32, #tpu.memory_space<vmem>>, vector<1x128xf32>
    %248 = vector.broadcast %247 : vector<1x128xf32> to vector<16x128xf32>
    %249 = arith.addf %246, %248 : vector<16x128xf32>
    %cst_150 = arith.constant 0.000000e+00 : f32
    %250 = vector.broadcast %cst_150 : f32 to vector<16x128xf32>
    %251 = arith.maximumf %249, %250 : vector<16x128xf32>
    %252 = arith.truncf %251 : vector<16x128xf32> to vector<16x128xbf16>
    %c0_151 = arith.constant 0 : index
    %c0_152 = arith.constant 0 : index
    %253 = vector.load %arg38[%c0_151, %c0_152] : memref<128x128xbf16, #tpu.memory_space<vmem>>, vector<128x128xbf16>
    %cst_153 = arith.constant dense<0.000000e+00> : vector<16x128xf32>
    %254 = tpu.matmul %252, %253, %cst_153 {dimension_numbers = #tpu.dot_dimension_numbers<[1], [0], [0], [1], [0, 0, 1, 1], [], []>} : vector<16x128xbf16>, vector<128x128xbf16>, vector<16x128xf32> -> vector<16x128xf32>
    %c0_154 = arith.constant 0 : index
    %c0_155 = arith.constant 0 : index
    %255 = vector.load %arg39[%c0_154, %c0_155] : memref<1x128xf32, #tpu.memory_space<vmem>>, vector<1x128xf32>
    %256 = vector.broadcast %255 : vector<1x128xf32> to vector<16x128xf32>
    %257 = arith.addf %254, %256 : vector<16x128xf32>
    %cst_156 = arith.constant 0.000000e+00 : f32
    %258 = vector.broadcast %cst_156 : f32 to vector<16x128xf32>
    %259 = arith.maximumf %257, %258 : vector<16x128xf32>
    %260 = arith.truncf %259 : vector<16x128xf32> to vector<16x128xbf16>
    %c0_157 = arith.constant 0 : index
    %c0_158 = arith.constant 0 : index
    %261 = vector.load %arg40[%c0_157, %c0_158] : memref<128x128xbf16, #tpu.memory_space<vmem>>, vector<128x128xbf16>
    %cst_159 = arith.constant dense<0.000000e+00> : vector<16x128xf32>
    %262 = tpu.matmul %260, %261, %cst_159 {dimension_numbers = #tpu.dot_dimension_numbers<[1], [0], [0], [1], [0, 0, 1, 1], [], []>} : vector<16x128xbf16>, vector<128x128xbf16>, vector<16x128xf32> -> vector<16x128xf32>
    %c0_160 = arith.constant 0 : index
    %c0_161 = arith.constant 0 : index
    %263 = vector.load %arg41[%c0_160, %c0_161] : memref<1x128xf32, #tpu.memory_space<vmem>>, vector<1x128xf32>
    %264 = vector.broadcast %263 : vector<1x128xf32> to vector<16x128xf32>
    %265 = arith.addf %262, %264 : vector<16x128xf32>
    %cst_162 = arith.constant 0.000000e+00 : f32
    %266 = vector.broadcast %cst_162 : f32 to vector<16x128xf32>
    %267 = arith.maximumf %265, %266 : vector<16x128xf32>
    %268 = arith.truncf %267 : vector<16x128xf32> to vector<16x128xbf16>
    %c0_163 = arith.constant 0 : index
    %c0_164 = arith.constant 0 : index
    %269 = vector.load %arg42[%c0_163, %c0_164] : memref<128x128xbf16, #tpu.memory_space<vmem>>, vector<128x128xbf16>
    %cst_165 = arith.constant dense<0.000000e+00> : vector<16x128xf32>
    %270 = tpu.matmul %268, %269, %cst_165 {dimension_numbers = #tpu.dot_dimension_numbers<[1], [0], [0], [1], [0, 0, 1, 1], [], []>} : vector<16x128xbf16>, vector<128x128xbf16>, vector<16x128xf32> -> vector<16x128xf32>
    %c0_166 = arith.constant 0 : index
    %c0_167 = arith.constant 0 : index
    %271 = vector.load %arg43[%c0_166, %c0_167] : memref<1x128xf32, #tpu.memory_space<vmem>>, vector<1x128xf32>
    %272 = vector.broadcast %271 : vector<1x128xf32> to vector<16x128xf32>
    %273 = arith.addf %270, %272 : vector<16x128xf32>
    %c0_168 = arith.constant 0 : index
    %c0_169 = arith.constant 0 : index
    %274 = vector.load %arg46[%c0_168, %c0_169] : memref<16x128xf32, #tpu.memory_space<vmem>>, vector<16x128xf32>
    tpu.vector_store %arg46[%c0_168, %c0_169], %273 {strides = array<i32>} : memref<16x128xf32, #tpu.memory_space<vmem>>, vector<16x128xf32>,
    return
  }
  func.func @transform_0(%arg0: i32) -> (i32, i32) {
    %c0_i32 = arith.constant 0 : i32
    %c0_i32_0 = arith.constant 0 : i32
    return %arg0, %c0_i32 : i32, i32
  }
  func.func @transform_1(%arg0: i32) -> (i32, i32) {
    %c0_i32 = arith.constant 0 : i32
    %c0_i32_0 = arith.constant 0 : i32
    return %arg0, %c0_i32 : i32, i32
  }
  func.func @transform_2(%arg0: i32) -> (i32, i32) {
    %c0_i32 = arith.constant 0 : i32
    %c0_i32_0 = arith.constant 0 : i32
    %c0_i32_1 = arith.constant 0 : i32
    return %c0_i32, %c0_i32_0 : i32, i32
  }
  func.func @transform_3(%arg0: i32) -> (i32, i32) {
    %c0_i32 = arith.constant 0 : i32
    %c0_i32_0 = arith.constant 0 : i32
    %c0_i32_1 = arith.constant 0 : i32
    return %c0_i32, %c0_i32_0 : i32, i32
  }
  func.func @transform_4(%arg0: i32) -> (i32, i32) {
    %c0_i32 = arith.constant 0 : i32
    %c0_i32_0 = arith.constant 0 : i32
    %c0_i32_1 = arith.constant 0 : i32
    return %c0_i32, %c0_i32_0 : i32, i32
  }
  func.func @transform_5(%arg0: i32) -> (i32, i32) {
    %c0_i32 = arith.constant 0 : i32
    %c0_i32_0 = arith.constant 0 : i32
    %c0_i32_1 = arith.constant 0 : i32
    return %c0_i32, %c0_i32_0 : i32, i32
  }
  func.func @transform_6(%arg0: i32) -> (i32, i32) {
    %c0_i32 = arith.constant 0 : i32
    %c0_i32_0 = arith.constant 0 : i32
    %c0_i32_1 = arith.constant 0 : i32
    return %c0_i32, %c0_i32_0 : i32, i32
  }
  func.func @transform_7(%arg0: i32) -> (i32, i32) {
    %c0_i32 = arith.constant 0 : i32
    %c0_i32_0 = arith.constant 0 : i32
    %c0_i32_1 = arith.constant 0 : i32
    return %c0_i32, %c0_i32_0 : i32, i32
  }
  func.func @transform_8(%arg0: i32) -> (i32, i32) {
    %c0_i32 = arith.constant 0 : i32
    %c0_i32_0 = arith.constant 0 : i32
    %c0_i32_1 = arith.constant 0 : i32
    return %c0_i32, %c0_i32_0 : i32, i32
  }
  func.func @transform_9(%arg0: i32) -> (i32, i32) {
    %c0_i32 = arith.constant 0 : i32
    %c0_i32_0 = arith.constant 0 : i32
    %c0_i32_1 = arith.constant 0 : i32
    return %c0_i32, %c0_i32_0 : i32, i32
  }
  func.func @transform_10(%arg0: i32) -> (i32, i32) {
    %c0_i32 = arith.constant 0 : i32
    %c0_i32_0 = arith.constant 0 : i32
    %c0_i32_1 = arith.constant 0 : i32
    return %c0_i32, %c0_i32_0 : i32, i32
  }
  func.func @transform_11(%arg0: i32) -> (i32, i32) {
    %c0_i32 = arith.constant 0 : i32
    %c0_i32_0 = arith.constant 0 : i32
    %c0_i32_1 = arith.constant 0 : i32
    return %c0_i32, %c0_i32_0 : i32, i32
  }
  func.func @transform_12(%arg0: i32) -> (i32, i32) {
    %c0_i32 = arith.constant 0 : i32
    %c0_i32_0 = arith.constant 0 : i32
    %c0_i32_1 = arith.constant 0 : i32
    return %c0_i32, %c0_i32_0 : i32, i32
  }
  func.func @transform_13(%arg0: i32) -> (i32, i32) {
    %c0_i32 = arith.constant 0 : i32
    %c0_i32_0 = arith.constant 0 : i32
    %c0_i32_1 = arith.constant 0 : i32
    return %c0_i32, %c0_i32_0 : i32, i32
  }
  func.func @transform_14(%arg0: i32) -> (i32, i32) {
    %c0_i32 = arith.constant 0 : i32
    %c0_i32_0 = arith.constant 0 : i32
    %c0_i32_1 = arith.constant 0 : i32
    return %c0_i32, %c0_i32_0 : i32, i32
  }
  func.func @transform_15(%arg0: i32) -> (i32, i32) {
    %c0_i32 = arith.constant 0 : i32
    %c0_i32_0 = arith.constant 0 : i32
    %c0_i32_1 = arith.constant 0 : i32
    return %c0_i32, %c0_i32_0 : i32, i32
  }
  func.func @transform_16(%arg0: i32) -> (i32, i32) {
    %c0_i32 = arith.constant 0 : i32
    %c0_i32_0 = arith.constant 0 : i32
    %c0_i32_1 = arith.constant 0 : i32
    return %c0_i32, %c0_i32_0 : i32, i32
  }
  func.func @transform_17(%arg0: i32) -> (i32, i32) {
    %c0_i32 = arith.constant 0 : i32
    %c0_i32_0 = arith.constant 0 : i32
    %c0_i32_1 = arith.constant 0 : i32
    return %c0_i32, %c0_i32_0 : i32, i32
  }
  func.func @transform_18(%arg0: i32) -> (i32, i32) {
    %c0_i32 = arith.constant 0 : i32
    %c0_i32_0 = arith.constant 0 : i32
    %c0_i32_1 = arith.constant 0 : i32
    return %c0_i32, %c0_i32_0 : i32, i32
  }
  func.func @transform_19(%arg0: i32) -> (i32, i32) {
    %c0_i32 = arith.constant 0 : i32
    %c0_i32_0 = arith.constant 0 : i32
    %c0_i32_1 = arith.constant 0 : i32
    return %c0_i32, %c0_i32_0 : i32, i32
  }
  func.func @transform_20(%arg0: i32) -> (i32, i32) {
    %c0_i32 = arith.constant 0 : i32
    %c0_i32_0 = arith.constant 0 : i32
    %c0_i32_1 = arith.constant 0 : i32
    return %c0_i32, %c0_i32_0 : i32, i32
  }
  func.func @transform_21(%arg0: i32) -> (i32, i32) {
    %c0_i32 = arith.constant 0 : i32
    %c0_i32_0 = arith.constant 0 : i32
    %c0_i32_1 = arith.constant 0 : i32
    return %c0_i32, %c0_i32_0 : i32, i32
  }
  func.func @transform_22(%arg0: i32) -> (i32, i32) {
    %c0_i32 = arith.constant 0 : i32
    %c0_i32_0 = arith.constant 0 : i32
    %c0_i32_1 = arith.constant 0 : i32
    return %c0_i32, %c0_i32_0 : i32, i32
  }
  func.func @transform_23(%arg0: i32) -> (i32, i32) {
    %c0_i32 = arith.constant 0 : i32
    %c0_i32_0 = arith.constant 0 : i32
    %c0_i32_1 = arith.constant 0 : i32
    return %c0_i32, %c0_i32_0 : i32, i32
  }
  func.func @transform_24(%arg0: i32) -> (i32, i32) {
    %c0_i32 = arith.constant 0 : i32
    %c0_i32_0 = arith.constant 0 : i32
    %c0_i32_1 = arith.constant 0 : i32
    return %c0_i32, %c0_i32_0 : i32, i32
  }
  func.func @transform_25(%arg0: i32) -> (i32, i32) {
    %c0_i32 = arith.constant 0 : i32
    %c0_i32_0 = arith.constant 0 : i32
    %c0_i32_1 = arith.constant 0 : i32
    return %c0_i32, %c0_i32_0 : i32, i32
  }
  func.func @transform_26(%arg0: i32) -> (i32, i32) {
    %c0_i32 = arith.constant 0 : i32
    %c0_i32_0 = arith.constant 0 : i32
    %c0_i32_1 = arith.constant 0 : i32
    return %c0_i32, %c0_i32_0 : i32, i32
  }
  func.func @transform_27(%arg0: i32) -> (i32, i32) {
    %c0_i32 = arith.constant 0 : i32
    %c0_i32_0 = arith.constant 0 : i32
    %c0_i32_1 = arith.constant 0 : i32
    return %c0_i32, %c0_i32_0 : i32, i32
  }
  func.func @transform_28(%arg0: i32) -> (i32, i32) {
    %c0_i32 = arith.constant 0 : i32
    %c0_i32_0 = arith.constant 0 : i32
    %c0_i32_1 = arith.constant 0 : i32
    return %c0_i32, %c0_i32_0 : i32, i32
  }
  func.func @transform_29(%arg0: i32) -> (i32, i32) {
    %c0_i32 = arith.constant 0 : i32
    %c0_i32_0 = arith.constant 0 : i32
    %c0_i32_1 = arith.constant 0 : i32
    return %c0_i32, %c0_i32_0 : i32, i32
  }
  func.func @transform_30(%arg0: i32) -> (i32, i32) {
    %c0_i32 = arith.constant 0 : i32
    %c0_i32_0 = arith.constant 0 : i32
    %c0_i32_1 = arith.constant 0 : i32
    return %c0_i32, %c0_i32_0 : i32, i32
  }
  func.func @transform_31(%arg0: i32) -> (i32, i32) {
    %c0_i32 = arith.constant 0 : i32
    %c0_i32_0 = arith.constant 0 : i32
    %c0_i32_1 = arith.constant 0 : i32
    return %c0_i32, %c0_i32_0 : i32, i32
  }
  func.func @transform_32(%arg0: i32) -> (i32, i32) {
    %c0_i32 = arith.constant 0 : i32
    %c0_i32_0 = arith.constant 0 : i32
    %c0_i32_1 = arith.constant 0 : i32
    return %c0_i32, %c0_i32_0 : i32, i32
  }
  func.func @transform_33(%arg0: i32) -> (i32, i32) {
    %c0_i32 = arith.constant 0 : i32
    %c0_i32_0 = arith.constant 0 : i32
    %c0_i32_1 = arith.constant 0 : i32
    return %c0_i32, %c0_i32_0 : i32, i32
  }
  func.func @transform_34(%arg0: i32) -> (i32, i32) {
    %c0_i32 = arith.constant 0 : i32
    %c0_i32_0 = arith.constant 0 : i32
    %c0_i32_1 = arith.constant 0 : i32
    return %c0_i32, %c0_i32_0 : i32, i32
  }
  func.func @transform_35(%arg0: i32) -> (i32, i32) {
    %c0_i32 = arith.constant 0 : i32
    %c0_i32_0 = arith.constant 0 : i32
    %c0_i32_1 = arith.constant 0 : i32
    return %c0_i32, %c0_i32_0 : i32, i32
  }
  func.func @transform_36(%arg0: i32) -> (i32, i32) {
    %c0_i32 = arith.constant 0 : i32
    %c0_i32_0 = arith.constant 0 : i32
    %c0_i32_1 = arith.constant 0 : i32
    return %c0_i32, %c0_i32_0 : i32, i32
  }
  func.func @transform_37(%arg0: i32) -> (i32, i32) {
    %c0_i32 = arith.constant 0 : i32
    %c0_i32_0 = arith.constant 0 : i32
    %c0_i32_1 = arith.constant 0 : i32
    return %c0_i32, %c0_i32_0 : i32, i32
  }
  func.func @transform_38(%arg0: i32) -> (i32, i32) {
    %c0_i32 = arith.constant 0 : i32
    %c0_i32_0 = arith.constant 0 : i32
    %c0_i32_1 = arith.constant 0 : i32
    return %c0_i32, %c0_i32_0 : i32, i32
  }
  func.func @transform_39(%arg0: i32) -> (i32, i32) {
    %c0_i32 = arith.constant 0 : i32
    %c0_i32_0 = arith.constant 0 : i32
    %c0_i32_1 = arith.constant 0 : i32
    return %c0_i32, %c0_i32_0 : i32, i32
  }
  func.func @transform_40(%arg0: i32) -> (i32, i32) {
    %c0_i32 = arith.constant 0 : i32
    %c0_i32_0 = arith.constant 0 : i32
    %c0_i32_1 = arith.constant 0 : i32
    return %c0_i32, %c0_i32_0 : i32, i32
  }
  func.func @transform_41(%arg0: i32) -> (i32, i32) {
    %c0_i32 = arith.constant 0 : i32
    %c0_i32_0 = arith.constant 0 : i32
    %c0_i32_1 = arith.constant 0 : i32
    return %c0_i32, %c0_i32_0 : i32, i32
  }
  func.func @transform_42(%arg0: i32) -> (i32, i32) {
    %c0_i32 = arith.constant 0 : i32
    %c0_i32_0 = arith.constant 0 : i32
    %c0_i32_1 = arith.constant 0 : i32
    return %c0_i32, %c0_i32_0 : i32, i32
  }
  func.func @transform_43(%arg0: i32) -> (i32, i32) {
    %c0_i32 = arith.constant 0 : i32
    %c0_i32_0 = arith.constant 0 : i32
    return %arg0, %c0_i32 : i32, i32
  }
  func.func @transform_44(%arg0: i32) -> (i32, i32) {
    %c0_i32 = arith.constant 0 : i32
    %c0_i32_0 = arith.constant 0 : i32
    return %arg0, %c0_i32 : i32, i32
  }
  func.func @transform_45(%arg0: i32) -> (i32, i32) {
    %c0_i32 = arith.constant 0 : i32
    %c0_i32_0 = arith.constant 0 : i32
    return %arg0, %c0_i32 : i32, i32
  }
}

</mosaic_0001>

<bundles_post_ra>
// kernel: tpu_custom_call.1
= control target key start
LH: loop header
LB: loop body
LE: loop exit
PB: predicated region body
PF: predicated region fallthrough
CT: control target
= control target key end

     0   :  { %s7236_s6 = smov 1   ;;  %s7237_s10 = smov 2   ;;  %s8363_s0 = inlined_call_operand.smem [shape: u32[46], index: -1, kind: input, shape index: {}] }
   0x1   :  { %s7329_s5 = sld [smem:[%s8363_s0]]   ;;  %s7238_s14 = smov 3  }
   0x2   :  { %s7334_s9 = sld [smem:[%s8363_s0 + %s7236_s6]]   ;;  %s7239_s18 = smov 4  }
   0x3   :  { %s7339_s13 = sld [smem:[%s8363_s0 + %s7237_s10]]   ;;  %s7240_s22 = smov 5  }
   0x4   :  { %s7344_s17 = sld [smem:[%s8363_s0 + %s7238_s14]]   ;;  %s7241_s26 = smov 6  }
   0x5   :  { %s7349_s21 = sld [smem:[%s8363_s0 + %s7239_s18]]   ;;  %s7242_s30 = smov 7  }
   0x6   :  { %s7354_s25 = sld [smem:[%s8363_s0 + %s7240_s22]]   ;;  %s7243_s4 = smov 8  }
   0x7   :  { %8384 = sst [smem:[#allocation64_spill]] %s7329_s5  ;;  %s7244_s10 = smov 9  }
   0x8   :  { %8385 = sst [smem:[#allocation65_spill]] %s7334_s9  ;;  %s7245_s15 = smov 10  }
   0x9   :  { %8386 = sst [smem:[#allocation66_spill]] %s7339_s13  ;;  %s7246_s20 = smov 11  }
   0xa   :  { %8387 = sst [smem:[#allocation67_spill]] %s7344_s17  ;;  %s7248_s1 = smov 13  }
   0xb   :  { %8388 = sst [smem:[#allocation68_spill]] %s7349_s21  ;;  %s7249_s7 = smov 14  }
   0xc   :  { %8389 = sst [smem:[#allocation69_spill]] %s7354_s25  ;;  %s7251_s22 = smov 16  }
   0xd   :  { %s7359_s29 = sld [smem:[%s8363_s0 + %s7241_s26]]   ;;  %s7247_s26 = smov 12  }
   0xe   :  { %s7364_s3 = sld [smem:[%s8363_s0 + %s7242_s30]]   ;;  %s7252_s28 = smov 17  }
   0xf   :  { %s7369_s8 = sld [smem:[%s8363_s0 + %s7243_s4]]  }
  0x10   :  { %s7374_s14 = sld [smem:[%s8363_s0 + %s7244_s10]]  }
  0x11   :  { %s7379_s19 = sld [smem:[%s8363_s0 + %s7245_s15]]   ;;  %s7250_s15 = smov 15  }
  0x12   :  { %s7384_s24 = sld [smem:[%s8363_s0 + %s7246_s20]]  }
  0x13   :  { %8390 = sst [smem:[#allocation70_spill]] %s7359_s29 }
  0x14   :  { %8391 = sst [smem:[#allocation71_spill]] %s7364_s3 }
  0x15   :  { %8392 = sst [smem:[#allocation72_spill]] %s7369_s8 }
  0x16   :  { %8393 = sst [smem:[#allocation73_spill]] %s7374_s14 }
  0x17   :  { %8394 = sst [smem:[#allocation74_spill]] %s7379_s19 }
  0x18   :  { %8395 = sst [smem:[#allocation75_spill]] %s7384_s24 }
  0x19   :  { %s7389_s30 = sld [smem:[%s8363_s0 + %s7247_s26]]  }
  0x1a   :  { %s7394_s6 = sld [smem:[%s8363_s0 + %s7248_s1]]  }
  0x1b   :  { %s7399_s12 = sld [smem:[%s8363_s0 + %s7249_s7]]   ;;  %s7253_s7 = smov 18  }
  0x1c   :  { %s7404_s20 = sld [smem:[%s8363_s0 + %s7250_s15]]   ;;  %s7254_s15 = smov 19  }
  0x1d   :  { %s7409_s27 = sld [smem:[%s8363_s0 + %s7251_s22]]   ;;  %s7255_s22 = smov 20  }
  0x1e   :  { %s7414_s4 = sld [smem:[%s8363_s0 + %s7252_s28]]   ;;  %s7256_s28 = smov 21  }
  0x1f   :  { %8396 = sst [smem:[#allocation76_spill]] %s7389_s30 }
  0x20   :  { %8397 = sst [smem:[#allocation77_spill]] %s7394_s6 }
  0x21   :  { %8398 = sst [smem:[#allocation78_spill]] %s7399_s12 }
  0x22   :  { %8399 = sst [smem:[#allocation79_spill]] %s7404_s20 }
  0x23   :  { %8400 = sst [smem:[#allocation80_spill]] %s7409_s27 }
  0x24   :  { %8401 = sst [smem:[#allocation81_spill]] %s7414_s4 }
  0x25   :  { %s7419_s29 = sld [smem:[%s8363_s0 + %s7253_s7]]   ;;  %s7257_s7 = smov 22  }
  0x26   :  { %s7424_s21 = sld [smem:[%s8363_s0 + %s7254_s15]]   ;;  %s7258_s15 = smov 23  }
  0x27   :  { %s7429_s27 = sld [smem:[%s8363_s0 + %s7255_s22]]   ;;  %s7259_s22 = smov 24  }
  0x28   :  { %s7434_s13 = sld [smem:[%s8363_s0 + %s7256_s28]]   ;;  %s7260_s28 = smov 25  }
  0x29   :  { %s7439_s9 = sld [smem:[%s8363_s0 + %s7257_s7]]   ;;  %s7261_s7 = smov 26  }
  0x2a   :  { %s7444_s5 = sld [smem:[%s8363_s0 + %s7258_s15]]   ;;  %s7262_s15 = smov 27  }
  0x2b   :  { %8402 = sst [smem:[#allocation82_spill]] %s7419_s29 }
  0x2c   :  { %8403 = sst [smem:[#allocation83_spill]] %s7424_s21 }
  0x2d   :  { %8404 = sst [smem:[#allocation84_spill]] %s7429_s27 }
  0x2e   :  { %8405 = sst [smem:[#allocation85_spill]] %s7434_s13 }
  0x2f   :  { %8406 = sst [smem:[#allocation86_spill]] %s7439_s9 }
  0x30   :  { %8407 = sst [smem:[#allocation87_spill]] %s7444_s5 }
  0x31   :  { %s7449_s27 = sld [smem:[%s8363_s0 + %s7259_s22]]   ;;  %s7263_s22 = smov 28  }
  0x32   :  { %s7454_s13 = sld [smem:[%s8363_s0 + %s7260_s28]]   ;;  %s7264_s28 = smov 29  }
  0x33   :  { %s7459_s9 = sld [smem:[%s8363_s0 + %s7261_s7]]   ;;  %s7265_s7 = smov 30  }
  0x34   :  { %s7464_s5 = sld [smem:[%s8363_s0 + %s7262_s15]]   ;;  %s7266_s15 = smov 31  }
  0x35   :  { %s7469_s29 = sld [smem:[%s8363_s0 + %s7263_s22]]   ;;  %s7267_s22 = smov 32  }
  0x36   :  { %s7489_s20 = sld [smem:[%s8363_s0 + %s7267_s22]]   ;;  %s7271_s22 = smov 36  }
  0x37   :  { %8408 = sst [smem:[#allocation88_spill]] %s7449_s27 }
  0x38   :  { %8409 = sst [smem:[#allocation89_spill]] %s7454_s13 }
  0x39   :  { %8410 = sst [smem:[#allocation90_spill]] %s7459_s9 }
  0x3a   :  { %8411 = sst [smem:[#allocation91_spill]] %s7464_s5 }
  0x3b   :  { %8412 = sst [smem:[#allocation92_spill]] %s7469_s29 }
  0x3c   :  { %s7474_s13 = sld [smem:[%s8363_s0 + %s7264_s28]]   ;;  %s7268_s28 = smov 33  }
  0x3d   :  { %s7479_s9 = sld [smem:[%s8363_s0 + %s7265_s7]]   ;;  %s7269_s7 = smov 34  }
  0x3e   :  { %s7484_s5 = sld [smem:[%s8363_s0 + %s7266_s15]]   ;;  %s7270_s15 = smov 35  }
  0x3f   :  { %8416 = sst [smem:[#allocation96_spill]] %s7489_s20 }
  0x40   :  { %s7509_s20 = sld [smem:[%s8363_s0 + %s7271_s22]]   ;;  %s7275_s22 = smov 40  }
  0x42   :  { %8413 = sst [smem:[#allocation93_spill]] %s7474_s13 }
  0x43   :  { %8414 = sst [smem:[#allocation94_spill]] %s7479_s9 }
  0x44   :  { %8415 = sst [smem:[#allocation95_spill]] %s7484_s5 }
  0x45   :  { %s7494_s13 = sld [smem:[%s8363_s0 + %s7268_s28]]   ;;  %s7272_s28 = smov 37  }
  0x46   :  { %s7499_s9 = sld [smem:[%s8363_s0 + %s7269_s7]]   ;;  %s7273_s7 = smov 38  }
  0x47   :  { %s7504_s5 = sld [smem:[%s8363_s0 + %s7270_s15]]   ;;  %s7274_s15 = smov 39  }
  0x48   :  { %8420 = sst [smem:[#allocation100_spill]] %s7509_s20 }
  0x49   :  { %s7519_s6 = sld [smem:[%s8363_s0 + %s7273_s7]]   ;;  %s7277_s7 = smov 42  }
  0x4a   :  { %s7529_s20 = sld [smem:[%s8363_s0 + %s7275_s22]]   ;;  %s7279_s22 = smov 44  }
  0x4b   :  { %8417 = sst [smem:[#allocation97_spill]] %s7494_s13 }
  0x4c   :  { %8418 = sst [smem:[#allocation98_spill]] %s7499_s9 }
  0x4d   :  { %8419 = sst [smem:[#allocation99_spill]] %s7504_s5 }
  0x4e   :  { %s7514_s13 = sld [smem:[%s8363_s0 + %s7272_s28]]   ;;  %s7276_s28 = smov 41  }
  0x4f   :  { %8422 = sst [smem:[#allocation102_spill]] %s7519_s6 }
  0x50   :  { %s7524_s5 = sld [smem:[%s8363_s0 + %s7274_s15]]   ;;  %s7278_s15 = smov 43  }
  0x51   :  { %8424 = sst [smem:[#allocation104_spill]] %s7529_s20 }
  0x52   :  { %s7534_s24 = sld [smem:[%s8363_s0 + %s7276_s28]]   ;;  %s7280_s28 = smov 45  }
  0x53   :  { %s7539_s6 = sld [smem:[%s8363_s0 + %s7277_s7]]  }
  0x54   :  { %8421 = sst [smem:[#allocation101_spill]] %s7514_s13 }
  0x55   :  { %s7549_s20 = sld [smem:[%s8363_s0 + %s7279_s22]]  }
  0x56   :  { %8423 = sst [smem:[#allocation103_spill]] %s7524_s5 }
  0x57   :  { %s7544_s5 = sld [smem:[%s8363_s0 + %s7278_s15]]  }
  0x58   :  { %8425 = sst [smem:[#allocation105_spill]] %s7534_s24 }
  0x59   :  { %8426 = sst [smem:[#allocation106_spill]] %s7539_s6 }
  0x5a   :  { %s7554_s24 = sld [smem:[%s8363_s0 + %s7280_s28]]  }
  0x60   :  { %8427 = sst [smem:[#allocation107_spill]] %s7554_s24 }
  0x61   :  { %97 = vsyncpa [#allocation3], 0 }
  0x62   :  { %99 = vsyncpa [#allocation3 + $0x1], 0 }
  0x63   :  { %100 = vsyncpa [#allocation6], 0 }
  0x64   :  { %102 = vsyncpa [#allocation6 + $0x1], 0 }
  0x65   :  { %103 = vsyncpa [#allocation9], 0 }
  0x66   :  { %104 = vsyncpa [#allocation12], 0 }
  0x67   :  { %105 = vsyncpa [#allocation15], 0 }
  0x68   :  { %106 = vsyncpa [#allocation18], 0 }
  0x69   :  { %107 = vsyncpa [#allocation21], 0 }
  0x6a   :  { %108 = vsyncpa [#allocation24], 0 }
  0x6b   :  { %109 = vsyncpa [#allocation27], 0 }
  0x6c   :  { %110 = vsyncpa [#allocation30], 0 }
  0x6d   :  { %111 = vsyncpa [#allocation33], 0 }
  0x6e   :  { %112 = vsyncpa [#allocation36], 0 }
  0x6f   :  { %113 = vsyncpa [#allocation39], 0 }
  0x70   :  { %114 = vsyncpa [#allocation42], 0 }
  0x71   :  { %115 = vsyncpa [#allocation4], 0 }
  0x72   :  { %117 = vsyncpa [#allocation4 + $0x1], 0 }
  0x73   :  { %118 = vsyncpa [#allocation45], 0 }
  0x74   :  { %120 = vsyncpa [#allocation45 + $0x1], 0  ;;  %s7556_s0 = smov 0   ;;  %s7558_s7 = smov 0  }
  0x75   :  { %s7560_s10 = smov 0   ;;  %s7562_s11 = smov 0  }
  0x76 LB: > { %s7281_s15 = smov [#allocation7]   ;;  %s7577_s18 = sadd.s32 4294967295, %s7234_s11   ;;  %s7234_s11 = sphi %s7562_s11, %s8517_s11   ;;  %s7230_s10 = sphi %s7560_s10, %s8516_s10   ;;  %s7226_s7 = sphi %s7558_s7, %s8515_s7   ;;  %s7222_s0 = sphi %s7556_s0, %s8514_s0  }
  0x77   : > { %s1138_s16 = sshll.u32 %s7281_s15, 4  ;;  %p4913_p0 = scmp.ge.s32.totalorder %s7234_s11, 1  ;;  %s1139_s16 = int_to_ptr.vmem [resolvable:$true] %s1138_s16 }
  0x78   : > { %p8373_p1 = scmp.eq.s32.totalorder %s7577_s18, 0  ;;  %p1122_p2 = scmp.lt.s32.totalorder %s7234_s11, 3 }
  0x79   : > { %s7282_s23 = smov [#allocation8]   ;;  %s7283_s28 = smov [#allocation11]  }
  0x7a   : > { %p7582_p3 = pnand %p4913_p0, %p1122_p2  ;;  %s1152_s26 = sshll.u32 %s7282_s23, 4  ;;  %s1153_s26 = int_to_ptr.vmem [resolvable:$true] %s1152_s26 }
  0x7b   : > { %s1176_s1 = sshll.u32 %s7283_s28, 4  ;;  %s6389_s24 = scalar_lea.vmem %s1139_s16, 16  ;;  %s7595_s1 = int_to_ptr.vmem [resolvable:$true] %s1176_s1 }
  0x7c   : > { %s8428_s22 = scalar_select %p7582_p3, 1, 0 }
  0x7d   : > { %p5882_p5 = pneg %p7582_p3  ;;  %p6390_p8 = scmp.ne.s32.totalorder %s1139_s16, %s6389_s24 }
  0x7e   : > { %s6396_s23 = scalar_lea.vmem %s1139_s16, 32  ;;  %p6397_p11 = scmp.lt.s32.totalorder %s1139_s16, %s1139_s16 }
  0x7f   : > { %p7591_p6 = pnand %p5882_p5, %p8373_p1  ;;  %p6398_p12 = scmp.lt.s32.totalorder %s6396_s23, %s6389_s24 }
  0x81   : > { %p7599_p7 = pneg %p7591_p6  ;;  %p6399_p13 = por %p6398_p12, %p6397_p11 }
  0x83   : > { %p6392_p9 = pnand %p6390_p8, %p7599_p7 }
  0x85   : > { %p6393_p10 = pneg %p6392_p9 }
  0x87   : > { %p6400_p0 = pnand %p6399_p13, %p6393_p10 }
  0x89   : > { %6403 = shalt.err (!%p6400_p0)
}
  0x8a   : > { %s8431_s17 = sld [smem:[#allocation67_spill]]  ;;  %s6415_s28 = scalar_lea.vmem %s1153_s26, 16 }
  0x8b   : > { %p6416_p2 = scmp.ne.s32.totalorder %s1153_s26, %s6415_s28  ;;  %s6422_s6 = scalar_lea.vmem %s1153_s26, 32 }
  0x8c   : > { %p6423_p1 = scmp.lt.s32.totalorder %s1153_s26, %s1153_s26  ;;  %p6424_p8 = scmp.lt.s32.totalorder %s6422_s6, %s6415_s28 }
  0x8d   : > { %p6418_p5 = pnand %p6416_p2, %p7599_p7 }
  0x8e   : > { %p6425_p9 = por %p6424_p8, %p6423_p1 }
  0x8f   : > { %p6419_p4 = pneg %p6418_p5 }
  0x90   : > { %5885 = dma.hbm_to_vmem [thread:$0]  (!%p7591_p6), %s8431_s17, 16, %s1139_s16, [#allocation6]  }
  0x91   : > { %p6426_p3 = pnand %p6425_p9, %p6419_p4 }
  0x93   : > { %6429 = shalt.err (!%p6426_p3)
}
  0x94   : > { %s8432_s25 = sld [smem:[#allocation69_spill]]  ;;  %s6441_s24 = scalar_lea.vmem %s7595_s1, 1024 }
  0x95   : > { %p6442_p10 = scmp.ne.s32.totalorder %s7595_s1, %s6441_s24  ;;  %p6449_p13 = scmp.lt.s32.totalorder %s7595_s1, %s7595_s1 }
  0x96   : > { %p6450_p0 = scmp.lt.s32.totalorder %s6441_s24, %s6441_s24 }
  0x97   : > { %p6444_p11 = pnand %p6442_p10, %p7599_p7 }
  0x98   : > { %p6451_p2 = por %p6450_p0, %p6449_p13 }
  0x99   : > { %p6445_p12 = pneg %p6444_p11 }
  0x9a   : > { %5888 = dma.hbm_to_vmem [thread:$0]  (!%p7591_p6), %s8432_s25, 16, %s1153_s26, [#allocation9]  }
  0x9b   : > { %p6452_p1 = pnand %p6451_p2, %p6445_p12 }
  0x9d   : > { %6455 = shalt.err (!%p6452_p1)
}
  0x9e   : > { %s8375_s6 = smov 64   ;;  %s8433_s8 = sld [smem:[#allocation72_spill]] }
  0x9f   : > { %s8377_s16 = smov 4   ;;  %s7286_s26 = smov [#allocation14]  }
  0xa0   : > { %s1200_s23 = sshll.u32 %s7286_s26, 4  ;;  %s7287_s28 = smov [#allocation17]   ;;  %s1201_s23 = int_to_ptr.vmem [resolvable:$true] %s1200_s23 }
  0xa1   : > { %s1224_s17 = sshll.u32 %s7287_s28, 4  ;;  %s6467_s24 = scalar_lea.vmem %s1201_s23, 1024  ;;  %s1225_s17 = int_to_ptr.vmem [resolvable:$true] %s1224_s17 }
  0xa2   : > { %p6468_p3 = scmp.ne.s32.totalorder %s1201_s23, %s6467_s24  ;;  %p6475_p8 = scmp.lt.s32.totalorder %s1201_s23, %s1201_s23 }
  0xa3   : > { %p6476_p9 = scmp.lt.s32.totalorder %s6467_s24, %s6467_s24 }
  0xa4   : > { %5894 = dma.hbm_to_vmem [thread:$0]  (!%p7591_p6), %s8433_s8, 1024, %s7595_s1, [#allocation12], %s8375_s6, %s8375_s6, %s8377_s16  }
  0xa5   : > { %p6470_p4 = pnand %p6468_p3, %p7599_p7  ;;  %p6477_p10 = por %p6476_p9, %p6475_p8 }
  0xa7   : > { %p6471_p5 = pneg %p6470_p4 }
  0xa9   : > { %p6478_p11 = pnand %p6477_p10, %p6471_p5 }
  0xab   : > { %6481 = shalt.err (!%p6478_p11)
}
  0xac   : > { %s8434_s19 = sld [smem:[#allocation74_spill]]  ;;  %s6493_s1 = scalar_lea.vmem %s1225_s17, 1024 }
  0xad   : > { %p6494_p12 = scmp.ne.s32.totalorder %s1225_s17, %s6493_s1  ;;  %p6501_p2 = scmp.lt.s32.totalorder %s1225_s17, %s1225_s17 }
  0xae   : > { %p6502_p1 = scmp.lt.s32.totalorder %s6493_s1, %s6493_s1 }
  0xaf   : > { %p6496_p13 = pnand %p6494_p12, %p7599_p7 }
  0xb0   : > { %p6503_p3 = por %p6502_p1, %p6501_p2 }
  0xb1   : > { %p6497_p0 = pneg %p6496_p13 }
  0xb2   : > { %5900 = dma.hbm_to_vmem [thread:$0]  (!%p7591_p6), %s8434_s19, 1024, %s1201_s23, [#allocation15], %s8375_s6, %s8375_s6, %s8377_s16  }
  0xb3   : > { %p6504_p4 = pnand %p6503_p3, %p6497_p0 }
  0xb5   : > { %6507 = shalt.err (!%p6504_p4)
}
  0xb6   : > { %s8435_s30 = sld [smem:[#allocation76_spill]]  ;;  %s7288_s26 = smov [#allocation20]  }
  0xb7   : > { %s1248_s23 = sshll.u32 %s7288_s26, 4  ;;  %s7289_s28 = smov [#allocation23]   ;;  %s1249_s23 = int_to_ptr.vmem [resolvable:$true] %s1248_s23 }
  0xb8   : > { %s1276_s24 = sshll.u32 %s7289_s28, 4  ;;  %s6519_s8 = scalar_lea.vmem %s1249_s23, 1024  ;;  %s1277_s24 = int_to_ptr.vmem [resolvable:$true] %s1276_s24 }
  0xb9   : > { %p6520_p5 = scmp.ne.s32.totalorder %s1249_s23, %s6519_s8  ;;  %p6527_p10 = scmp.lt.s32.totalorder %s1249_s23, %s1249_s23 }
  0xba   : > { %p6528_p11 = scmp.lt.s32.totalorder %s6519_s8, %s6519_s8 }
  0xbb   : > { %p6522_p8 = pnand %p6520_p5, %p7599_p7 }
  0xbc   : > { %5906 = dma.hbm_to_vmem [thread:$0]  (!%p7591_p6), %s8435_s30, 1024, %s1225_s17, [#allocation18], %s8375_s6, %s8375_s6, %s8377_s16  }
  0xbd   : > { %p6523_p9 = pneg %p6522_p8  ;;  %p6529_p12 = por %p6528_p11, %p6527_p10 }
  0xbf   : > { %p6530_p13 = pnand %p6529_p12, %p6523_p9 }
  0xc1   : > { %6533 = shalt.err (!%p6530_p13)
}
  0xc2   : > { %s8436_s12 = sld [smem:[#allocation78_spill]]  ;;  %s6545_s17 = scalar_lea.vmem %s1277_s24, 32 }
  0xc3   : > { %p6546_p0 = scmp.ne.s32.totalorder %s1277_s24, %s6545_s17  ;;  %p6553_p3 = scmp.lt.s32.totalorder %s1277_s24, %s1277_s24 }
  0xc4   : > { %p6554_p4 = scmp.lt.s32.totalorder %s6545_s17, %s6545_s17 }
  0xc5   : > { %p6548_p2 = pnand %p6546_p0, %p7599_p7 }
  0xc6   : > { %p6555_p5 = por %p6554_p4, %p6553_p3 }
  0xc7   : > { %p6549_p1 = pneg %p6548_p2 }
  0xc8   : > { %5912 = dma.hbm_to_vmem [thread:$0]  (!%p7591_p6), %s8436_s12, 1024, %s1249_s23, [#allocation21], %s8375_s6, %s8375_s6, %s8377_s16  }
  0xc9   : > { %p6556_p8 = pnand %p6555_p5, %p6549_p1 }
  0xcb   : > { %6559 = shalt.err (!%p6556_p8)
}
  0xcc   : > { %s8437_s4 = sld [smem:[#allocation81_spill]]  ;;  %s7290_s8 = smov [#allocation26]  }
  0xcd   : > { %s1300_s1 = sshll.u32 %s7290_s8, 4  ;;  %s7291_s26 = smov [#allocation29]   ;;  %s1301_s1 = int_to_ptr.vmem [resolvable:$true] %s1300_s1 }
  0xce   : > { %s1332_s23 = sshll.u32 %s7291_s26, 4  ;;  %s6571_s28 = scalar_lea.vmem %s1301_s1, 16  ;;  %s1333_s23 = int_to_ptr.vmem [resolvable:$true] %s1332_s23 }
  0xcf   : > { %p6572_p9 = scmp.ne.s32.totalorder %s1301_s1, %s6571_s28  ;;  %s6578_s6 = scalar_lea.vmem %s1301_s1, 32 }
  0xd0   : > { %p6579_p12 = scmp.lt.s32.totalorder %s1301_s1, %s1301_s1  ;;  %p6580_p13 = scmp.lt.s32.totalorder %s6578_s6, %s6571_s28 }
  0xd1   : > { %p6574_p10 = pnand %p6572_p9, %p7599_p7 }
  0xd2   : > { %5918 = dma.hbm_to_vmem [thread:$0]  (!%p7591_p6), %s8437_s4, 32, %s1277_s24, [#allocation24]  }
  0xd3   : > { %p6575_p11 = pneg %p6574_p10  ;;  %p6581_p0 = por %p6580_p13, %p6579_p12 }
  0xd5   : > { %p6582_p2 = pnand %p6581_p0, %p6575_p11 }
  0xd7   : > { %6585 = shalt.err (!%p6582_p2)
}
  0xd8   : > { %s8438_s21 = sld [smem:[#allocation83_spill]]  ;;  %s6597_s24 = scalar_lea.vmem %s1333_s23, 1024 }
  0xd9   : > { %p6598_p1 = scmp.ne.s32.totalorder %s1333_s23, %s6597_s24  ;;  %p6605_p5 = scmp.lt.s32.totalorder %s1333_s23, %s1333_s23 }
  0xda   : > { %p6606_p8 = scmp.lt.s32.totalorder %s6597_s24, %s6597_s24 }
  0xdb   : > { %p6600_p3 = pnand %p6598_p1, %p7599_p7 }
  0xdc   : > { %p6607_p9 = por %p6606_p8, %p6605_p5 }
  0xdd   : > { %p6601_p4 = pneg %p6600_p3 }
  0xde   : > { %5924 = dma.hbm_to_vmem [thread:$0]  (!%p7591_p6), %s8438_s21, 16, %s1301_s1, [#allocation27]  }
  0xdf   : > { %p6608_p10 = pnand %p6607_p9, %p6601_p4 }
  0xe1   : > { %6611 = shalt.err (!%p6608_p10)
}
  0xe2   : > { %s8439_s6 = smov 64   ;;  %s8440_s27 = sld [smem:[#allocation88_spill]] }
  0xe3   : > { %s7292_s17 = smov [#allocation32]   ;;  %s7293_s1 = smov [#allocation35]  }
  0xe4   : > { %s1364_s8 = sshll.u32 %s7292_s17, 4  ;;  %s1402_s26 = sshll.u32 %s7293_s1, 4  ;;  %s1365_s8 = int_to_ptr.vmem [resolvable:$true] %s1364_s8  ;;  %s1403_s26 = int_to_ptr.vmem [resolvable:$true] %s1402_s26 }
  0xe5   : > { %s6623_s28 = scalar_lea.vmem %s1365_s8, 1024  ;;  %p6631_p0 = scmp.lt.s32.totalorder %s1365_s8, %s1365_s8 }
  0xe6   : > { %p6624_p11 = scmp.ne.s32.totalorder %s1365_s8, %s6623_s28  ;;  %p6632_p2 = scmp.lt.s32.totalorder %s6623_s28, %s6623_s28 }
  0xe8   : > { %5930 = dma.hbm_to_vmem [thread:$0]  (!%p7591_p6), %s8440_s27, 1024, %s1333_s23, [#allocation30], %s8439_s6, %s8439_s6, %s8377_s16  }
  0xe9   : > { %p6626_p12 = pnand %p6624_p11, %p7599_p7  ;;  %p6633_p1 = por %p6632_p2, %p6631_p0 }
  0xeb   : > { %p6627_p13 = pneg %p6626_p12 }
  0xed   : > { %p6634_p3 = pnand %p6633_p1, %p6627_p13 }
  0xef   : > { %6637 = shalt.err (!%p6634_p3)
}
  0xf0   : > { %s8441_s29 = sld [smem:[#allocation92_spill]]  ;;  %s6649_s23 = scalar_lea.vmem %s1403_s26, 1024 }
  0xf1   : > { %p6650_p4 = scmp.ne.s32.totalorder %s1403_s26, %s6649_s23  ;;  %p6657_p9 = scmp.lt.s32.totalorder %s1403_s26, %s1403_s26 }
  0xf2   : > { %p6658_p10 = scmp.lt.s32.totalorder %s6649_s23, %s6649_s23 }
  0xf3   : > { %p6652_p5 = pnand %p6650_p4, %p7599_p7 }
  0xf4   : > { %p6659_p11 = por %p6658_p10, %p6657_p9 }
  0xf5   : > { %p6653_p8 = pneg %p6652_p5 }
  0xf6   : > { %5936 = dma.hbm_to_vmem [thread:$0]  (!%p7591_p6), %s8441_s29, 1024, %s1365_s8, [#allocation33], %s8439_s6, %s8439_s6, %s8377_s16  }
  0xf7   : > { %p6660_p12 = pnand %p6659_p11, %p6653_p8 }
  0xf9   : > { %6663 = shalt.err (!%p6660_p12)
}
  0xfa   : > { %s8442_s9 = sld [smem:[#allocation98_spill]]  ;;  %s7294_s24 = smov [#allocation38]  }
  0xfb   : > { %s1431_s17 = sshll.u32 %s7294_s24, 4  ;;  %s7295_s8 = smov [#allocation10]   ;;  %s1432_s17 = int_to_ptr.vmem [resolvable:$true] %s1431_s17 }
  0xfc   : > { %s1166_s1 = sshll.u32 %s7295_s8, 4  ;;  %s6675_s28 = scalar_lea.vmem %s1432_s17, 1024  ;;  %s1167_s1 = int_to_ptr.vmem [resolvable:$true] %s1166_s1 }
  0xfd   : > { %p6676_p13 = scmp.ne.s32.totalorder %s1432_s17, %s6675_s28  ;;  %p6683_p1 = scmp.lt.s32.totalorder %s1432_s17, %s1432_s17 }
  0xfe   : > { %p6684_p3 = scmp.lt.s32.totalorder %s6675_s28, %s6675_s28 }
  0xff   : > { %p6678_p0 = pnand %p6676_p13, %p7599_p7 }
 0x100   : > { %5942 = dma.hbm_to_vmem [thread:$0]  (!%p7591_p6), %s8442_s9, 1024, %s1403_s26, [#allocation36], %s8439_s6, %s8439_s6, %s8377_s16  }
 0x101   : > { %p6679_p2 = pneg %p6678_p0  ;;  %p6685_p4 = por %p6684_p3, %p6683_p1 }
 0x103   : > { %p6686_p5 = pnand %p6685_p4, %p6679_p2 }
 0x105   : > { %6689 = shalt.err (!%p6686_p5)
}
 0x106   : > { %s8443_s13 = sld [smem:[#allocation101_spill]]  ;;  %s6701_s26 = scalar_lea.vmem %s1167_s1, 16 }
 0x107   : > { %p6702_p8 = scmp.ne.s32.totalorder %s1167_s1, %s6701_s26  ;;  %s6708_s23 = scalar_lea.vmem %s1167_s1, 32 }
 0x108   : > { %p6709_p11 = scmp.lt.s32.totalorder %s1167_s1, %s1167_s1  ;;  %p6710_p12 = scmp.lt.s32.totalorder %s6708_s23, %s6701_s26 }
 0x109   : > { %p6704_p9 = pnand %p6702_p8, %p7599_p7 }
 0x10a   : > { %p6711_p13 = por %p6710_p12, %p6709_p11 }
 0x10b   : > { %p6705_p10 = pneg %p6704_p9 }
 0x10c   : > { %5948 = dma.hbm_to_vmem [thread:$0]  (!%p7591_p6), %s8443_s13, 1024, %s1432_s17, [#allocation39], %s8439_s6, %s8439_s6, %s8377_s16  }
 0x10d   : > { %p6712_p0 = pnand %p6711_p13, %p6705_p10 }
 0x10f   : > { %6715 = shalt.err (!%p6712_p0)
}
 0x110   : > { %s8444_s3 = sld [smem:[#allocation71_spill]]  ;;  %s7296_s24 = smov [#allocation13]  }
 0x111   : > { %s1190_s8 = sshll.u32 %s7296_s24, 4  ;;  %s7297_s17 = smov [#allocation16]   ;;  %s1191_s8 = int_to_ptr.vmem [resolvable:$true] %s1190_s8 }
 0x112   : > { %s1214_s28 = sshll.u32 %s7297_s17, 4  ;;  %s6727_s16 = scalar_lea.vmem %s1191_s8, 16  ;;  %s1215_s28 = int_to_ptr.vmem [resolvable:$true] %s1214_s28 }
 0x113   : > { %p6728_p2 = scmp.ne.s32.totalorder %s1191_s8, %s6727_s16  ;;  %s6734_s4 = scalar_lea.vmem %s1191_s8, 32 }
 0x114   : > { %p6735_p4 = scmp.lt.s32.totalorder %s1191_s8, %s1191_s8  ;;  %p6736_p5 = scmp.lt.s32.totalorder %s6734_s4, %s6727_s16 }
 0x115   : > { %p6730_p1 = pnand %p6728_p2, %p7599_p7 }
 0x116   : > { %5891 = dma.hbm_to_vmem [thread:$0]  (!%p7591_p6), %s8444_s3, 16, %s1167_s1, [#allocation9]  }
 0x117   : > { %p6731_p3 = pneg %p6730_p1  ;;  %p6737_p8 = por %p6736_p5, %p6735_p4 }
 0x119   : > { %p6738_p9 = pnand %p6737_p8, %p6731_p3 }
 0x11b   : > { %6741 = shalt.err (!%p6738_p9)
}
 0x11c   : > { %s8445_s14 = sld [smem:[#allocation73_spill]]  ;;  %s6753_s1 = scalar_lea.vmem %s1215_s28, 16 }
 0x11d   : > { %p6754_p10 = scmp.ne.s32.totalorder %s1215_s28, %s6753_s1  ;;  %s6760_s26 = scalar_lea.vmem %s1215_s28, 32 }
 0x11e   : > { %p6761_p13 = scmp.lt.s32.totalorder %s1215_s28, %s1215_s28  ;;  %p6762_p0 = scmp.lt.s32.totalorder %s6760_s26, %s6753_s1 }
 0x11f   : > { %p6756_p11 = pnand %p6754_p10, %p7599_p7 }
 0x120   : > { %p6763_p2 = por %p6762_p0, %p6761_p13 }
 0x121   : > { %p6757_p12 = pneg %p6756_p11 }
 0x122   : > { %5897 = dma.hbm_to_vmem [thread:$0]  (!%p7591_p6), %s8445_s14, 16, %s1191_s8, [#allocation12]  }
 0x123   : > { %p6764_p1 = pnand %p6763_p2, %p6757_p12 }
 0x125   : > { %6767 = shalt.err (!%p6764_p1)
}
 0x126   : > { %s8446_s4 = sld [smem:[#allocation75_spill]]  ;;  %s7298_s16 = smov [#allocation19]  }
 0x127   : > { %s1238_s23 = sshll.u32 %s7298_s16, 4  ;;  %s7299_s24 = smov [#allocation22]   ;;  %s1239_s23 = int_to_ptr.vmem [resolvable:$true] %s1238_s23 }
 0x128   : > { %s1262_s8 = sshll.u32 %s7299_s24, 4  ;;  %s6779_s17 = scalar_lea.vmem %s1239_s23, 16  ;;  %s1263_s8 = int_to_ptr.vmem [resolvable:$true] %s1262_s8 }
 0x129   : > { %p6780_p3 = scmp.ne.s32.totalorder %s1239_s23, %s6779_s17  ;;  %s6786_s3 = scalar_lea.vmem %s1239_s23, 32 }
 0x12a   : > { %p6787_p8 = scmp.lt.s32.totalorder %s1239_s23, %s1239_s23  ;;  %p6788_p9 = scmp.lt.s32.totalorder %s6786_s3, %s6779_s17 }
 0x12b   : > { %p6782_p4 = pnand %p6780_p3, %p7599_p7 }
 0x12c   : > { %5903 = dma.hbm_to_vmem [thread:$0]  (!%p7591_p6), %s8446_s4, 16, %s1215_s28, [#allocation15]  }
 0x12d   : > { %p6783_p5 = pneg %p6782_p4  ;;  %p6789_p10 = por %p6788_p9, %p6787_p8 }
 0x12f   : > { %p6790_p11 = pnand %p6789_p10, %p6783_p5 }
 0x131   : > { %6793 = shalt.err (!%p6790_p11)
}
 0x132   : > { %s8447_s1 = sld [smem:[#allocation77_spill]]  ;;  %s6805_s28 = scalar_lea.vmem %s1263_s8, 16 }
 0x133   : > { %p6806_p12 = scmp.ne.s32.totalorder %s1263_s8, %s6805_s28  ;;  %s6812_s26 = scalar_lea.vmem %s1263_s8, 32 }
 0x134   : > { %p6813_p2 = scmp.lt.s32.totalorder %s1263_s8, %s1263_s8  ;;  %p6814_p1 = scmp.lt.s32.totalorder %s6812_s26, %s6805_s28 }
 0x135   : > { %p6808_p13 = pnand %p6806_p12, %p7599_p7 }
 0x136   : > { %p6815_p3 = por %p6814_p1, %p6813_p2 }
 0x137   : > { %p6809_p0 = pneg %p6808_p13 }
 0x138   : > { %5909 = dma.hbm_to_vmem [thread:$0]  (!%p7591_p6), %s8447_s1, 16, %s1239_s23, [#allocation18]  }
 0x139   : > { %p6816_p4 = pnand %p6815_p3, %p6809_p0 }
 0x13b   : > { %6819 = shalt.err (!%p6816_p4)
}
 0x13c   : > { %s8448_s3 = sld [smem:[#allocation79_spill]]  ;;  %s7300_s4 = smov [#allocation25]  }
 0x13d   : > { %s1286_s16 = sshll.u32 %s7300_s4, 4  ;;  %s7301_s23 = smov [#allocation28]   ;;  %s1287_s16 = int_to_ptr.vmem [resolvable:$true] %s1286_s16 }
 0x13e   : > { %s1316_s24 = sshll.u32 %s7301_s23, 4  ;;  %s6831_s17 = scalar_lea.vmem %s1287_s16, 768  ;;  %s1317_s24 = int_to_ptr.vmem [resolvable:$true] %s1316_s24 }
 0x13f   : > { %p6832_p5 = scmp.ne.s32.totalorder %s1287_s16, %s6831_s17  ;;  %p6839_p10 = scmp.lt.s32.totalorder %s1287_s16, %s1287_s16 }
 0x140   : > { %p6840_p11 = scmp.lt.s32.totalorder %s6831_s17, %s6831_s17 }
 0x141   : > { %p6834_p8 = pnand %p6832_p5, %p7599_p7 }
 0x142   : > { %5915 = dma.hbm_to_vmem [thread:$0]  (!%p7591_p6), %s8448_s3, 16, %s1263_s8, [#allocation21]  }
 0x143   : > { %p6835_p9 = pneg %p6834_p8  ;;  %p6841_p12 = por %p6840_p11, %p6839_p10 }
 0x145   : > { %p6842_p13 = pnand %p6841_p12, %p6835_p9 }
 0x147   : > { %6845 = shalt.err (!%p6842_p13)
}
 0x148   : > { %s8449_s1 = smov 4   ;;  %s8450_s8 = sld [smem:[#allocation82_spill]] }
 0x149   : > { %s6857_s28 = scalar_lea.vmem %s1317_s24, 1024  ;;  %p6865_p3 = scmp.lt.s32.totalorder %s1317_s24, %s1317_s24 }
 0x14a   : > { %p6858_p0 = scmp.ne.s32.totalorder %s1317_s24, %s6857_s28  ;;  %p6866_p4 = scmp.lt.s32.totalorder %s6857_s28, %s6857_s28 }
 0x14c   : > { %p6860_p2 = pnand %p6858_p0, %p7599_p7  ;;  %p6867_p5 = por %p6866_p4, %p6865_p3 }
 0x14e   : > { %5921 = dma.hbm_to_vmem [thread:$0]  (!%p7591_p6), %s8450_s8, 768, %s1287_s16, [#allocation24], %s8439_s6, %s8439_s6, %s8449_s1  }
 0x14f   : > { %p6861_p1 = pneg %p6860_p2 }
 0x151   : > { %p6868_p8 = pnand %p6867_p5, %p6861_p1 }
 0x153   : > { %6871 = shalt.err (!%p6868_p8)
}
 0x154   : > { %s8451_s26 = sld [smem:[#allocation86_spill]]  ;;  %s7302_s3 = smov [#allocation31]  }
 0x155   : > { %s1348_s4 = sshll.u32 %s7302_s3, 4  ;;  %s7303_s16 = smov [#allocation34]   ;;  %s1349_s4 = int_to_ptr.vmem [resolvable:$true] %s1348_s4 }
 0x156   : > { %s1380_s23 = sshll.u32 %s7303_s16, 4  ;;  %s6883_s17 = scalar_lea.vmem %s1349_s4, 1024  ;;  %s1381_s23 = int_to_ptr.vmem [resolvable:$true] %s1380_s23 }
 0x157   : > { %p6884_p9 = scmp.ne.s32.totalorder %s1349_s4, %s6883_s17  ;;  %p6891_p12 = scmp.lt.s32.totalorder %s1349_s4, %s1349_s4 }
 0x158   : > { %p6892_p13 = scmp.lt.s32.totalorder %s6883_s17, %s6883_s17 }
 0x159   : > { %p6886_p10 = pnand %p6884_p9, %p7599_p7 }
 0x15a   : > { %5927 = dma.hbm_to_vmem [thread:$0]  (!%p7591_p6), %s8451_s26, 1024, %s1317_s24, [#allocation27], %s8439_s6, %s8439_s6, %s8449_s1  }
 0x15b   : > { %p6887_p11 = pneg %p6886_p10  ;;  %p6893_p0 = por %p6892_p13, %p6891_p12 }
 0x15d   : > { %p6894_p2 = pnand %p6893_p0, %p6887_p11 }
 0x15f   : > { %6897 = shalt.err (!%p6894_p2)
}
 0x160   : > { %s8452_s24 = sld [smem:[#allocation90_spill]]  ;;  %s6909_s8 = scalar_lea.vmem %s1381_s23, 1024 }
 0x161   : > { %p6910_p1 = scmp.ne.s32.totalorder %s1381_s23, %s6909_s8  ;;  %p6917_p5 = scmp.lt.s32.totalorder %s1381_s23, %s1381_s23 }
 0x162   : > { %p6918_p8 = scmp.lt.s32.totalorder %s6909_s8, %s6909_s8 }
 0x163   : > { %p6912_p3 = pnand %p6910_p1, %p7599_p7 }
 0x164   : > { %p6919_p9 = por %p6918_p8, %p6917_p5 }
 0x165   : > { %p6913_p4 = pneg %p6912_p3 }
 0x166   : > { %5933 = dma.hbm_to_vmem [thread:$0]  (!%p7591_p6), %s8452_s24, 1024, %s1349_s4, [#allocation30], %s8439_s6, %s8439_s6, %s8449_s1  }
 0x167   : > { %p6920_p10 = pnand %p6919_p9, %p6913_p4 }
 0x169   : > { %6923 = shalt.err (!%p6920_p10)
}
 0x16a   : > { %s8453_s28 = sld [smem:[#allocation94_spill]]  ;;  %s7304_s26 = smov [#allocation37]  }
 0x16b   : > { %s1415_s3 = sshll.u32 %s7304_s26, 4  ;;  %s7305_s4 = smov [#allocation40]   ;;  %s1416_s3 = int_to_ptr.vmem [resolvable:$true] %s1415_s3 }
 0x16c   : > { %s1447_s16 = sshll.u32 %s7305_s4, 4  ;;  %s6935_s17 = scalar_lea.vmem %s1416_s3, 1024  ;;  %s1448_s16 = int_to_ptr.vmem [resolvable:$true] %s1447_s16 }
 0x16d   : > { %p6936_p11 = scmp.ne.s32.totalorder %s1416_s3, %s6935_s17  ;;  %p6943_p0 = scmp.lt.s32.totalorder %s1416_s3, %s1416_s3 }
 0x16e   : > { %p6944_p2 = scmp.lt.s32.totalorder %s6935_s17, %s6935_s17 }
 0x16f   : > { %p6938_p12 = pnand %p6936_p11, %p7599_p7 }
 0x170   : > { %5939 = dma.hbm_to_vmem [thread:$0]  (!%p7591_p6), %s8453_s28, 1024, %s1381_s23, [#allocation33], %s8439_s6, %s8439_s6, %s8449_s1  }
 0x171   : > { %p6939_p13 = pneg %p6938_p12  ;;  %p6945_p1 = por %p6944_p2, %p6943_p0 }
 0x173   : > { %p6946_p3 = pnand %p6945_p1, %p6939_p13 }
 0x175   : > { %6949 = shalt.err (!%p6946_p3)
}
 0x176   : > { %s8454_s23 = sld [smem:[#allocation99_spill]]  ;;  %s6961_s24 = scalar_lea.vmem %s1448_s16, 1024 }
 0x177   : > { %p6962_p4 = scmp.ne.s32.totalorder %s1448_s16, %s6961_s24  ;;  %p6969_p9 = scmp.lt.s32.totalorder %s1448_s16, %s1448_s16 }
 0x178   : > { %p6970_p10 = scmp.lt.s32.totalorder %s6961_s24, %s6961_s24 }
 0x179   : > { %p6964_p5 = pnand %p6962_p4, %p7599_p7 }
 0x17a   : > { %p6971_p11 = por %p6970_p10, %p6969_p9 }
 0x17b   : > { %p6965_p8 = pneg %p6964_p5 }
 0x17c   : > { %5945 = dma.hbm_to_vmem [thread:$0]  (!%p7591_p6), %s8454_s23, 1024, %s1416_s3, [#allocation36], %s8439_s6, %s8439_s6, %s8449_s1  }
 0x17d   : > { %p6972_p12 = pnand %p6971_p11, %p6965_p8 }
 0x17f   : > { %6975 = shalt.err (!%p6972_p12)
}
 0x180   : > { %s8455_s8 = sld [smem:[#allocation103_spill]]  ;;  %s7306_s28 = smov [#allocation41]  }
 0x181   : > { %s1463_s26 = sshll.u32 %s7306_s28, 4  ;;  %s1464_s26 = int_to_ptr.vmem [resolvable:$true] %s1463_s26 }
 0x182   : > { %s6987_s3 = scalar_lea.vmem %s1464_s26, 1024  ;;  %p6995_p1 = scmp.lt.s32.totalorder %s1464_s26, %s1464_s26 }
 0x183   : > { %p6988_p13 = scmp.ne.s32.totalorder %s1464_s26, %s6987_s3  ;;  %p6996_p3 = scmp.lt.s32.totalorder %s6987_s3, %s6987_s3 }
 0x185   : > { %p6990_p0 = pnand %p6988_p13, %p7599_p7  ;;  %p6997_p4 = por %p6996_p3, %p6995_p1 }
 0x186   : > { %5951 = dma.hbm_to_vmem [thread:$0]  (!%p7591_p6), %s8455_s8, 1024, %s1448_s16, [#allocation39], %s8439_s6, %s8439_s6, %s8449_s1  }
 0x187   : > { %p6991_p2 = pneg %p6990_p0 }
 0x189   : > { %p6998_p5 = pnand %p6997_p4, %p6991_p2 }
 0x18b   : > { %7001 = shalt.err (!%p6998_p5)
}
 0x18c   : > { %s8456_s4 = sld [smem:[#allocation105_spill]]  ;;  %s8379_s2 = sadd.s32 4294967294, %s7234_s11  }
 0x18d   : > { %s7775_s15 = sadd.s32 1, %s7234_s11   ;;  %s133_s17 = sadd.s32 1, %s7230_s10 }
 0x18e   : > { %s130_s16 = ssub.s32 %s7234_s11, %s7775_s15  ;;  %s8457_s23 = sld [smem:[#allocation64_spill]] }
 0x18f   : > { %p131_p7 = scmp.eq.s32.totalorder %s130_s16, 0  ;;  %p140_p8 = scmp.ne.s32.totalorder %s7230_s10, %s7226_s7 }
 0x190   : > { %p141_p9 = scmp.eq.s32.totalorder %s7234_s11, 0  ;;  %p146_p10 = scmp.ne.s32.totalorder %s7226_s7, %s7222_s0 }
 0x191   : > { %s7786_s24 = scalar_select %p131_p7, %s7230_s10, %s133_s17  }
 0x192   : > { %5954 = dma.hbm_to_vmem [thread:$0]  (!%p7591_p6), %s8456_s4, 1024, %s1464_s26, [#allocation42], %s8439_s6, %s8439_s6, %s8449_s1  }
 0x193   : > { %p7788_p11 = por %p141_p9, %p140_p8  ;;  %p8459_p6 = scmp.eq.s32.totalorder %s7577_s18, 0 }
 0x194   : > { %p1057_p13 = scmp.eq.s32.totalorder %s7577_s18, 1  ;;  %p1063_p0 = scmp.eq.s32.totalorder %s8379_s2, 1 }
 0x195   : > { %p7794_p12 = por %p8459_p6, %p146_p10  ;;  %p5996_p2 = scmp.lt.s32.totalorder %s7234_s11, 2 }
 0x196   : > { %s7803_s26 = sand.u32 1, %s7230_s10   ;;  %p7805_p1 = por %p1057_p13, %p140_p8 }
 0x197   : > { %p7809_p3 = por %p1063_p0, %p146_p10  ;;  %s4939_s16 = sshll.u32 %s7803_s26, 4 }
 0x198   : > { %s8461_s3 = scalar_select %p7805_p1, 1, 0 }
 0x199   : > { %s8462_s4 = scalar_select %p7809_p3, 1, 0 }
 0x19a   : > { %s5221_s17 = sshll.u32 %s7234_s11, 8  ;;  %s1484_s2 = scalar_lea.vmem [#allocation2], %s4939_s16 }
 0x19b   : > { %s7816_s9 = scalar_lea.hbm %s8457_s23, %s5221_s17  ;;  %s1492_s12 = sshll.u32 %s1484_s2, 4  ;;  %s7818_s12 = int_to_ptr.vmem [resolvable:$true] %s1492_s12 }
 0x19c   : > { %p7822_p4 = pnand %p5996_p2, %p7788_p11  ;;  %s1481_s19 = scalar_lea.sflag [#allocation3], %s7803_s26 }
 0x19d   : > { %s7002_s21 = scalar_lea.hbm %s7816_s9, 256  ;;  %s7007_s2 = scalar_lea.hbm %s8457_s23, 512 }
 0x19e   : > { %p7003_p5 = scmp.ne.s32.totalorder %s7816_s9, %s7002_s21  ;;  %p7004_p7 = pneg %p7822_p4 }
 0x19f   : > { %p7008_p10 = scmp.lt.s32.totalorder %s7816_s9, %s8457_s23  ;;  %p7009_p6 = scmp.lt.s32.totalorder %s7007_s2, %s7002_s21 }
 0x1a0   : > { %p7005_p8 = pnand %p7004_p7, %p7003_p5 }
 0x1a1   : > { %p7010_p13 = por %p7009_p6, %p7008_p10 }
 0x1a2   : > { %p7006_p9 = pneg %p7005_p8 }
 0x1a4   : > { %p7011_p11 = pnand %p7010_p13, %p7006_p9 }
 0x1a6   : > { %7014 = shalt.err (!%p7011_p11)
}
 0x1a7   : > { %s7015_s8 = scalar_lea.vmem %s7818_s12, 256  ;;  %s7307_s16 = smov [#allocation2]  }
 0x1a8   : > { %p7016_p0 = scmp.ne.s32.totalorder %s7818_s12, %s7015_s8  ;;  %s7020_s17 = sshll.u32 %s7307_s16, 4  ;;  %s7021_s17 = int_to_ptr.vmem [resolvable:$false] %s7020_s17 }
 0x1a9   : > { %s7022_s14 = scalar_lea.vmem %s7021_s17, 512  ;;  %p7023_p5 = scmp.lt.s32.totalorder %s7818_s12, %s7021_s17 }
 0x1aa   : > { %p7018_p2 = pnand %p7016_p0, %p7004_p7  ;;  %p7024_p8 = scmp.lt.s32.totalorder %s7022_s14, %s7015_s8 }
 0x1ac   : > { %p7019_p3 = pneg %p7018_p2  ;;  %p7025_p1 = por %p7024_p8, %p7023_p5 }
 0x1ae   : > { %p7026_p10 = pnand %p7025_p1, %p7019_p3 }
 0x1b0   : > { %7029 = shalt.err (!%p7026_p10)
}
 0x1b1   : > { %s7308_s21 = smov 128   ;;  %s8464_s2 = sld [smem:[#allocation65_spill]] }
 0x1b2   : > { %s7309_s16 = smov 8   ;;  %s4943_s14 = sshll.u32 %s7803_s26, 3 }
 0x1b3   : > { %5958 = dma.hbm_to_vmem [thread:$0]  (!%p7822_p4), %s7816_s9, 256, %s7818_s12, %s1481_s19, %s7308_s21, %s7308_s21, %s7309_s16  }
 0x1b4   : > { %s5222_s8 = sshll.u32 %s7234_s11, 7  ;;  %s1506_s23 = scalar_lea.vmem [#allocation5], %s4943_s14 }
 0x1b5   : > { %s1513_s25 = sshll.u32 %s1506_s23, 4  ;;  %s8465_s27 = sand.u32 1, %s7234_s11   ;;  %s7855_s25 = int_to_ptr.vmem [resolvable:$true] %s1513_s25 }
 0x1b6   : > { %s1503_s29 = scalar_lea.sflag [#allocation6], %s8465_s27 }
 0x1b7   : > { %s7853_s17 = scalar_lea.hbm %s8464_s2, %s5222_s8  ;;  %s7035_s9 = scalar_lea.hbm %s8464_s2, 256 }
 0x1b8   : > { %s7030_s30 = scalar_lea.hbm %s7853_s17, 128  ;;  %p7036_p6 = scmp.lt.s32.totalorder %s7853_s17, %s8464_s2 }
 0x1b9   : > { %p7031_p1 = scmp.ne.s32.totalorder %s7853_s17, %s7030_s30  ;;  %p7037_p13 = scmp.lt.s32.totalorder %s7035_s9, %s7030_s30 }
 0x1bb   : > { %p7033_p3 = pnand %p7031_p1, %p7004_p7  ;;  %p7038_p11 = por %p7037_p13, %p7036_p6 }
 0x1bd   : > { %p7034_p9 = pneg %p7033_p3 }
 0x1bf   : > { %p7039_p0 = pnand %p7038_p11, %p7034_p9 }
 0x1c1   : > { %7042 = shalt.err (!%p7039_p0)
}
 0x1c2   : > { %s7043_s19 = scalar_lea.vmem %s7855_s25, 128  ;;  %s7310_s12 = smov [#allocation5]  }
 0x1c3   : > { %p7044_p2 = scmp.ne.s32.totalorder %s7855_s25, %s7043_s19  ;;  %s7048_s27 = sshll.u32 %s7310_s12, 4  ;;  %s7049_s27 = int_to_ptr.vmem [resolvable:$false] %s7048_s27 }
 0x1c4   : > { %s7050_s23 = scalar_lea.vmem %s7049_s27, 256  ;;  %p7051_p10 = scmp.lt.s32.totalorder %s7855_s25, %s7049_s27 }
 0x1c5   : > { %p7046_p5 = pnand %p7044_p2, %p7004_p7  ;;  %p7052_p1 = scmp.lt.s32.totalorder %s7050_s23, %s7043_s19 }
 0x1c7   : > { %p7047_p8 = pneg %p7046_p5  ;;  %p7053_p3 = por %p7052_p1, %p7051_p10 }
 0x1c9   : > { %p7054_p6 = pnand %p7053_p3, %p7047_p8 }
 0x1cb   : > { %7057 = shalt.err (!%p7054_p6)
}
 0x1cc   : > { %5961 = dma.hbm_to_vmem [thread:$0]  (!%p7822_p4), %s7853_s17, 128, %s7855_s25, %s1503_s29, %s8439_s6, %s8439_s6, %s8449_s1  }
 0x1cd   : > { %p8466_p7 = scmp.ne.s32.totalorder %s8428_s22, 0 }
 0x1ce   : > { %s7883_s30 = sand.u32 (!%p8466_p7), 1, %s7226_s7  }
 0x1cf   : > { %1525 = sbr.rel (%p8466_p7) target bundleno = 4356 (0x1104), region = 192  ;;  %s7886_s26 = sshll.u32 (!%p8466_p7), %s7883_s30, 4 }
 0x1d0   : > { %s1528_s21 = scalar_lea.sflag (!%p8466_p7), [#allocation3], %s7883_s30  ;;  %s1531_s13 = scalar_lea.vmem (!%p8466_p7), [#allocation2], %s7886_s26 }
 0x1d4   : > { %7153 = dma.done.wait (%p7794_p12), %s1528_s21, 256  }
 0x1d5   : > { %7155 = vsyncadd (%p7794_p12), %s1528_s21, 4294967040  ;;  %s1536_s25 = sand.u32 1, %s7577_s18   ;;  %s4948_s29 = sshll.u32 %s7883_s30, 3 }
 0x1d6   : > { %s1537_s22 = scalar_lea.sflag [#allocation6], %s1536_s25  ;;  %s7900_s6 = scalar_lea.vmem [#allocation5], %s4948_s29 }
 0x1d7   : > { %7157 = dma.done.wait (%p7794_p12), %s1537_s22, 128  }
 0x1d8   : > { %7159 = vsyncadd (%p7794_p12), %s1537_s22, 4294967168  ;;  %p8467_p4 = scmp.eq.s32.totalorder %s7577_s18, 0 }
 0x1da   : > { %7161 = dma.done.wait (%p8467_p4), [#allocation6], 16   ;;  %p8468_p9 = pmov %p8467_p4 }
 0x1db   : > { %p8469_p13 = pmov %p8467_p4 }
 0x1dc   : > { %7163 = vsyncadd (%p8468_p9), [#allocation6], 4294967280 }
 0x1dd   : > { %7165 = dma.done.wait (%p8469_p13), [#allocation9], 32   ;;  %p8470_p11 = pmov %p8467_p4 }
 0x1de   : > { %p8471_p0 = pmov %p8467_p4 }
 0x1df   : > { %7167 = vsyncadd (%p8470_p11), [#allocation9], 4294967264 }
 0x1e0   : > { %7169 = dma.done.wait (%p8471_p0), [#allocation12], 1040   ;;  %p8472_p2 = pmov %p8471_p0 }
 0x1e1   : > { %p8473_p12 = pmov %p8471_p0 }
 0x1e2   : > { %7171 = vsyncadd (%p8472_p2), [#allocation12], 4294966256 }
 0x1e3   : > { %7173 = dma.done.wait (%p8473_p12), [#allocation15], 1040   ;;  %p8474_p5 = pmov %p8471_p0 }
 0x1e4   : > { %p8475_p8 = pmov %p8471_p0 }
 0x1e5   : > { %7175 = vsyncadd (%p8474_p5), [#allocation15], 4294966256 }
 0x1e6   : > { %7177 = dma.done.wait (%p8475_p8), [#allocation18], 1040   ;;  %p8476_p10 = pmov %p8471_p0 }
 0x1e7   : > { %p8477_p1 = pmov %p8471_p0 }
 0x1e8   : > { %7179 = vsyncadd (%p8476_p10), [#allocation18], 4294966256 }
 0x1e9   : > { %7181 = dma.done.wait (%p8477_p1), [#allocation21], 1040   ;;  %p8478_p3 = pmov %p8471_p0 }
 0x1ea   : > { %p8479_p6 = pmov %p8471_p0 }
 0x1eb   : > { %7183 = vsyncadd (%p8478_p3), [#allocation21], 4294966256 }
 0x1ec   : > { %7185 = dma.done.wait (%p8479_p6), [#allocation24], 800   ;;  %p8480_p7 = pmov %p8471_p0 }
 0x1ed   : > { %p8481_p4 = pmov %p8471_p0 }
 0x1ee   : > { %7187 = vsyncadd (%p8480_p7), [#allocation24], 4294966496 }
 0x1ef   : > { %7189 = dma.done.wait (%p8481_p4), [#allocation27], 1040   ;;  %p8482_p9 = pmov %p8471_p0 }
 0x1f0   : > { %p8483_p13 = pmov %p8471_p0 }
 0x1f1   : > { %7191 = vsyncadd (%p8482_p9), [#allocation27], 4294966256 }
 0x1f2   : > { %7193 = dma.done.wait (%p8483_p13), [#allocation30], 2048   ;;  %p8484_p11 = pmov %p8471_p0 }
 0x1f4   : > { %7195 = vsyncadd (%p8484_p11), [#allocation30], 4294965248 }
 0x1f5   : > { %7197 = dma.done.wait (%p8471_p0), [#allocation33], 2048   ;;  %p8485_p2 = pmov %p8471_p0 }
 0x1f6   : > { %p8486_p12 = pmov %p8471_p0 }
 0x1f7   : > { %7199 = vsyncadd (%p8485_p2), [#allocation33], 4294965248 }
 0x1f8   : > { %7201 = dma.done.wait (%p8486_p12), [#allocation36], 2048   ;;  %p8487_p5 = pmov %p8471_p0 }
 0x1f9   : > { %p8488_p8 = pmov %p8471_p0 }
 0x1fa   : > { %7203 = vsyncadd (%p8487_p5), [#allocation36], 4294965248 }
 0x1fb   : > { %7205 = dma.done.wait (%p8488_p8), [#allocation39], 2048   ;;  %p8489_p10 = pmov %p8471_p0 }
 0x1fc   : > { %p8490_p1 = pmov %p8471_p0 }
 0x1fd   : > { %7207 = vsyncadd (%p8489_p10), [#allocation39], 4294965248 }
 0x1fe   : > { %7209 = dma.done.wait (%p8490_p1), [#allocation42], 1024   ;;  %p8491_p3 = pmov %p8471_p0 }
 0x1ff   : > { %s8492_s1 = sld [smem:[#allocation66_spill]]  ;;  %v7311_v0 = vmov 0   ;;  %vm1862_vm0 = vcmask 261120   ;;  %v6146_v5 = vld [vmem:[%s1531_s13 + $0x4] ss:$8 sps:$4 sm:$0xff]   ;;  %v7312_v14 = vmov 0.0  }
 0x200   : > { %7211 = vsyncadd (%p8491_p3), [#allocation42], 4294966272  ;;  %1866 = vmatprep.subr.bf16.mxu0 %v7311_v0  ;;  %4989 = vmatprep.mubr.msk.bf16.mxu0 %vm1862_vm0, %v6146_v5  ;;  %s8493_s28 = sld [smem:[#allocation68_spill]]  ;;  %v6144_v12 = vld [vmem:[%s1531_s13] ss:$8 sps:$4 sm:$0xff]   ;;  %vm7313_vm1 = vmmov 0  }
 0x201   : > { %5400 = vmatprep.subr.bf16.mxu1 %v7312_v14  ;;  %5416 = vmatprep.mubr.msk.bf16.mxu1 %vm7313_vm1, %v7312_v14  ;;  %v4976_v22 = vld [vmem:[#allocation7] ss:$0 sm:$0xff]  ;;  %s8494_s16 = sld [smem:[#allocation70_spill]]  ;;  %v4992_v50 = vld [vmem:[#allocation8] ss:$0 sm:$0xff]  ;;  %vm2914_vm14 = vcmask 785408  }
 0x202   : > { %s8495_s14 = sld [smem:[#allocation80_spill]]  ;;  %s8120_s9 = scalar_lea.vmem [#allocation43], %s7886_s26 }
 0x203   : > { %s8496_s8 = sld [smem:[#allocation84_spill]]  ;;  %p8508_p7 = scmp.ne.s32.totalorder %s8461_s3, 0 }
 0x204   : > { %s8497_s17 = sld [smem:[#allocation85_spill]] }
 0x205   : > { %v6134_v1 = vld [vmem:[%s8492_s1 + $0x38] sm:$0xff]   ;;  %v6135_v2 = vld [vmem:[%s8492_s1 + $0x30] sm:$0xff]   ;;  %v6136_v3 = vld [vmem:[%s8492_s1 + $0x28] sm:$0xff]   ;;  %s8498_s19 = sld [smem:[#allocation87_spill]] }
 0x206   : > { %1867 = vmatpush1.bf16.msra.mxu0 %v6134_v1  ;;  %v6137_v4 = vld [vmem:[%s8492_s1 + $0x20] sm:$0xff]   ;;  %v6138_v6 = vld [vmem:[%s8492_s1 + $0x18] sm:$0xff]   ;;  %v6139_v7 = vld [vmem:[%s8492_s1 + $0x10] sm:$0xff]   ;;  %s8499_s12 = sld [smem:[#allocation89_spill]] }
 0x207   : > { %1868 = vmatprep.subr.bf16.mxu0 %v7311_v0  ;;  %v6140_v8 = vld [vmem:[%s8492_s1 + $0x8] sm:$0xff]   ;;  %v6141_v9 = vld [vmem:[%s8492_s1] sm:$0xff]   ;;  %v6147_v13 = vld [vmem:[%s8493_s28 + $0x38] sm:$0xff]   ;;  %s8500_s27 = sld [smem:[#allocation91_spill]] }
 0x208   : > { %v6142_v10 = vld [vmem:[%s8492_s1 + $0x48] sm:$0xff]   ;;  %v6143_v11 = vld [vmem:[%s8492_s1 + $0x40] sm:$0xff]   ;;  %5401 = vmatpush3.bf16.msra.mxu1 %v6147_v13  ;;  %v6148_v15 = vld [vmem:[%s8493_s28 + $0x30] sm:$0xff]   ;;  %s8501_s23 = sld [smem:[#allocation93_spill]] }
 0x209   : > { %5402 = vmatprep.subr.bf16.mxu1 %v7312_v14  ;;  %v6149_v16 = vld [vmem:[%s8493_s28 + $0x28] sm:$0xff]   ;;  %v6150_v17 = vld [vmem:[%s8493_s28 + $0x20] sm:$0xff]   ;;  %v6151_v18 = vld [vmem:[%s8493_s28 + $0x18] sm:$0xff]   ;;  %s8502_s21 = sld [smem:[#allocation96_spill]] }
 0x20a   : > { %1869 = vmatpush1.bf16.msra.mxu0 %v6135_v2  ;;  %v6152_v19 = vld [vmem:[%s8493_s28 + $0x10] sm:$0xff]   ;;  %v6153_v20 = vld [vmem:[%s8493_s28 + $0x8] sm:$0xff]   ;;  %v6154_v21 = vld [vmem:[%s8493_s28] sm:$0xff]   ;;  %s8503_s13 = sld [smem:[#allocation95_spill]] }
 0x20b   : > { %1870 = vmatprep.subr.bf16.mxu0 %v7311_v0  ;;  %v6155_v42 = vld [vmem:[%s8494_s16 + $0x38] sm:$0xff]   ;;  %v6156_v43 = vld [vmem:[%s8494_s16 + $0x30] sm:$0xff]   ;;  %v6157_v44 = vld [vmem:[%s8494_s16 + $0x28] sm:$0xff]   ;;  %s8504_s22 = sld [smem:[#allocation97_spill]] }
 0x20c   : > { %5403 = vmatpush3.bf16.msra.mxu1 %v6148_v15  ;;  %v6158_v45 = vld [vmem:[%s8494_s16 + $0x20] sm:$0xff]   ;;  %v6159_v46 = vld [vmem:[%s8494_s16 + $0x18] sm:$0xff]   ;;  %v6160_v47 = vld [vmem:[%s8494_s16 + $0x10] sm:$0xff]  }
 0x20d   : > { %5404 = vmatprep.subr.bf16.mxu1 %v7312_v14  ;;  %v6161_v48 = vld [vmem:[%s8494_s16 + $0x8] sm:$0xff]   ;;  %v6162_v49 = vld [vmem:[%s8494_s16] sm:$0xff]   ;;  %v6170_v15 = vld [vmem:[#allocation11] sm:$0xff]  }
 0x20e   : > { %1871 = vmatpush1.bf16.msra.mxu0 %v6136_v3  ;;  %v6169_v13 = vld [vmem:[#allocation11 + $0x8] sm:$0xff]  }
 0x20f   : > { %1872 = vmatprep.subr.bf16.mxu0 %v7311_v0 }
 0x210   : > { %5405 = vmatpush3.bf16.msra.mxu1 %v6149_v16  ;;  %v5003_v16 = vld [vmem:[#allocation10] ss:$0 sm:$0xff] }
 0x211   : > { %5406 = vmatprep.subr.bf16.mxu1 %v7312_v14 }
 0x212   : > { %1873 = vmatpush1.bf16.msra.mxu0 %v6137_v4 }
 0x213   : > { %1874 = vmatprep.subr.bf16.mxu0 %v7311_v0 }
 0x214   : > { %5407 = vmatpush3.bf16.msra.mxu1 %v6150_v17 }
 0x215   : > { %5408 = vmatprep.subr.bf16.mxu1 %v7312_v14 }
 0x216   : > { %1875 = vmatpush1.bf16.msra.mxu0 %v6138_v6 }
 0x217   : > { %1876 = vmatprep.subr.bf16.mxu0 %v7311_v0 }
 0x218   : > { %5409 = vmatpush3.bf16.msra.mxu1 %v6151_v18 }
 0x219   : > { %5410 = vmatprep.subr.bf16.mxu1 %v7312_v14 }
 0x21a   : > { %1877 = vmatpush1.bf16.msra.mxu0 %v6139_v7  ;;  %v6163_v7 = vld [vmem:[#allocation11 + $0x38] sm:$0xff]  }
 0x21b   : > { %1878 = vmatprep.subr.bf16.mxu0 %v7311_v0 }
 0x21c   : > { %5411 = vmatpush3.bf16.msra.mxu1 %v6152_v19 }
 0x21d   : > { %5412 = vmatprep.subr.bf16.mxu1 %v7312_v14 }
 0x21e   : > { %1879 = vmatpush1.bf16.msra.mxu0 %v6140_v8  ;;  %v6164_v8 = vld [vmem:[#allocation11 + $0x30] sm:$0xff]  }
 0x21f   : > { %1880 = vmatprep.subr.bf16.mxu0 %v7311_v0 }
 0x220   : > { %5413 = vmatpush3.bf16.msra.mxu1 %v6153_v20 }
 0x221   : > { %5414 = vmatprep.subr.bf16.mxu1 %v7312_v14 }
 0x222   : > { %1881 = vmatpush1.bf16.msra.mxu0 %v6141_v9  ;;  %v6165_v9 = vld [vmem:[#allocation11 + $0x28] sm:$0xff]  }
 0x223   : > { %1894 = vmatprep.subr.bf16.mxu0 %v7311_v0 }
 0x224   : > { %5415 = vmatpush3.bf16.msra.mxu1 %v6154_v21 }
 0x225   : > { %5420 = vmatprep.subr.bf16.mxu1 %v7312_v14 }
 0x226   : > { %1895 = vmatpush2.bf16.msra.mxu0 %v6142_v10  ;;  %v6166_v10 = vld [vmem:[#allocation11 + $0x20] sm:$0xff]  }
 0x227   : > { %1896 = vmatprep.subr.bf16.mxu0 %v7311_v0 }
 0x22a   : > { %1897 = vmatpush2.bf16.msra.mxu0 %v6143_v11  ;;  %v6167_v11 = vld [vmem:[#allocation11 + $0x18] sm:$0xff]  }
 0x22b   : > { %5440 = vmatprep.subr.bf16.mxu0 %v7312_v14 }
 0x22d   : > { %1899 = vmatmul.mubr.bf16.vlgmr.msra.gmra.mxu0 %v6144_v12  ;;  %v6168_v12 = vld [vmem:[#allocation11 + $0x10] sm:$0xff]  }
 0x22e   : > { %5456 = vmatprep.mubr.msk.bf16.mxu0 %vm7313_vm1, %v7312_v14  ;;  %5441 = vmatpush3.bf16.msra.mxu0 %v6163_v7  ;;  %v6185_v7 = vld [vmem:[#allocation17 + $0x8] sm:$0xff]  }
 0x22f   : > { %5442 = vmatprep.subr.bf16.mxu0 %v7312_v14 }
 0x232   : > { %5443 = vmatpush3.bf16.msra.mxu0 %v6164_v8  ;;  %v6186_v8 = vld [vmem:[#allocation17] sm:$0xff]  }
 0x233   : > { %5444 = vmatprep.subr.bf16.mxu0 %v7312_v14 }
 0x236   : > { %5445 = vmatpush3.bf16.msra.mxu0 %v6165_v9  ;;  %v5025_v9 = vld [vmem:[#allocation16] ss:$0 sm:$0xff] }
 0x237   : > { %5446 = vmatprep.subr.bf16.mxu0 %v7312_v14 }
 0x23a   : > { %5447 = vmatpush3.bf16.msra.mxu0 %v6166_v10 }
 0x23b   : > { %5448 = vmatprep.subr.bf16.mxu0 %v7312_v14 }
 0x23e   : > { %5449 = vmatpush3.bf16.msra.mxu0 %v6167_v11 }
 0x23f   : > { %5450 = vmatprep.subr.bf16.mxu0 %v7312_v14 }
 0x242   : > { %5451 = vmatpush3.bf16.msra.mxu0 %v6168_v12 }
 0x243   : > { %5452 = vmatprep.subr.bf16.mxu0 %v7312_v14 }
 0x246   : > { %5453 = vmatpush3.bf16.msra.mxu0 %v6169_v13 }
 0x247   : > { %5454 = vmatprep.subr.bf16.mxu0 %v7312_v14 }
 0x24a   : > { %5455 = vmatpush3.bf16.msra.mxu0 %v6170_v15 }
 0x24b   : > { %5480 = vmatprep.subr.bf16.mxu0 %v7312_v14 }
 0x2ed   : > { %v1900_v23 = vpop.f32.mrf.mxu0 }
 0x2ee   : > { %v1901_v24 = vadd.f32 %v4976_v22, %v1900_v23 }
 0x2ef   : > { %v1902_v25 = vpop.f32.mrf.mxu0 }
 0x2f0   : > { %v1909_v26 = vmul.f32 1.442695, %v1901_v24  ;;  %vm1907_vm2 = vcmp.gt.f32.partialorder %v1901_v24, 0.0 }
 0x2f1   : > { %v1903_v27 = vpop.f32.mrf.mxu0 }
 0x2f2   : > { %6322 = vpow2.f32 %v1909_v26  ;;  %v1904_v28 = vadd.f32 %v4976_v22, %v1903_v27 }
 0x2f3   : > { %v1905_v29 = vpop.f32.mrf.mxu0 }
 0x2f4   : > { %v1911_v30 = vmul.f32 1.442695, %v1904_v28  ;;  %vm1908_vm3 = vcmp.gt.f32.partialorder %v1904_v28, 0.0 }
 0x2f6   : > { %6324 = vpow2.f32 %v1911_v30 }
 0x2ff   : > { %v6323_v31 = vpop.eup %6322 }
 0x300   : > { %v4990_v32 = vadd.f32 -1.0, %v6323_v31 }
 0x302   : > { %v1915_v33 = vmul.f32 1.6732632, %v4990_v32 }
 0x303   : > { %v6325_v34 = vpop.eup %6324 }
 0x304   : > { %v4991_v35 = vadd.f32 -1.0, %v6325_v34  ;;  %v1917_v36 = vsel %vm1907_vm2, %v1901_v24, %v1915_v33 }
 0x305   : > { %v1919_v39 = vmul.f32 1.050701, %v1917_v36  ;;  %v6171_v36 = vld [vmem:[#allocation14 + $0x38] sm:$0xff]  }
 0x306   : > { %v1916_v37 = vmul.f32 1.6732632, %v4991_v35 }
 0x308   : > { %v1918_v38 = vsel %vm1908_vm3, %v1904_v28, %v1916_v37  ;;  %v6172_v37 = vld [vmem:[#allocation14 + $0x30] sm:$0xff]  }
 0x309   : > { %v1920_v40 = vmul.f32 1.050701, %v1918_v38  ;;  %v6173_v38 = vld [vmem:[#allocation14 + $0x28] sm:$0xff]  }
 0x30b   : > { %v1921_v41 = vpack.c.bf16 %v1920_v40, %v1919_v39  ;;  %v6174_v39 = vld [vmem:[#allocation14 + $0x20] sm:$0xff]   ;;  %v6175_v40 = vld [vmem:[#allocation14 + $0x18] sm:$0xff]  }
 0x30d   : > { %5417 = vmatmul.mubr.bf16.vlgmr.msra.gmra.mxu1 %v1921_v41  ;;  %v6176_v41 = vld [vmem:[#allocation14 + $0x10] sm:$0xff]  }
 0x30e   : > { %5436 = vmatprep.mubr.msk.bf16.mxu1 %vm7313_vm1, %v7312_v14  ;;  %5421 = vmatpush3.bf16.msra.mxu1 %v6155_v42  ;;  %v6177_v42 = vld [vmem:[#allocation14 + $0x8] sm:$0xff]  }
 0x30f   : > { %5422 = vmatprep.subr.bf16.mxu1 %v7312_v14 }
 0x312   : > { %5423 = vmatpush3.bf16.msra.mxu1 %v6156_v43  ;;  %v6178_v43 = vld [vmem:[#allocation14] sm:$0xff]  }
 0x313   : > { %5424 = vmatprep.subr.bf16.mxu1 %v7312_v14 }
 0x316   : > { %5425 = vmatpush3.bf16.msra.mxu1 %v6157_v44  ;;  %v5014_v44 = vld [vmem:[#allocation13] ss:$0 sm:$0xff] }
 0x317   : > { %5426 = vmatprep.subr.bf16.mxu1 %v7312_v14 }
 0x31a   : > { %5427 = vmatpush3.bf16.msra.mxu1 %v6158_v45 }
 0x31b   : > { %5428 = vmatprep.subr.bf16.mxu1 %v7312_v14 }
 0x31e   : > { %5429 = vmatpush3.bf16.msra.mxu1 %v6159_v46 }
 0x31f   : > { %5430 = vmatprep.subr.bf16.mxu1 %v7312_v14 }
 0x322   : > { %5431 = vmatpush3.bf16.msra.mxu1 %v6160_v47 }
 0x323   : > { %5432 = vmatprep.subr.bf16.mxu1 %v7312_v14 }
 0x326   : > { %5433 = vmatpush3.bf16.msra.mxu1 %v6161_v48 }
 0x327   : > { %5434 = vmatprep.subr.bf16.mxu1 %v7312_v14 }
 0x32a   : > { %5435 = vmatpush3.bf16.msra.mxu1 %v6162_v49 }
 0x32b   : > { %5460 = vmatprep.subr.bf16.mxu1 %v7312_v14 }
 0x3cd   : > { %v2027_v51 = vpop.f32.mrf.mxu1 }
 0x3ce   : > { %v2028_v52 = vadd.f32 %v4992_v50, %v2027_v51 }
 0x3cf   : > { %v5418_v53 = vpop.f32.mrf.mxu1 }
 0x3d0   : > { %v2036_v54 = vmul.f32 1.442695, %v2028_v52  ;;  %vm2034_vm4 = vcmp.gt.f32.partialorder %v2028_v52, 0.0 }
 0x3d1   : > { %v2030_v55 = vpop.f32.mrf.mxu1 }
 0x3d2   : > { %6326 = vpow2.f32 %v2036_v54  ;;  %v2031_v56 = vadd.f32 %v4992_v50, %v2030_v55 }
 0x3d3   : > { %v5419_v57 = vpop.f32.mrf.mxu1 }
 0x3d4   : > { %v2038_v58 = vmul.f32 1.442695, %v2031_v56  ;;  %vm2035_vm5 = vcmp.gt.f32.partialorder %v2031_v56, 0.0 }
 0x3d6   : > { %6328 = vpow2.f32 %v2038_v58 }
 0x3df   : > { %v6327_v59 = vpop.eup %6326 }
 0x3e0   : > { %v5001_v60 = vadd.f32 -1.0, %v6327_v59 }
 0x3e2   : > { %v2042_v61 = vmul.f32 1.6732632, %v5001_v60 }
 0x3e3   : > { %v6329_v62 = vpop.eup %6328 }
 0x3e4   : > { %v5002_v63 = vadd.f32 -1.0, %v6329_v62  ;;  %v2044_v1 = vsel %vm2034_vm4, %v2028_v52, %v2042_v61  ;;  %vm2847_vm4 = vcmask 1043456  }
 0x3e5   : > { %v2046_v4 = vmul.f32 1.050701, %v2044_v1  ;;  %v6179_v1 = vld [vmem:[#allocation17 + $0x38] sm:$0xff]  }
 0x3e6   : > { %v2043_v2 = vmul.f32 1.6732632, %v5002_v63 }
 0x3e8   : > { %v2045_v3 = vsel %vm2035_vm5, %v2031_v56, %v2043_v2  ;;  %v6180_v2 = vld [vmem:[#allocation17 + $0x30] sm:$0xff]   ;;  %vm2848_vm5 = vcmask 261124  }
 0x3e9   : > { %v2047_v5 = vmul.f32 1.050701, %v2045_v3  ;;  %v6181_v3 = vld [vmem:[#allocation17 + $0x28] sm:$0xff]  }
 0x3eb   : > { %v2048_v6 = vpack.c.bf16 %v2047_v5, %v2046_v4  ;;  %v6182_v4 = vld [vmem:[#allocation17 + $0x20] sm:$0xff]   ;;  %v6183_v5 = vld [vmem:[#allocation17 + $0x18] sm:$0xff]  }
 0x3ed   : > { %5437 = vmatmul.mubr.bf16.vlgmr.msra.gmra.mxu1 %v2048_v6  ;;  %v6184_v6 = vld [vmem:[#allocation17 + $0x10] sm:$0xff]  }
 0x3ee   : > { %5476 = vmatprep.mubr.msk.bf16.mxu1 %vm7313_vm1, %v7312_v14  ;;  %5461 = vmatpush3.bf16.msra.mxu1 %v6171_v36  ;;  %v6194_v36 = vld [vmem:[#allocation20] sm:$0xff]  }
 0x3ef   : > { %5462 = vmatprep.subr.bf16.mxu1 %v7312_v14 }
 0x3f2   : > { %5463 = vmatpush3.bf16.msra.mxu1 %v6172_v37  ;;  %v6202_v37 = vld [vmem:[%s8495_s14 + $0x70] ss:$8 sps:$4 sm:$0xff]  }
 0x3f3   : > { %5464 = vmatprep.subr.bf16.mxu1 %v7312_v14 }
 0x3f6   : > { %5465 = vmatpush3.bf16.msra.mxu1 %v6173_v38  ;;  %v6204_v38 = vld [vmem:[%s8495_s14 + $0x74] ss:$8 sps:$4 sm:$0xff]  }
 0x3f7   : > { %5466 = vmatprep.subr.bf16.mxu1 %v7312_v14 }
 0x3fa   : > { %5467 = vmatpush3.bf16.msra.mxu1 %v6174_v39  ;;  %v5036_v39 = vld [vmem:[#allocation19] ss:$0 sm:$0xff] }
 0x3fb   : > { %5468 = vmatprep.subr.bf16.mxu1 %v7312_v14 }
 0x3fe   : > { %5469 = vmatpush3.bf16.msra.mxu1 %v6175_v40 }
 0x3ff   : > { %5470 = vmatprep.subr.bf16.mxu1 %v7312_v14 }
 0x402   : > { %5471 = vmatpush3.bf16.msra.mxu1 %v6176_v41 }
 0x403   : > { %5472 = vmatprep.subr.bf16.mxu1 %v7312_v14 }
 0x406   : > { %5473 = vmatpush3.bf16.msra.mxu1 %v6177_v42 }
 0x407   : > { %5474 = vmatprep.subr.bf16.mxu1 %v7312_v14 }
 0x40a   : > { %5475 = vmatpush3.bf16.msra.mxu1 %v6178_v43 }
 0x40b   : > { %5500 = vmatprep.subr.bf16.mxu1 %v7312_v14 }
 0x4ad   : > { %v2154_v17 = vpop.f32.mrf.mxu1 }
 0x4ae   : > { %v2155_v18 = vadd.f32 %v5003_v16, %v2154_v17 }
 0x4af   : > { %v5438_v19 = vpop.f32.mrf.mxu1 }
 0x4b0   : > { %v2163_v20 = vmul.f32 1.442695, %v2155_v18  ;;  %vm2161_vm6 = vcmp.gt.f32.partialorder %v2155_v18, 0.0 }
 0x4b1   : > { %v2157_v21 = vpop.f32.mrf.mxu1 }
 0x4b2   : > { %6330 = vpow2.f32 %v2163_v20  ;;  %v2158_v22 = vadd.f32 %v5003_v16, %v2157_v21 }
 0x4b3   : > { %v5439_v23 = vpop.f32.mrf.mxu1 }
 0x4b4   : > { %v2165_v24 = vmul.f32 1.442695, %v2158_v22  ;;  %vm2162_vm7 = vcmp.gt.f32.partialorder %v2158_v22, 0.0 }
 0x4b6   : > { %6332 = vpow2.f32 %v2165_v24 }
 0x4bf   : > { %v6331_v25 = vpop.eup %6330 }
 0x4c0   : > { %v5012_v26 = vadd.f32 -1.0, %v6331_v25 }
 0x4c2   : > { %v2169_v27 = vmul.f32 1.6732632, %v5012_v26 }
 0x4c3   : > { %v6333_v28 = vpop.eup %6332 }
 0x4c4   : > { %v5013_v29 = vadd.f32 -1.0, %v6333_v28  ;;  %v2171_v30 = vsel %vm2161_vm6, %v2155_v18, %v2169_v27  ;;  %vm2849_vm6 = vmor %vm2848_vm5, %vm2847_vm4  ;;  %vm3856_vm4 = vcmask 781312  }
 0x4c5   : > { %v2173_v33 = vmul.f32 1.050701, %v2171_v30  ;;  %v6187_v30 = vld [vmem:[#allocation20 + $0x38] sm:$0xff]  }
 0x4c6   : > { %v2170_v31 = vmul.f32 1.6732632, %v5013_v29 }
 0x4c8   : > { %v2172_v32 = vsel %vm2162_vm7, %v2158_v22, %v2170_v31  ;;  %v6188_v31 = vld [vmem:[#allocation20 + $0x30] sm:$0xff]  }
 0x4c9   : > { %v2174_v34 = vmul.f32 1.050701, %v2172_v32  ;;  %v6189_v32 = vld [vmem:[#allocation20 + $0x28] sm:$0xff]  }
 0x4cb   : > { %v2175_v35 = vpack.c.bf16 %v2174_v34, %v2173_v33  ;;  %v6190_v33 = vld [vmem:[#allocation20 + $0x20] sm:$0xff]   ;;  %v6191_v34 = vld [vmem:[#allocation20 + $0x18] sm:$0xff]  }
 0x4cd   : > { %5457 = vmatmul.mubr.bf16.vlgmr.msra.gmra.mxu0 %v2175_v35  ;;  %v6193_v35 = vld [vmem:[#allocation20 + $0x8] sm:$0xff]  }
 0x4ce   : > { %5496 = vmatprep.mubr.msk.bf16.mxu0 %vm7313_vm1, %v7312_v14  ;;  %5481 = vmatpush3.bf16.msra.mxu0 %v6179_v1  ;;  %v6199_v1 = vld [vmem:[#allocation25 + $0x8] sm:$0xff]  }
 0x4cf   : > { %5482 = vmatprep.subr.bf16.mxu0 %v7312_v14 }
 0x4d2   : > { %5483 = vmatpush3.bf16.msra.mxu0 %v6180_v2  ;;  %v6200_v2 = vld [vmem:[#allocation25] sm:$0xff]  }
 0x4d3   : > { %5484 = vmatprep.subr.bf16.mxu0 %v7312_v14 }
 0x4d6   : > { %5485 = vmatpush3.bf16.msra.mxu0 %v6181_v3  ;;  %v6201_v3 = vld [vmem:[%s7900_s6] sm:$0xff]   ;;  %s8505_s6 = sld [smem:[#allocation100_spill]] }
 0x4d7   : > { %5486 = vmatprep.subr.bf16.mxu0 %v7312_v14 }
 0x4da   : > { %5487 = vmatpush3.bf16.msra.mxu0 %v6182_v4  ;;  %v6207_v4 = vld [vmem:[%s8495_s14 + $0x64] ss:$8 sps:$4 sm:$0xff]  }
 0x4db   : > { %5488 = vmatprep.subr.bf16.mxu0 %v7312_v14 }
 0x4de   : > { %5489 = vmatpush3.bf16.msra.mxu0 %v6183_v5  ;;  %v6205_v5 = vld [vmem:[%s8495_s14 + $0x60] ss:$8 sps:$4 sm:$0xff]  }
 0x4df   : > { %5490 = vmatprep.subr.bf16.mxu0 %v7312_v14 }
 0x4e2   : > { %5491 = vmatpush3.bf16.msra.mxu0 %v6184_v6  ;;  %v6210_v6 = vld [vmem:[%s8495_s14 + $0x54] ss:$8 sps:$4 sm:$0xff]  }
 0x4e3   : > { %5492 = vmatprep.subr.bf16.mxu0 %v7312_v14 }
 0x4e6   : > { %5493 = vmatpush3.bf16.msra.mxu0 %v6185_v7  ;;  %v6208_v7 = vld [vmem:[%s8495_s14 + $0x50] ss:$8 sps:$4 sm:$0xff]  }
 0x4e7   : > { %5494 = vmatprep.subr.bf16.mxu0 %v7312_v14 }
 0x4ea   : > { %5495 = vmatpush3.bf16.msra.mxu0 %v6186_v8  ;;  %v6213_v8 = vld [vmem:[%s8495_s14 + $0x44] ss:$8 sps:$4 sm:$0xff]  }
 0x4eb   : > { %2792 = vmatprep.subr.bf16.mxu0 %v6204_v38 }
 0x58d   : > { %v2281_v45 = vpop.f32.mrf.mxu0 }
 0x58e   : > { %v2282_v46 = vadd.f32 %v5014_v44, %v2281_v45 }
 0x58f   : > { %v5458_v47 = vpop.f32.mrf.mxu0 }
 0x590   : > { %v2290_v48 = vmul.f32 1.442695, %v2282_v46  ;;  %vm2288_vm8 = vcmp.gt.f32.partialorder %v2282_v46, 0.0 }
 0x591   : > { %v2284_v49 = vpop.f32.mrf.mxu0 }
 0x592   : > { %6334 = vpow2.f32 %v2290_v48  ;;  %v2285_v50 = vadd.f32 %v5014_v44, %v2284_v49 }
 0x593   : > { %v5459_v51 = vpop.f32.mrf.mxu0 }
 0x594   : > { %v2292_v52 = vmul.f32 1.442695, %v2285_v50  ;;  %vm2289_vm9 = vcmp.gt.f32.partialorder %v2285_v50, 0.0 }
 0x596   : > { %6336 = vpow2.f32 %v2292_v52 }
 0x59f   : > { %v6335_v53 = vpop.eup %6334 }
 0x5a0   : > { %v5023_v54 = vadd.f32 -1.0, %v6335_v53 }
 0x5a2   : > { %v2296_v55 = vmul.f32 1.6732632, %v5023_v54 }
 0x5a3   : > { %v6337_v56 = vpop.eup %6336 }
 0x5a4   : > { %v5024_v57 = vadd.f32 -1.0, %v6337_v56  ;;  %v2298_v58 = vsel %vm2288_vm8, %v2282_v46, %v2296_v55 }
 0x5a5   : > { %v2300_v61 = vmul.f32 1.050701, %v2298_v58  ;;  %v6195_v58 = vld [vmem:[#allocation25 + $0x28] sm:$0xff]  }
 0x5a6   : > { %v2297_v59 = vmul.f32 1.6732632, %v5024_v57 }
 0x5a8   : > { %v2299_v60 = vsel %vm2289_vm9, %v2285_v50, %v2297_v59 }
 0x5a9   : > { %v2301_v62 = vmul.f32 1.050701, %v2299_v60  ;;  %v6196_v60 = vld [vmem:[#allocation25 + $0x20] sm:$0xff]  }
 0x5ab   : > { %v8042_v63 = vpack.c.bf16 %v2301_v62, %v2300_v61  ;;  %v6197_v61 = vld [vmem:[#allocation25 + $0x18] sm:$0xff]   ;;  %v6198_v62 = vld [vmem:[#allocation25 + $0x10] sm:$0xff]  }
 0x5ad   : > { %5477 = vmatmul.mubr.bf16.vlgmr.msra.gmra.mxu1 %v8042_v63 }
 0x5ae   : > { %5516 = vmatprep.mubr.msk.bf16.mxu1 %vm7313_vm1, %v7312_v14  ;;  %5501 = vmatpush3.bf16.msra.mxu1 %v6187_v30 }
 0x5af   : > { %5502 = vmatprep.subr.bf16.mxu1 %v7312_v14 }
 0x5b2   : > { %5503 = vmatpush3.bf16.msra.mxu1 %v6188_v31 }
 0x5b3   : > { %5504 = vmatprep.subr.bf16.mxu1 %v7312_v14 }
 0x5b6   : > { %5505 = vmatpush3.bf16.msra.mxu1 %v6189_v32  ;;  %v5076_v32 = vld [vmem:[#allocation26] ss:$0 sm:$0xff] }
 0x5b7   : > { %5506 = vmatprep.subr.bf16.mxu1 %v7312_v14 }
 0x5ba   : > { %5507 = vmatpush3.bf16.msra.mxu1 %v6190_v33 }
 0x5bb   : > { %5508 = vmatprep.subr.bf16.mxu1 %v7312_v14 }
 0x5be   : > { %5509 = vmatpush3.bf16.msra.mxu1 %v6191_v34 }
 0x5bf   : > { %5510 = vmatprep.subr.bf16.mxu1 %v7312_v14 }
 0x66d   : > { %v2408_v10 = vpop.f32.mrf.mxu1 }
 0x66e   : > { %v2409_v11 = vadd.f32 %v5025_v9, %v2408_v10  ;;  %v6216_v10 = vld [vmem:[%s8495_s14 + $0x34] ss:$8 sps:$4 sm:$0xff]  }
 0x66f   : > { %v5478_v12 = vpop.f32.mrf.mxu1 }
 0x670   : > { %v2417_v13 = vmul.f32 1.442695, %v2409_v11  ;;  %vm2415_vm10 = vcmp.gt.f32.partialorder %v2409_v11, 0.0  ;;  %v6219_v12 = vld [vmem:[%s8495_s14 + $0x24] ss:$8 sps:$4 sm:$0xff]  }
 0x671   : > { %v2411_v15 = vpop.f32.mrf.mxu1 }
 0x672   : > { %6338 = vpow2.f32 %v2417_v13  ;;  %v2412_v16 = vadd.f32 %v5025_v9, %v2411_v15  ;;  %v6211_v9 = vld [vmem:[%s8495_s14 + $0x40] ss:$8 sps:$4 sm:$0xff]   ;;  %v6222_v15 = vld [vmem:[%s8495_s14 + $0x14] ss:$8 sps:$4 sm:$0xff]  }
 0x673   : > { %v5479_v17 = vpop.f32.mrf.mxu1  ;;  %v6217_v13 = vld [vmem:[%s8495_s14 + $0x20] ss:$8 sps:$4 sm:$0xff]  }
 0x674   : > { %v2419_v18 = vmul.f32 1.442695, %v2412_v16  ;;  %vm2416_vm11 = vcmp.gt.f32.partialorder %v2412_v16, 0.0  ;;  %v6225_v17 = vld [vmem:[%s8495_s14 + $0x4] ss:$8 sps:$4 sm:$0xff]  }
 0x676   : > { %6340 = vpow2.f32 %v2419_v18  ;;  %v6223_v18 = vld [vmem:[%s8495_s14] ss:$8 sps:$4 sm:$0xff]  }
 0x67f   : > { %v6339_v19 = vpop.eup %6338 }
 0x680   : > { %v5034_v20 = vadd.f32 -1.0, %v6339_v19  ;;  %v5047_v19 = vld [vmem:[#allocation22] ss:$0 sm:$0xff] }
 0x682   : > { %v2423_v21 = vmul.f32 1.6732632, %v5034_v20 }
 0x683   : > { %v6341_v22 = vpop.eup %6340 }
 0x684   : > { %v5035_v23 = vadd.f32 -1.0, %v6341_v22  ;;  %v2425_v24 = vsel %vm2415_vm10, %v2409_v11, %v2423_v21  ;;  %v6214_v11 = vld [vmem:[%s8495_s14 + $0x30] ss:$8 sps:$4 sm:$0xff]  }
 0x685   : > { %v2427_v27 = vmul.f32 1.050701, %v2425_v24 }
 0x686   : > { %v2424_v25 = vmul.f32 1.6732632, %v5035_v23 }
 0x688   : > { %v2426_v26 = vsel %vm2416_vm11, %v2412_v16, %v2424_v25  ;;  %v6220_v16 = vld [vmem:[%s8495_s14 + $0x10] ss:$8 sps:$4 sm:$0xff]  }
 0x689   : > { %v2428_v28 = vmul.f32 1.050701, %v2426_v26 }
 0x68b   : > { %v2429_v29 = vpack.c.bf16 %v2428_v28, %v2427_v27 }
 0x68d   : > { %5497 = vmatmul.mubr.bf16.vlgmr.msra.gmra.mxu0 %v2429_v29 }
 0x68e   : > { %2824 = vmatprep.mubr.bf16.mxu0 %v7311_v0  ;;  %v6192_v0 = vld [vmem:[#allocation20 + $0x10] sm:$0xff]   ;;  %2793 = vmatpush1.bf16.msra.mxu0 %v6202_v37 }
 0x68f   : > { %5511 = vmatpush3.bf16.msra.mxu1 %v6192_v0  ;;  %2794 = vmatprep.subr.bf16.mxu0 %v6207_v4  ;;  %v6234_v4 = vld [vmem:[#allocation28 + $0x38] sm:$0xff]  }
 0x690   : > { %5512 = vmatprep.subr.bf16.mxu1 %v7312_v14 }
 0x692   : > { %2795 = vmatpush1.bf16.msra.mxu0 %v6205_v5  ;;  %v6235_v5 = vld [vmem:[#allocation28 + $0x30] sm:$0xff]  }
 0x693   : > { %5513 = vmatpush3.bf16.msra.mxu1 %v6193_v35  ;;  %2796 = vmatprep.subr.bf16.mxu0 %v6210_v6  ;;  %v6236_v6 = vld [vmem:[#allocation28 + $0x28] sm:$0xff]  }
 0x694   : > { %5514 = vmatprep.subr.bf16.mxu1 %v7312_v14 }
 0x696   : > { %2797 = vmatpush1.bf16.msra.mxu0 %v6208_v7  ;;  %v6237_v7 = vld [vmem:[#allocation28 + $0x20] sm:$0xff]  }
 0x697   : > { %5515 = vmatpush3.bf16.msra.mxu1 %v6194_v36  ;;  %2798 = vmatprep.subr.bf16.mxu0 %v6213_v8  ;;  %v6238_v8 = vld [vmem:[#allocation28 + $0x18] sm:$0xff]  }
 0x698   : > { %5520 = vmatprep.subr.bf16.mxu1 %v7312_v14 }
 0x69a   : > { %2799 = vmatpush1.bf16.msra.mxu0 %v6211_v9  ;;  %v6239_v9 = vld [vmem:[#allocation28 + $0x10] sm:$0xff]  }
 0x69b   : > { %2800 = vmatprep.subr.bf16.mxu0 %v6216_v10  ;;  %v6240_v10 = vld [vmem:[#allocation28 + $0x8] sm:$0xff]  }
 0x69e   : > { %2801 = vmatpush1.bf16.msra.mxu0 %v6214_v11  ;;  %v6241_v11 = vld [vmem:[#allocation28] sm:$0xff]  }
 0x69f   : > { %2802 = vmatprep.subr.bf16.mxu0 %v6219_v12  ;;  %v2702_v12 = vlaneseq }
 0x6a2   : > { %2803 = vmatpush1.bf16.msra.mxu0 %v6217_v13  ;;  %v2703_v13 = vshrl.u32 %v2702_v12, 7 }
 0x6a3   : > { %2804 = vmatprep.subr.bf16.mxu0 %v6222_v15 }
 0x6a4   : > { %v2704_v15 = vsub.s32 0, %v2703_v13 }
 0x6a6   : > { %2805 = vmatpush1.bf16.msra.mxu0 %v6220_v16  ;;  %v2708_v16 = vsub.s32 1, %v2703_v13 }
 0x6a7   : > { %2806 = vmatprep.subr.bf16.mxu0 %v6225_v17  ;;  %v2700_v17 = vld [vmem:[#allocation23] sm:$0x3] }
 0x6aa   : > { %2807 = vmatpush1.bf16.msra.mxu0 %v6223_v18  ;;  %v2705_v18 = vrot.slane %v2700_v17, %v2704_v15 }
 0x6ab   : > { %5536 = vmatprep.subr.bf16.mxu0 %v7312_v14 }
 0x74d   : > { %v2535_v40 = vpop.f32.mrf.mxu0 }
 0x74e   : > { %v2536_v41 = vadd.f32 %v5036_v39, %v2535_v40 }
 0x74f   : > { %v5498_v42 = vpop.f32.mrf.mxu0 }
 0x750   : > { %v2544_v43 = vmul.f32 1.442695, %v2536_v41  ;;  %vm2542_vm12 = vcmp.gt.f32.partialorder %v2536_v41, 0.0 }
 0x751   : > { %v2538_v44 = vpop.f32.mrf.mxu0 }
 0x752   : > { %6342 = vpow2.f32 %v2544_v43  ;;  %v2539_v45 = vadd.f32 %v5036_v39, %v2538_v44  ;;  %v6226_v44 = vld [vmem:[%s8496_s8 + $0x38] sm:$0xff]  }
 0x753   : > { %v5499_v46 = vpop.f32.mrf.mxu0 }
 0x754   : > { %v2546_v47 = vmul.f32 1.442695, %v2539_v45  ;;  %vm2543_vm13 = vcmp.gt.f32.partialorder %v2539_v45, 0.0 }
 0x756   : > { %6344 = vpow2.f32 %v2546_v47 }
 0x75f   : > { %v6343_v48 = vpop.eup %6342 }
 0x760   : > { %v5045_v49 = vadd.f32 -1.0, %v6343_v48  ;;  %v6227_v48 = vld [vmem:[%s8496_s8 + $0x30] sm:$0xff]  }
 0x762   : > { %v2550_v50 = vmul.f32 1.6732632, %v5045_v49  ;;  %v6228_v49 = vld [vmem:[%s8496_s8 + $0x28] sm:$0xff]  }
 0x763   : > { %v6345_v51 = vpop.eup %6344 }
 0x764   : > { %v5046_v52 = vadd.f32 -1.0, %v6345_v51  ;;  %v2552_v53 = vsel %vm2542_vm12, %v2536_v41, %v2550_v50  ;;  %v6229_v50 = vld [vmem:[%s8496_s8 + $0x20] sm:$0xff]  }
 0x765   : > { %v2554_v56 = vmul.f32 1.050701, %v2552_v53 }
 0x766   : > { %v2551_v54 = vmul.f32 1.6732632, %v5046_v52  ;;  %v6230_v52 = vld [vmem:[%s8496_s8 + $0x18] sm:$0xff]  }
 0x768   : > { %v2553_v55 = vsel %vm2543_vm13, %v2539_v45, %v2551_v54 }
 0x769   : > { %v2555_v57 = vmul.f32 1.050701, %v2553_v55 }
 0x76b   : > { %v2556_v59 = vpack.c.bf16 %v2555_v57, %v2554_v56  ;;  %v6231_v56 = vld [vmem:[%s8496_s8 + $0x10] sm:$0xff]  }
 0x76d   : > { %5517 = vmatmul.mubr.bf16.vlgmr.msra.gmra.mxu1 %v2556_v59  ;;  %v6232_v59 = vld [vmem:[%s8496_s8 + $0x8] sm:$0xff]  }
 0x76e   : > { %5521 = vmatpush3.bf16.msra.mxu1 %v6195_v58  ;;  %5532 = vmatprep.mubr.msk.bf16.mxu1 %vm7313_vm1, %v7312_v14 }
 0x76f   : > { %5522 = vmatprep.subr.bf16.mxu1 %v7312_v14 }
 0x772   : > { %5523 = vmatpush3.bf16.msra.mxu1 %v6196_v60 }
 0x773   : > { %5524 = vmatprep.subr.bf16.mxu1 %v7312_v14 }
 0x776   : > { %5525 = vmatpush3.bf16.msra.mxu1 %v6197_v61 }
 0x777   : > { %5526 = vmatprep.subr.bf16.mxu1 %v7312_v14 }
 0x77a   : > { %5527 = vmatpush3.bf16.msra.mxu1 %v6198_v62  ;;  %v6233_v62 = vld [vmem:[%s8496_s8] sm:$0xff]  }
 0x77b   : > { %5528 = vmatprep.subr.bf16.mxu1 %v7312_v14 }
 0x77e   : > { %5529 = vmatpush3.bf16.msra.mxu1 %v6199_v1 }
 0x77f   : > { %5530 = vmatprep.subr.bf16.mxu1 %v7312_v14 }
 0x782   : > { %5531 = vmatpush3.bf16.msra.mxu1 %v6200_v2 }
 0x783   : > { %5556 = vmatprep.subr.bf16.mxu1 %v7312_v14 }
 0x785   : > { %5533 = vmatmul.mubr.msk.bf16.vlgmr.msra.gmra.mxu1 %vm2914_vm14, %v6201_v3 }
 0x786   : > { %5572 = vmatprep.mubr.msk.bf16.mxu1 %vm7313_vm1, %v7312_v14  ;;  %5557 = vmatpush3.bf16.msra.mxu1 %v6234_v4 }
 0x787   : > { %5558 = vmatprep.subr.bf16.mxu1 %v7312_v14 }
 0x78a   : > { %5559 = vmatpush3.bf16.msra.mxu1 %v6235_v5 }
 0x78b   : > { %5560 = vmatprep.subr.bf16.mxu1 %v7312_v14 }
 0x78e   : > { %5561 = vmatpush3.bf16.msra.mxu1 %v6236_v6 }
 0x78f   : > { %5562 = vmatprep.subr.bf16.mxu1 %v7312_v14 }
 0x792   : > { %5563 = vmatpush3.bf16.msra.mxu1 %v6237_v7 }
 0x793   : > { %5564 = vmatprep.subr.bf16.mxu1 %v7312_v14 }
 0x796   : > { %5565 = vmatpush3.bf16.msra.mxu1 %v6238_v8 }
 0x797   : > { %5566 = vmatprep.subr.bf16.mxu1 %v7312_v14 }
 0x79a   : > { %5567 = vmatpush3.bf16.msra.mxu1 %v6239_v9 }
 0x79b   : > { %5568 = vmatprep.subr.bf16.mxu1 %v7312_v14 }
 0x79e   : > { %5569 = vmatpush3.bf16.msra.mxu1 %v6240_v10 }
 0x79f   : > { %5570 = vmatprep.subr.bf16.mxu1 %v7312_v14 }
 0x7a2   : > { %5571 = vmatpush3.bf16.msra.mxu1 %v6241_v11 }
 0x7a3   : > { %5596 = vmatprep.subr.bf16.mxu1 %v7312_v14 }
 0x82d   : > { %v2662_v20 = vpop.f32.mrf.mxu1 }
 0x82e   : > { %v2663_v21 = vadd.f32 %v5047_v19, %v2662_v20 }
 0x82f   : > { %v5518_v22 = vpop.f32.mrf.mxu1 }
 0x830   : > { %v2671_v23 = vmul.f32 1.442695, %v2663_v21  ;;  %vm2669_vm15 = vcmp.gt.f32.partialorder %v2663_v21, 0.0 }
 0x831   : > { %v2665_v24 = vpop.f32.mrf.mxu1 }
 0x832   : > { %6346 = vpow2.f32 %v2671_v23  ;;  %v2666_v25 = vadd.f32 %v5047_v19, %v2665_v24  ;;  %v2709_v19 = vrot.slane %v2700_v17, %v2708_v16  ;;  %v6250_v16 = vld [vmem:[#allocation31 + $0x38] sm:$0xff]   ;;  %v6251_v17 = vld [vmem:[#allocation31 + $0x30] sm:$0xff]  }
 0x833   : > { %v5519_v26 = vpop.f32.mrf.mxu1 }
 0x834   : > { %v2673_v27 = vmul.f32 1.442695, %v2666_v25  ;;  %vm2670_vm0 = vcmp.gt.f32.partialorder %v2666_v25, 0.0 }
 0x836   : > { %6348 = vpow2.f32 %v2673_v27 }
 0x83f   : > { %v6347_v28 = vpop.eup %6346 }
 0x840   : > { %v5056_v29 = vadd.f32 -1.0, %v6347_v28 }
 0x842   : > { %v2677_v30 = vmul.f32 1.6732632, %v5056_v29 }
 0x843   : > { %v6349_v31 = vpop.eup %6348 }
 0x844   : > { %v5057_v33 = vadd.f32 -1.0, %v6349_v31  ;;  %v2679_v0 = vsel %vm2669_vm15, %v2663_v21, %v2677_v30  ;;  %v5087_v30 = vld [vmem:[%s8497_s17] ss:$0 sm:$0xff]  ;;  %s8235_s17 = scalar_lea.vmem [#allocation44], %s4948_s29  ;;  %s8506_s29 = sld [smem:[#allocation102_spill]] }
 0x845   : > { %v2952_v34 = vpop.f32.mrf.mxu1  ;;  %v2681_v39 = vmul.f32 1.050701, %v2679_v0 }
 0x846   : > { %v2678_v35 = vmul.f32 1.6732632, %v5057_v33  ;;  %v2953_v36 = vadd.f32 %v5076_v32, %v2952_v34 }
 0x847   : > { %v5534_v37 = vpop.f32.mrf.mxu1 }
 0x848   : > { %v2680_v38 = vsel %vm2670_vm0, %v2666_v25, %v2678_v35  ;;  %v2961_v41 = vmul.f32 1.442695, %v2953_v36  ;;  %vm2959_vm3 = vcmp.gt.f32.partialorder %v2953_v36, 0.0 }
 0x849   : > { %v2682_v40 = vmul.f32 1.050701, %v2680_v38  ;;  %v2955_v42 = vpop.f32.mrf.mxu1 }
 0x84a   : > { %v2956_v43 = vadd.f32 %v5076_v32, %v2955_v42  ;;  %6350 = vpow2.f32 %v2961_v41 }
 0x84b   : > { %v2683_v45 = vpack.c.bf16 %v2682_v40, %v2681_v39  ;;  %v5535_v46 = vpop.f32.mrf.mxu1 }
 0x84c   : > { %v2963_v47 = vmul.f32 1.442695, %v2956_v43  ;;  %vm2960_vm2 = vcmp.gt.f32.partialorder %v2956_v43, 0.0 }
 0x84d   : > { %2825 = vmatmul.mubr.bf16.vlgmr.msra.gmra.mxu0 %v2683_v45 }
 0x84e   : > { %6352 = vpow2.f32 %v2963_v47  ;;  %5537 = vmatpush3.bf16.msra.mxu0 %v6226_v44  ;;  %5552 = vmatprep.mubr.msk.bf16.mxu0 %vm7313_vm1, %v7312_v14 }
 0x84f   : > { %5538 = vmatprep.subr.bf16.mxu0 %v7312_v14 }
 0x852   : > { %5539 = vmatpush3.bf16.msra.mxu0 %v6227_v48 }
 0x853   : > { %5540 = vmatprep.subr.bf16.mxu0 %v7312_v14 }
 0x856   : > { %5541 = vmatpush3.bf16.msra.mxu0 %v6228_v49  ;;  %v6242_v49 = vld [vmem:[#allocation29 + $0x38] sm:$0xff]  }
 0x857   : > { %5542 = vmatprep.subr.bf16.mxu0 %v7312_v14  ;;  %v6351_v51 = vpop.eup %6350 }
 0x858   : > { %v5085_v55 = vadd.f32 -1.0, %v6351_v51  ;;  %v6244_v51 = vld [vmem:[#allocation29 + $0x28] sm:$0xff]  }
 0x85a   : > { %5543 = vmatpush3.bf16.msra.mxu0 %v6229_v50  ;;  %v2967_v58 = vmul.f32 1.6732632, %v5085_v55  ;;  %v6243_v50 = vld [vmem:[#allocation29 + $0x30] sm:$0xff]   ;;  %v6248_v55 = vld [vmem:[#allocation29 + $0x8] sm:$0xff]  }
 0x85b   : > { %v6353_v53 = vpop.eup %6352  ;;  %5544 = vmatprep.subr.bf16.mxu0 %v7312_v14 }
 0x85c   : > { %v5086_v54 = vadd.f32 -1.0, %v6353_v53  ;;  %v2969_v61 = vsel %vm2959_vm3, %v2953_v36, %v2967_v58  ;;  %v6246_v53 = vld [vmem:[#allocation29 + $0x18] sm:$0xff]  }
 0x85d   : > { %v2971_v2 = vmul.f32 1.050701, %v2969_v61 }
 0x85e   : > { %5545 = vmatpush3.bf16.msra.mxu0 %v6230_v52  ;;  %v2968_v57 = vmul.f32 1.6732632, %v5086_v54  ;;  %v6245_v52 = vld [vmem:[#allocation29 + $0x20] sm:$0xff]   ;;  %v6247_v54 = vld [vmem:[#allocation29 + $0x10] sm:$0xff]  }
 0x85f   : > { %5546 = vmatprep.subr.bf16.mxu0 %v7312_v14 }
 0x860   : > { %v2970_v60 = vsel %vm2960_vm2, %v2956_v43, %v2968_v57  ;;  %v5098_v57 = vld [vmem:[%s8498_s19] ss:$0 sm:$0xff]  ;;  %s8507_s19 = sld [smem:[#allocation104_spill]] }
 0x861   : > { %v2972_v1 = vmul.f32 1.050701, %v2970_v60 }
 0x862   : > { %5547 = vmatpush3.bf16.msra.mxu0 %v6231_v56  ;;  %v6249_v56 = vld [vmem:[#allocation29] sm:$0xff]  }
 0x863   : > { %5548 = vmatprep.subr.bf16.mxu0 %v7312_v14  ;;  %v2973_v3 = vpack.c.bf16 %v2972_v1, %v2971_v2 }
 0x866   : > { %5549 = vmatpush3.bf16.msra.mxu0 %v6232_v59 }
 0x867   : > { %5550 = vmatprep.subr.bf16.mxu0 %v7312_v14 }
 0x86a   : > { %5551 = vmatpush3.bf16.msra.mxu0 %v6233_v62 }
 0x86b   : > { %5576 = vmatprep.subr.bf16.mxu0 %v7312_v14 }
 0x86d   : > { %5553 = vmatmul.mubr.bf16.vlgmr.msra.gmra.mxu0 %v2973_v3 }
 0x86e   : > { %5592 = vmatprep.mubr.msk.bf16.mxu0 %vm7313_vm1, %v7312_v14  ;;  %5577 = vmatpush3.bf16.msra.mxu0 %v6242_v49  ;;  %v6264_v49 = vld [vmem:[#allocation32 + $0x8] sm:$0xff]  }
 0x86f   : > { %5578 = vmatprep.subr.bf16.mxu0 %v7312_v14 }
 0x872   : > { %5579 = vmatpush3.bf16.msra.mxu0 %v6243_v50  ;;  %v6265_v50 = vld [vmem:[#allocation32] sm:$0xff]  }
 0x873   : > { %5580 = vmatprep.subr.bf16.mxu0 %v7312_v14 }
 0x876   : > { %5581 = vmatpush3.bf16.msra.mxu0 %v6244_v51  ;;  %v5120_v51 = vld [vmem:[%s8500_s27] ss:$0 sm:$0xff]  ;;  %s5229_s27 = sshll.u32 %s7577_s18, 7 }
 0x877   : > { %5582 = vmatprep.subr.bf16.mxu0 %v7312_v14 }
 0x87a   : > { %5583 = vmatpush3.bf16.msra.mxu0 %v6245_v52 }
 0x87b   : > { %5584 = vmatprep.subr.bf16.mxu0 %v7312_v14 }
 0x87e   : > { %5585 = vmatpush3.bf16.msra.mxu0 %v6246_v53 }
 0x87f   : > { %5586 = vmatprep.subr.bf16.mxu0 %v7312_v14 }
 0x882   : > { %5587 = vmatpush3.bf16.msra.mxu0 %v6247_v54 }
 0x883   : > { %5588 = vmatprep.subr.bf16.mxu0 %v7312_v14 }
 0x886   : > { %5589 = vmatpush3.bf16.msra.mxu0 %v6248_v55 }
 0x887   : > { %5590 = vmatprep.subr.bf16.mxu0 %v7312_v14 }
 0x88a   : > { %5591 = vmatpush3.bf16.msra.mxu0 %v6249_v56 }
 0x88b   : > { %5616 = vmatprep.subr.bf16.mxu0 %v7312_v14 }
 0x90d   : > { %v2826_v20 = vpop.f32.mrf.mxu0 }
 0x90e   : > { %v2827_v22 = vadd.f32 %v2826_v20, %v2705_v18  ;;  %v6254_v20 = vld [vmem:[#allocation31 + $0x18] sm:$0xff]  }
 0x90f   : > { %v2828_v21 = vpop.f32.mrf.mxu0 }
 0x910   : > { %v2829_v23 = vadd.f32 %v2828_v21, %v2709_v19  ;;  %v6255_v21 = vld [vmem:[#allocation31 + $0x10] sm:$0xff]  }
 0x911   : > { %v2830_v24 = vpop.f32.mrf.mxu0 }
 0x912   : > { %v5223_v25 = vpack.c.bf16 %v2829_v23, %v2827_v22  ;;  %v2831_v27 = vadd.f32 %v2830_v24, %v2705_v18  ;;  %v6252_v18 = vld [vmem:[#allocation31 + $0x28] sm:$0xff]   ;;  %v6257_v23 = vld [vmem:[#allocation31] sm:$0xff]  }
 0x913   : > { %v2832_v26 = vpop.f32.mrf.mxu0  ;;  %v6256_v22 = vld [vmem:[#allocation31 + $0x8] sm:$0xff]  }
 0x914   : > { %2850 = vst.msk [vmem:[%s8120_s9] sm:$0xff] %vm2849_vm6, %v5223_v25  ;;  %v2833_v28 = vadd.f32 %v2832_v26, %v2709_v19  ;;  %v6253_v19 = vld [vmem:[#allocation31 + $0x20] sm:$0xff]   ;;  %v5109_v24 = vld [vmem:[%s8499_s12] ss:$0 sm:$0xff]  ;;  %s4466_s12 = sshll.u32 %s8235_s17, 4  ;;  %s8260_s12 = int_to_ptr.vmem [resolvable:$true] %s4466_s12 }
 0x916   : > { %v5224_v29 = vpack.c.bf16 %v2833_v28, %v2831_v27 }
 0x918   : > { %2851 = vst.msk [vmem:[%s8120_s9 + $0x8] sm:$0xff] %vm2849_vm6, %v5224_v29 }
 0x92d   : > { %v3079_v31 = vpop.f32.mrf.mxu0 }
 0x92e   : > { %v3080_v32 = vadd.f32 %v5087_v30, %v3079_v31 }
 0x92f   : > { %v5554_v33 = vpop.f32.mrf.mxu0 }
 0x930   : > { %v3088_v34 = vmul.f32 1.442695, %v3080_v32  ;;  %vm3086_vm7 = vcmp.gt.f32.partialorder %v3080_v32, 0.0 }
 0x931   : > { %v3082_v0 = vpop.f32.mrf.mxu0 }
 0x932   : > { %6354 = vpow2.f32 %v3088_v34  ;;  %v3083_v35 = vadd.f32 %v5087_v30, %v3082_v0 }
 0x933   : > { %v5555_v36 = vpop.f32.mrf.mxu0 }
 0x934   : > { %v3090_v37 = vmul.f32 1.442695, %v3083_v35  ;;  %vm3087_vm8 = vcmp.gt.f32.partialorder %v3083_v35, 0.0 }
 0x936   : > { %6356 = vpow2.f32 %v3090_v37 }
 0x93f   : > { %v6355_v38 = vpop.eup %6354 }
 0x940   : > { %v5096_v39 = vadd.f32 -1.0, %v6355_v38 }
 0x942   : > { %v3094_v40 = vmul.f32 1.6732632, %v5096_v39 }
 0x943   : > { %v6357_v41 = vpop.eup %6356 }
 0x944   : > { %v5097_v42 = vadd.f32 -1.0, %v6357_v41  ;;  %v3096_v43 = vsel %vm3086_vm7, %v3080_v32, %v3094_v40 }
 0x945   : > { %v3098_v46 = vmul.f32 1.050701, %v3096_v43  ;;  %v6258_v43 = vld [vmem:[#allocation32 + $0x38] sm:$0xff]  }
 0x946   : > { %v3095_v44 = vmul.f32 1.6732632, %v5097_v42 }
 0x948   : > { %v3097_v45 = vsel %vm3087_vm8, %v3083_v35, %v3095_v44  ;;  %v6259_v44 = vld [vmem:[#allocation32 + $0x30] sm:$0xff]  }
 0x949   : > { %v3099_v47 = vmul.f32 1.050701, %v3097_v45  ;;  %v6260_v45 = vld [vmem:[#allocation32 + $0x28] sm:$0xff]  }
 0x94b   : > { %v3100_v48 = vpack.c.bf16 %v3099_v47, %v3098_v46  ;;  %v6261_v46 = vld [vmem:[#allocation32 + $0x20] sm:$0xff]   ;;  %v6262_v47 = vld [vmem:[#allocation32 + $0x18] sm:$0xff]  }
 0x94d   : > { %5573 = vmatmul.mubr.bf16.vlgmr.msra.gmra.mxu1 %v3100_v48  ;;  %v6263_v48 = vld [vmem:[#allocation32 + $0x10] sm:$0xff]  }
 0x94e   : > { %5612 = vmatprep.mubr.msk.bf16.mxu1 %vm7313_vm1, %v7312_v14  ;;  %5597 = vmatpush3.bf16.msra.mxu1 %v6250_v16  ;;  %v6272_v16 = vld [vmem:[#allocation34 + $0x8] sm:$0xff]  }
 0x94f   : > { %5598 = vmatprep.subr.bf16.mxu1 %v7312_v14 }
 0x952   : > { %5599 = vmatpush3.bf16.msra.mxu1 %v6251_v17  ;;  %v6273_v17 = vld [vmem:[#allocation34] sm:$0xff]  }
 0x953   : > { %5600 = vmatprep.subr.bf16.mxu1 %v7312_v14 }
 0x956   : > { %5601 = vmatpush3.bf16.msra.mxu1 %v6252_v18  ;;  %v5131_v18 = vld [vmem:[%s8501_s23] ss:$0 sm:$0xff]  ;;  %s8258_s23 = scalar_lea.hbm %s7549_s20, %s5229_s27 }
 0x957   : > { %5602 = vmatprep.subr.bf16.mxu1 %v7312_v14 }
 0x95a   : > { %5603 = vmatpush3.bf16.msra.mxu1 %v6253_v19 }
 0x95b   : > { %5604 = vmatprep.subr.bf16.mxu1 %v7312_v14 }
 0x95e   : > { %5605 = vmatpush3.bf16.msra.mxu1 %v6254_v20 }
 0x95f   : > { %5606 = vmatprep.subr.bf16.mxu1 %v7312_v14 }
 0x962   : > { %5607 = vmatpush3.bf16.msra.mxu1 %v6255_v21 }
 0x963   : > { %5608 = vmatprep.subr.bf16.mxu1 %v7312_v14 }
 0x966   : > { %5609 = vmatpush3.bf16.msra.mxu1 %v6256_v22 }
 0x967   : > { %5610 = vmatprep.subr.bf16.mxu1 %v7312_v14 }
 0x96a   : > { %5611 = vmatpush3.bf16.msra.mxu1 %v6257_v23 }
 0x96b   : > { %5636 = vmatprep.subr.bf16.mxu1 %v7312_v14 }
 0xa0d   : > { %v3206_v58 = vpop.f32.mrf.mxu1 }
 0xa0e   : > { %v3207_v59 = vadd.f32 %v5098_v57, %v3206_v58 }
 0xa0f   : > { %v5574_v60 = vpop.f32.mrf.mxu1 }
 0xa10   : > { %v3215_v61 = vmul.f32 1.442695, %v3207_v59  ;;  %vm3213_vm9 = vcmp.gt.f32.partialorder %v3207_v59, 0.0 }
 0xa11   : > { %v3209_v62 = vpop.f32.mrf.mxu1 }
 0xa12   : > { %6358 = vpow2.f32 %v3215_v61  ;;  %v3210_v1 = vadd.f32 %v5098_v57, %v3209_v62 }
 0xa13   : > { %v5575_v2 = vpop.f32.mrf.mxu1 }
 0xa14   : > { %v3217_v3 = vmul.f32 1.442695, %v3210_v1  ;;  %vm3214_vm10 = vcmp.gt.f32.partialorder %v3210_v1, 0.0 }
 0xa16   : > { %6360 = vpow2.f32 %v3217_v3 }
 0xa1f   : > { %v6359_v4 = vpop.eup %6358 }
 0xa20   : > { %v5107_v5 = vadd.f32 -1.0, %v6359_v4 }
 0xa22   : > { %v3221_v6 = vmul.f32 1.6732632, %v5107_v5 }
 0xa23   : > { %v6361_v7 = vpop.eup %6360 }
 0xa24   : > { %v5108_v8 = vadd.f32 -1.0, %v6361_v7  ;;  %v3223_v9 = vsel %vm3213_vm9, %v3207_v59, %v3221_v6 }
 0xa25   : > { %v3225_v12 = vmul.f32 1.050701, %v3223_v9  ;;  %v6266_v9 = vld [vmem:[#allocation34 + $0x38] sm:$0xff]  }
 0xa26   : > { %v3222_v10 = vmul.f32 1.6732632, %v5108_v8 }
 0xa28   : > { %v3224_v11 = vsel %vm3214_vm10, %v3210_v1, %v3222_v10  ;;  %v6267_v10 = vld [vmem:[#allocation34 + $0x30] sm:$0xff]  }
 0xa29   : > { %v3226_v13 = vmul.f32 1.050701, %v3224_v11  ;;  %v6268_v11 = vld [vmem:[#allocation34 + $0x28] sm:$0xff]  }
 0xa2b   : > { %v3227_v15 = vpack.c.bf16 %v3226_v13, %v3225_v12  ;;  %v6269_v12 = vld [vmem:[#allocation34 + $0x20] sm:$0xff]   ;;  %v6270_v13 = vld [vmem:[#allocation34 + $0x18] sm:$0xff]  }
 0xa2d   : > { %5593 = vmatmul.mubr.bf16.vlgmr.msra.gmra.mxu0 %v3227_v15  ;;  %v6271_v15 = vld [vmem:[#allocation34 + $0x10] sm:$0xff]  }
 0xa2e   : > { %5632 = vmatprep.mubr.msk.bf16.mxu0 %vm7313_vm1, %v7312_v14  ;;  %5617 = vmatpush3.bf16.msra.mxu0 %v6258_v43  ;;  %v6279_v43 = vld [vmem:[#allocation37 + $0x10] sm:$0xff]  }
 0xa2f   : > { %5618 = vmatprep.subr.bf16.mxu0 %v7312_v14 }
 0xa32   : > { %5619 = vmatpush3.bf16.msra.mxu0 %v6259_v44  ;;  %v6280_v44 = vld [vmem:[#allocation37 + $0x8] sm:$0xff]  }
 0xa33   : > { %5620 = vmatprep.subr.bf16.mxu0 %v7312_v14 }
 0xa36   : > { %5621 = vmatpush3.bf16.msra.mxu0 %v6260_v45  ;;  %v6281_v45 = vld [vmem:[#allocation37] sm:$0xff]  }
 0xa37   : > { %5622 = vmatprep.subr.bf16.mxu0 %v7312_v14 }
 0xa3a   : > { %5623 = vmatpush3.bf16.msra.mxu0 %v6261_v46  ;;  %v6282_v46 = vld [vmem:[%s8502_s21 + $0x38] sm:$0xff]  }
 0xa3b   : > { %5624 = vmatprep.subr.bf16.mxu0 %v7312_v14 }
 0xa3e   : > { %5625 = vmatpush3.bf16.msra.mxu0 %v6262_v47  ;;  %v6283_v47 = vld [vmem:[%s8502_s21 + $0x30] sm:$0xff]  }
 0xa3f   : > { %5626 = vmatprep.subr.bf16.mxu0 %v7312_v14 }
 0xa42   : > { %5627 = vmatpush3.bf16.msra.mxu0 %v6263_v48  ;;  %v6284_v48 = vld [vmem:[%s8502_s21 + $0x28] sm:$0xff]  }
 0xa43   : > { %5628 = vmatprep.subr.bf16.mxu0 %v7312_v14 }
 0xa46   : > { %5629 = vmatpush3.bf16.msra.mxu0 %v6264_v49  ;;  %v6286_v49 = vld [vmem:[%s8502_s21 + $0x18] sm:$0xff]  }
 0xa47   : > { %5630 = vmatprep.subr.bf16.mxu0 %v7312_v14 }
 0xa4a   : > { %5631 = vmatpush3.bf16.msra.mxu0 %v6265_v50  ;;  %v6287_v50 = vld [vmem:[%s8502_s21 + $0x10] sm:$0xff]  }
 0xa4b   : > { %5656 = vmatprep.subr.bf16.mxu0 %v7312_v14 }
 0xaed   : > { %v3333_v25 = vpop.f32.mrf.mxu0 }
 0xaee   : > { %v3334_v26 = vadd.f32 %v5109_v24, %v3333_v25 }
 0xaef   : > { %v5594_v27 = vpop.f32.mrf.mxu0 }
 0xaf0   : > { %v3342_v28 = vmul.f32 1.442695, %v3334_v26  ;;  %vm3340_vm11 = vcmp.gt.f32.partialorder %v3334_v26, 0.0 }
 0xaf1   : > { %v3336_v29 = vpop.f32.mrf.mxu0 }
 0xaf2   : > { %6362 = vpow2.f32 %v3342_v28  ;;  %v3337_v30 = vadd.f32 %v5109_v24, %v3336_v29 }
 0xaf3   : > { %v5595_v31 = vpop.f32.mrf.mxu0 }
 0xaf4   : > { %v3344_v32 = vmul.f32 1.442695, %v3337_v30  ;;  %vm3341_vm12 = vcmp.gt.f32.partialorder %v3337_v30, 0.0 }
 0xaf6   : > { %6364 = vpow2.f32 %v3344_v32 }
 0xaff   : > { %v6363_v33 = vpop.eup %6362 }
 0xb00   : > { %v5118_v34 = vadd.f32 -1.0, %v6363_v33 }
 0xb02   : > { %v3348_v0 = vmul.f32 1.6732632, %v5118_v34 }
 0xb03   : > { %v6365_v35 = vpop.eup %6364 }
 0xb04   : > { %v5119_v36 = vadd.f32 -1.0, %v6365_v35  ;;  %v3350_v37 = vsel %vm3340_vm11, %v3334_v26, %v3348_v0 }
 0xb05   : > { %v3352_v40 = vmul.f32 1.050701, %v3350_v37 }
 0xb06   : > { %v3349_v38 = vmul.f32 1.6732632, %v5119_v36  ;;  %v6274_v36 = vld [vmem:[#allocation37 + $0x38] sm:$0xff]  }
 0xb08   : > { %v3351_v39 = vsel %vm3341_vm12, %v3337_v30, %v3349_v38  ;;  %v6275_v38 = vld [vmem:[#allocation37 + $0x30] sm:$0xff]  }
 0xb09   : > { %v3353_v41 = vmul.f32 1.050701, %v3351_v39  ;;  %v6276_v39 = vld [vmem:[#allocation37 + $0x28] sm:$0xff]  }
 0xb0b   : > { %v8147_v42 = vpack.c.bf16 %v3353_v41, %v3352_v40  ;;  %v6277_v40 = vld [vmem:[#allocation37 + $0x20] sm:$0xff]   ;;  %v6278_v41 = vld [vmem:[#allocation37 + $0x18] sm:$0xff]  }
 0xb0d   : > { %5613 = vmatmul.mubr.bf16.vlgmr.msra.gmra.mxu1 %v8147_v42 }
 0xb0e   : > { %5652 = vmatprep.mubr.msk.bf16.mxu1 %vm7313_vm1, %v7312_v14  ;;  %5637 = vmatpush3.bf16.msra.mxu1 %v6266_v9 }
 0xb0f   : > { %5638 = vmatprep.subr.bf16.mxu1 %v7312_v14 }
 0xb12   : > { %5639 = vmatpush3.bf16.msra.mxu1 %v6267_v10  ;;  %v6290_v10 = vld [vmem:[#allocation35 + $0x38] sm:$0xff]  }
 0xb13   : > { %5640 = vmatprep.subr.bf16.mxu1 %v7312_v14 }
 0xb16   : > { %5641 = vmatpush3.bf16.msra.mxu1 %v6268_v11 }
 0xb17   : > { %5642 = vmatprep.subr.bf16.mxu1 %v7312_v14 }
 0xb1a   : > { %5643 = vmatpush3.bf16.msra.mxu1 %v6269_v12 }
 0xb1b   : > { %5644 = vmatprep.subr.bf16.mxu1 %v7312_v14 }
 0xb1e   : > { %5645 = vmatpush3.bf16.msra.mxu1 %v6270_v13  ;;  %v6291_v13 = vld [vmem:[#allocation35 + $0x30] sm:$0xff]  }
 0xb1f   : > { %5646 = vmatprep.subr.bf16.mxu1 %v7312_v14 }
 0xb22   : > { %5647 = vmatpush3.bf16.msra.mxu1 %v6271_v15 }
 0xb23   : > { %5648 = vmatprep.subr.bf16.mxu1 %v7312_v14 }
 0xb26   : > { %5649 = vmatpush3.bf16.msra.mxu1 %v6272_v16 }
 0xb27   : > { %5650 = vmatprep.subr.bf16.mxu1 %v7312_v14 }
 0xb2a   : > { %5651 = vmatpush3.bf16.msra.mxu1 %v6273_v17  ;;  %v6292_v17 = vld [vmem:[#allocation35 + $0x28] sm:$0xff]  }
 0xb2b   : > { %5676 = vmatprep.subr.bf16.mxu1 %v7312_v14 }
 0xbcd   : > { %v3460_v52 = vpop.f32.mrf.mxu1 }
 0xbce   : > { %v3461_v53 = vadd.f32 %v5120_v51, %v3460_v52  ;;  %v6289_v52 = vld [vmem:[%s8502_s21] sm:$0xff]  }
 0xbcf   : > { %v5614_v54 = vpop.f32.mrf.mxu1 }
 0xbd0   : > { %v3469_v55 = vmul.f32 1.442695, %v3461_v53  ;;  %vm3467_vm13 = vcmp.gt.f32.partialorder %v3461_v53, 0.0 }
 0xbd1   : > { %v3463_v56 = vpop.f32.mrf.mxu1 }
 0xbd2   : > { %6366 = vpow2.f32 %v3469_v55  ;;  %v3464_v57 = vadd.f32 %v5120_v51, %v3463_v56  ;;  %v6288_v51 = vld [vmem:[%s8502_s21 + $0x8] sm:$0xff]  }
 0xbd3   : > { %v5615_v58 = vpop.f32.mrf.mxu1 }
 0xbd4   : > { %v3471_v59 = vmul.f32 1.442695, %v3464_v57  ;;  %vm3468_vm14 = vcmp.gt.f32.partialorder %v3464_v57, 0.0 }
 0xbd6   : > { %6368 = vpow2.f32 %v3471_v59 }
 0xbdf   : > { %v6367_v60 = vpop.eup %6366 }
 0xbe0   : > { %v5129_v61 = vadd.f32 -1.0, %v6367_v60 }
 0xbe2   : > { %v3475_v62 = vmul.f32 1.6732632, %v5129_v61 }
 0xbe3   : > { %v6369_v1 = vpop.eup %6368 }
 0xbe4   : > { %v5130_v2 = vadd.f32 -1.0, %v6369_v1  ;;  %v3477_v3 = vsel %vm3467_vm13, %v3461_v53, %v3475_v62  ;;  %v5142_v53 = vld [vmem:[%s8503_s13] ss:$0 sm:$0xff]  ;;  %s8264_s13 = scalar_lea.sflag [#allocation45], %s1536_s25 }
 0xbe5   : > { %v3479_v6 = vmul.f32 1.050701, %v3477_v3 }
 0xbe6   : > { %v3476_v4 = vmul.f32 1.6732632, %v5130_v2 }
 0xbe8   : > { %v3478_v5 = vsel %vm3468_vm14, %v3464_v57, %v3476_v4 }
 0xbe9   : > { %v3480_v7 = vmul.f32 1.050701, %v3478_v5 }
 0xbeb   : > { %v3481_v8 = vpack.c.bf16 %v3480_v7, %v3479_v6 }
 0xbed   : > { %5633 = vmatmul.mubr.bf16.vlgmr.msra.gmra.mxu0 %v3481_v8 }
 0xbee   : > { %5672 = vmatprep.mubr.msk.bf16.mxu0 %vm7313_vm1, %v7312_v14  ;;  %5657 = vmatpush3.bf16.msra.mxu0 %v6282_v46 }
 0xbef   : > { %5658 = vmatprep.subr.bf16.mxu0 %v7312_v14 }
 0xbf2   : > { %5659 = vmatpush3.bf16.msra.mxu0 %v6283_v47  ;;  %v5180_v47 = vld [vmem:[%s8505_s6] ss:$0 sm:$0xff]  ;;  %s7314_s6 = smov [#allocation44]  }
 0xbf3   : > { %5660 = vmatprep.subr.bf16.mxu0 %v7312_v14 }
 0xbf6   : > { %5661 = vmatpush3.bf16.msra.mxu0 %v6284_v48 }
 0xbf7   : > { %5662 = vmatprep.subr.bf16.mxu0 %v7312_v14 }
 0xcad   : > { %v3587_v19 = vpop.f32.mrf.mxu0 }
 0xcae   : > { %v3588_v20 = vadd.f32 %v5131_v18, %v3587_v19  ;;  %v6293_v19 = vld [vmem:[#allocation35 + $0x20] sm:$0xff]  }
 0xcaf   : > { %v5634_v21 = vpop.f32.mrf.mxu0 }
 0xcb0   : > { %v3596_v22 = vmul.f32 1.442695, %v3588_v20  ;;  %vm3594_vm15 = vcmp.gt.f32.partialorder %v3588_v20, 0.0  ;;  %v6295_v21 = vld [vmem:[#allocation35 + $0x10] sm:$0xff]  }
 0xcb1   : > { %v3590_v23 = vpop.f32.mrf.mxu0 }
 0xcb2   : > { %6370 = vpow2.f32 %v3596_v22  ;;  %v3591_v24 = vadd.f32 %v5131_v18, %v3590_v23  ;;  %v6296_v22 = vld [vmem:[#allocation35 + $0x8] sm:$0xff]   ;;  %v6297_v23 = vld [vmem:[#allocation35] sm:$0xff]  }
 0xcb3   : > { %v5635_v25 = vpop.f32.mrf.mxu0 }
 0xcb4   : > { %v3598_v26 = vmul.f32 1.442695, %v3591_v24  ;;  %vm3595_vm0 = vcmp.gt.f32.partialorder %v3591_v24, 0.0  ;;  %v6299_v25 = vld [vmem:[#allocation38 + $0x30] sm:$0xff]  }
 0xcb6   : > { %6372 = vpow2.f32 %v3598_v26  ;;  %v6300_v26 = vld [vmem:[#allocation38 + $0x28] sm:$0xff]  }
 0xcbf   : > { %v6371_v27 = vpop.eup %6370 }
 0xcc0   : > { %v5140_v28 = vadd.f32 -1.0, %v6371_v27  ;;  %v6301_v27 = vld [vmem:[#allocation38 + $0x20] sm:$0xff]  }
 0xcc2   : > { %v3602_v29 = vmul.f32 1.6732632, %v5140_v28  ;;  %v6302_v28 = vld [vmem:[#allocation38 + $0x18] sm:$0xff]  }
 0xcc3   : > { %v6373_v30 = vpop.eup %6372 }
 0xcc4   : > { %v5141_v31 = vadd.f32 -1.0, %v6373_v30  ;;  %v3604_v32 = vsel %vm3594_vm15, %v3588_v20, %v3602_v29  ;;  %v6294_v20 = vld [vmem:[#allocation35 + $0x18] sm:$0xff]   ;;  %v6304_v29 = vld [vmem:[#allocation38 + $0x8] sm:$0xff]   ;;  %v6305_v30 = vld [vmem:[#allocation38] sm:$0xff]  }
 0xcc5   : > { %v3606_v0 = vmul.f32 1.050701, %v3604_v32  ;;  %v6307_v32 = vld [vmem:[#allocation40 + $0x30] sm:$0xff]  }
 0xcc6   : > { %v3603_v33 = vmul.f32 1.6732632, %v5141_v31  ;;  %v6306_v31 = vld [vmem:[#allocation40 + $0x38] sm:$0xff]  }
 0xcc8   : > { %v3605_v34 = vsel %vm3595_vm0, %v3591_v24, %v3603_v33  ;;  %v6298_v24 = vld [vmem:[#allocation38 + $0x38] sm:$0xff]   ;;  %v6308_v33 = vld [vmem:[#allocation40 + $0x28] sm:$0xff]  }
 0xcc9   : > { %v3607_v35 = vmul.f32 1.050701, %v3605_v34  ;;  %v6309_v34 = vld [vmem:[#allocation40 + $0x20] sm:$0xff]  }
 0xccb   : > { %v3608_v37 = vpack.c.bf16 %v3607_v35, %v3606_v0  ;;  %v6310_v0 = vld [vmem:[#allocation40 + $0x18] sm:$0xff]   ;;  %v5153_v35 = vld [vmem:[%s8504_s22] ss:$0 sm:$0xff]  ;;  %s7058_s22 = scalar_lea.vmem %s8260_s12, 128 }
 0xccc   : > { %p7059_p6 = scmp.ne.s32.totalorder %s8260_s12, %s7058_s22 }
 0xccd   : > { %5653 = vmatmul.mubr.bf16.vlgmr.msra.gmra.mxu1 %v3608_v37 }
 0xcce   : > { %5677 = vmatpush3.bf16.msra.mxu1 %v6274_v36  ;;  %5692 = vmatprep.mubr.msk.bf16.mxu1 %vm7313_vm1, %v7312_v14  ;;  %p7060_p4 = pnand %p7059_p6, %p8508_p7 }
 0xccf   : > { %5678 = vmatprep.subr.bf16.mxu1 %v7312_v14 }
 0xcd0   : > { %p7061_p9 = pneg %p7060_p4 }
 0xcd2   : > { %5679 = vmatpush3.bf16.msra.mxu1 %v6275_v38 }
 0xcd3   : > { %5680 = vmatprep.subr.bf16.mxu1 %v7312_v14 }
 0xcd6   : > { %5681 = vmatpush3.bf16.msra.mxu1 %v6276_v39 }
 0xcd7   : > { %5682 = vmatprep.subr.bf16.mxu1 %v7312_v14 }
 0xcda   : > { %5683 = vmatpush3.bf16.msra.mxu1 %v6277_v40 }
 0xcdb   : > { %5684 = vmatprep.subr.bf16.mxu1 %v7312_v14 }
 0xcde   : > { %5685 = vmatpush3.bf16.msra.mxu1 %v6278_v41 }
 0xcdf   : > { %5686 = vmatprep.subr.bf16.mxu1 %v7312_v14 }
 0xce2   : > { %5687 = vmatpush3.bf16.msra.mxu1 %v6279_v43 }
 0xce3   : > { %5688 = vmatprep.subr.bf16.mxu1 %v7312_v14 }
 0xce6   : > { %5689 = vmatpush3.bf16.msra.mxu1 %v6280_v44 }
 0xce7   : > { %5690 = vmatprep.subr.bf16.mxu1 %v7312_v14 }
 0xcea   : > { %5691 = vmatpush3.bf16.msra.mxu1 %v6281_v45 }
 0xceb   : > { %5716 = vmatprep.subr.bf16.mxu1 %v7312_v14 }
 0xced   : > { %5693 = vmatmul.mubr.bf16.vlgmr.msra.gmra.mxu1 %v8147_v42  ;;  %v6285_v42 = vld [vmem:[%s8502_s21 + $0x20] sm:$0xff]  }
 0xcee   : > { %5732 = vmatprep.mubr.msk.bf16.mxu1 %vm7313_vm1, %v7312_v14  ;;  %5663 = vmatpush3.bf16.msra.mxu0 %v6285_v42 }
 0xcef   : > { %5664 = vmatprep.subr.bf16.mxu0 %v7312_v14  ;;  %5717 = vmatpush3.bf16.msra.mxu1 %v6298_v24 }
 0xcf0   : > { %5718 = vmatprep.subr.bf16.mxu1 %v7312_v14 }
 0xcf2   : > { %5665 = vmatpush3.bf16.msra.mxu0 %v6286_v49 }
 0xcf3   : > { %5666 = vmatprep.subr.bf16.mxu0 %v7312_v14  ;;  %5719 = vmatpush3.bf16.msra.mxu1 %v6299_v25 }
 0xcf4   : > { %5720 = vmatprep.subr.bf16.mxu1 %v7312_v14 }
 0xcf6   : > { %5667 = vmatpush3.bf16.msra.mxu0 %v6287_v50 }
 0xcf7   : > { %5668 = vmatprep.subr.bf16.mxu0 %v7312_v14  ;;  %5721 = vmatpush3.bf16.msra.mxu1 %v6300_v26 }
 0xcf8   : > { %5722 = vmatprep.subr.bf16.mxu1 %v7312_v14 }
 0xcfa   : > { %5669 = vmatpush3.bf16.msra.mxu0 %v6288_v51 }
 0xcfb   : > { %5670 = vmatprep.subr.bf16.mxu0 %v7312_v14  ;;  %5723 = vmatpush3.bf16.msra.mxu1 %v6301_v27 }
 0xcfc   : > { %5724 = vmatprep.subr.bf16.mxu1 %v7312_v14 }
 0xcfe   : > { %5671 = vmatpush3.bf16.msra.mxu0 %v6289_v52 }
 0xcff   : > { %5696 = vmatprep.subr.bf16.mxu0 %v7312_v14  ;;  %5725 = vmatpush3.bf16.msra.mxu1 %v6302_v28 }
 0xd00   : > { %5726 = vmatprep.subr.bf16.mxu1 %v7312_v14 }
 0xd8d   : > { %v3714_v54 = vpop.f32.mrf.mxu1 }
 0xd8e   : > { %v3715_v55 = vadd.f32 %v5142_v53, %v3714_v54 }
 0xd8f   : > { %v5654_v56 = vpop.f32.mrf.mxu1 }
 0xd90   : > { %v3723_v57 = vmul.f32 1.442695, %v3715_v55  ;;  %vm3721_vm2 = vcmp.gt.f32.partialorder %v3715_v55, 0.0  ;;  %v6311_v56 = vld [vmem:[#allocation40 + $0x10] sm:$0xff]  }
 0xd91   : > { %v3717_v58 = vpop.f32.mrf.mxu1 }
 0xd92   : > { %6374 = vpow2.f32 %v3723_v57  ;;  %v3718_v59 = vadd.f32 %v5142_v53, %v3717_v58  ;;  %v6312_v57 = vld [vmem:[#allocation40 + $0x8] sm:$0xff]   ;;  %v6313_v58 = vld [vmem:[#allocation40] sm:$0xff]  }
 0xd93   : > { %v5655_v60 = vpop.f32.mrf.mxu1 }
 0xd94   : > { %v3725_v61 = vmul.f32 1.442695, %v3718_v59  ;;  %vm3722_vm3 = vcmp.gt.f32.partialorder %v3718_v59, 0.0  ;;  %v6315_v60 = vld [vmem:[#allocation41 + $0x30] sm:$0xff]  }
 0xd96   : > { %6376 = vpow2.f32 %v3725_v61  ;;  %v6316_v61 = vld [vmem:[#allocation41 + $0x28] sm:$0xff]  }
 0xd9f   : > { %v6375_v62 = vpop.eup %6374 }
 0xda0   : > { %v5151_v1 = vadd.f32 -1.0, %v6375_v62  ;;  %v6317_v62 = vld [vmem:[#allocation41 + $0x20] sm:$0xff]  }
 0xda2   : > { %v3729_v2 = vmul.f32 1.6732632, %v5151_v1  ;;  %v6318_v1 = vld [vmem:[#allocation41 + $0x18] sm:$0xff]  }
 0xda3   : > { %v6377_v3 = vpop.eup %6376 }
 0xda4   : > { %v5152_v4 = vadd.f32 -1.0, %v6377_v3  ;;  %v3731_v5 = vsel %vm3721_vm2, %v3715_v55, %v3729_v2  ;;  %v5181_v2 = vld [vmem:[%s8506_s29] ss:$0 sm:$0xff]  ;;  %s7062_s29 = sshll.u32 %s7314_s6, 4  ;;  %s7063_s29 = int_to_ptr.vmem [resolvable:$false] %s7062_s29 }
 0xda5   : > { %v3733_v8 = vmul.f32 1.050701, %v3731_v5  ;;  %p7065_p13 = scmp.lt.s32.totalorder %s8260_s12, %s7063_s29 }
 0xda6   : > { %v3730_v6 = vmul.f32 1.6732632, %v5152_v4 }
 0xda8   : > { %v3732_v7 = vsel %vm3722_vm3, %v3718_v59, %v3730_v6  ;;  %v6314_v59 = vld [vmem:[#allocation41 + $0x38] sm:$0xff]  }
 0xda9   : > { %v3734_v9 = vmul.f32 1.050701, %v3732_v7 }
 0xdab   : > { %v3735_v11 = vpack.c.bf16 %v3734_v9, %v3733_v8 }
 0xdad   : > { %v8202_v12 = vpop.f32.mrf.mxu1  ;;  %5673 = vmatmul.mubr.bf16.vlgmr.msra.gmra.mxu0 %v3735_v11 }
 0xdae   : > { %5697 = vmatpush3.bf16.msra.mxu0 %v6290_v10  ;;  %5712 = vmatprep.mubr.msk.bf16.mxu0 %vm7313_vm1, %v7312_v14 }
 0xdaf   : > { %v5694_v15 = vpop.f32.mrf.mxu1  ;;  %5698 = vmatprep.subr.bf16.mxu0 %v7312_v14 }
 0xdb0   : > { %v6321_v15 = vld [vmem:[#allocation41] sm:$0xff]  }
 0xdb1   : > { %v8207_v16 = vpop.f32.mrf.mxu1 }
 0xdb2   : > { %5699 = vmatpush3.bf16.msra.mxu0 %v6291_v13  ;;  %v6320_v13 = vld [vmem:[#allocation41 + $0x8] sm:$0xff]  }
 0xdb3   : > { %v5695_v18 = vpop.f32.mrf.mxu1  ;;  %5700 = vmatprep.subr.bf16.mxu0 %v7312_v14 }
 0xdb6   : > { %5701 = vmatpush3.bf16.msra.mxu0 %v6292_v17 }
 0xdb7   : > { %5702 = vmatprep.subr.bf16.mxu0 %v7312_v14 }
 0xdba   : > { %5703 = vmatpush3.bf16.msra.mxu0 %v6293_v19 }
 0xdbb   : > { %5704 = vmatprep.subr.bf16.mxu0 %v7312_v14 }
 0xdbe   : > { %5705 = vmatpush3.bf16.msra.mxu0 %v6294_v20 }
 0xdbf   : > { %5706 = vmatprep.subr.bf16.mxu0 %v7312_v14 }
 0xdc2   : > { %5707 = vmatpush3.bf16.msra.mxu0 %v6295_v21 }
 0xdc3   : > { %5708 = vmatprep.subr.bf16.mxu0 %v7312_v14 }
 0xdc6   : > { %5709 = vmatpush3.bf16.msra.mxu0 %v6296_v22 }
 0xdc7   : > { %5710 = vmatprep.subr.bf16.mxu0 %v7312_v14 }
 0xdca   : > { %5711 = vmatpush3.bf16.msra.mxu0 %v6297_v23 }
 0xdcb   : > { %5736 = vmatprep.subr.bf16.mxu0 %v7312_v14 }
 0xdcd   : > { %5713 = vmatmul.mubr.bf16.vlgmr.msra.gmra.mxu0 %v8042_v63  ;;  %v6303_v63 = vld [vmem:[#allocation38 + $0x10] sm:$0xff]  }
 0xdce   : > { %5752 = vmatprep.mubr.msk.bf16.mxu0 %vm7313_vm1, %v7312_v14  ;;  %5727 = vmatpush3.bf16.msra.mxu1 %v6303_v63 }
 0xdcf   : > { %5728 = vmatprep.subr.bf16.mxu1 %v7312_v14  ;;  %5737 = vmatpush3.bf16.msra.mxu0 %v6306_v31 }
 0xdd0   : > { %5738 = vmatprep.subr.bf16.mxu0 %v7312_v14 }
 0xdd2   : > { %5729 = vmatpush3.bf16.msra.mxu1 %v6304_v29 }
 0xdd3   : > { %5730 = vmatprep.subr.bf16.mxu1 %v7312_v14  ;;  %5739 = vmatpush3.bf16.msra.mxu0 %v6307_v32 }
 0xdd4   : > { %5740 = vmatprep.subr.bf16.mxu0 %v7312_v14 }
 0xdd6   : > { %5731 = vmatpush3.bf16.msra.mxu1 %v6305_v30 }
 0xdd7   : > { %5756 = vmatprep.subr.bf16.mxu1 %v7312_v14  ;;  %5741 = vmatpush3.bf16.msra.mxu0 %v6308_v33 }
 0xdd8   : > { %5742 = vmatprep.subr.bf16.mxu0 %v7312_v14 }
 0xddb   : > { %5743 = vmatpush3.bf16.msra.mxu0 %v6309_v34 }
 0xddc   : > { %5744 = vmatprep.subr.bf16.mxu0 %v7312_v14 }
 0xddf   : > { %5745 = vmatpush3.bf16.msra.mxu0 %v6310_v0 }
 0xde0   : > { %5746 = vmatprep.subr.bf16.mxu0 %v7312_v14 }
 0xde3   : > { %5747 = vmatpush3.bf16.msra.mxu0 %v6311_v56 }
 0xde4   : > { %5748 = vmatprep.subr.bf16.mxu0 %v7312_v14 }
 0xde7   : > { %5749 = vmatpush3.bf16.msra.mxu0 %v6312_v57 }
 0xde8   : > { %5750 = vmatprep.subr.bf16.mxu0 %v7312_v14 }
 0xdeb   : > { %5751 = vmatpush3.bf16.msra.mxu0 %v6313_v58 }
 0xe6d   : > { %v3841_v36 = vpop.f32.mrf.mxu0 }
 0xe6e   : > { %v3842_v37 = vadd.f32 %v5153_v35, %v3841_v36 }
 0xe6f   : > { %v5674_v38 = vpop.f32.mrf.mxu0 }
 0xe70   : > { %v5225_v39 = vpack.c.bf16 %v3842_v37, %v3842_v37 }
 0xe71   : > { %v3844_v40 = vpop.f32.mrf.mxu0 }
 0xe72   : > { %3857 = vst.msk [vmem:[%s8235_s17] sm:$0xf] %vm3856_vm4, %v5225_v39  ;;  %v3845_v41 = vadd.f32 %v5153_v35, %v3844_v40 }
 0xe73   : > { %v5675_v43 = vpop.f32.mrf.mxu0 }
 0xe74   : > { %v5226_v44 = vpack.c.bf16 %v3845_v41, %v3845_v41 }
 0xe76   : > { %3858 = vst.msk [vmem:[%s8235_s17 + $0x4] sm:$0xf] %vm3856_vm4, %v5226_v44  ;;  %s7064_s17 = scalar_lea.vmem %s7063_s29, 256 }
 0xe77   : > { %p7066_p11 = scmp.lt.s32.totalorder %s7064_s17, %s7058_s22 }
 0xe79   : > { %p7067_p0 = por %p7066_p11, %p7065_p13 }
 0xe7b   : > { %p7068_p2 = pnand %p7067_p0, %p7061_p9 }
 0xe8d   : > { %v4062_v45 = vpop.f32.mrf.mxu0 }
 0xe8e   : > { %v4063_v46 = vadd.f32 %v4062_v45, %v8202_v12  ;;  %v6319_v12 = vld [vmem:[#allocation41 + $0x10] sm:$0xff]  }
 0xe8f   : > { %v5714_v48 = vpop.f32.mrf.mxu0 }
 0xe90   : > { %v4076_v49 = vadd.f32 %v5180_v47, %v4063_v46 }
 0xe91   : > { %v4065_v42 = vpop.f32.mrf.mxu0 }
 0xe92   : > { %v4066_v50 = vadd.f32 %v4065_v42, %v8207_v16  ;;  %v4078_v53 = vmax.f32 %v4076_v49, 0.0  ;;  %v5190_v16 = vld [vmem:[%s8507_s19] ss:$0 sm:$0xff] }
 0xe93   : > { %v5715_v51 = vpop.f32.mrf.mxu0 }
 0xe94   : > { %v4077_v52 = vadd.f32 %v5180_v47, %v4066_v50 }
 0xe96   : > { %v4079_v54 = vmax.f32 %v4077_v52, 0.0 }
 0xe98   : > { %v4080_v55 = vpack.c.bf16 %v4079_v54, %v4078_v53 }
 0xe9a   : > { %5733 = vmatmul.mubr.bf16.vlgmr.msra.gmra.mxu1 %v4080_v55 }
 0xe9b   : > { %5772 = vmatprep.mubr.msk.bf16.mxu1 %vm7313_vm1, %v7312_v14  ;;  %5757 = vmatpush3.bf16.msra.mxu1 %v6314_v59 }
 0xe9c   : > { %5758 = vmatprep.subr.bf16.mxu1 %v7312_v14 }
 0xe9f   : > { %5759 = vmatpush3.bf16.msra.mxu1 %v6315_v60 }
 0xea0   : > { %5760 = vmatprep.subr.bf16.mxu1 %v7312_v14 }
 0xea3   : > { %5761 = vmatpush3.bf16.msra.mxu1 %v6316_v61 }
 0xea4   : > { %5762 = vmatprep.subr.bf16.mxu1 %v7312_v14 }
 0xea7   : > { %5763 = vmatpush3.bf16.msra.mxu1 %v6317_v62 }
 0xea8   : > { %5764 = vmatprep.subr.bf16.mxu1 %v7312_v14 }
 0xeab   : > { %5765 = vmatpush3.bf16.msra.mxu1 %v6318_v1 }
 0xeac   : > { %5766 = vmatprep.subr.bf16.mxu1 %v7312_v14 }
 0xeaf   : > { %5767 = vmatpush3.bf16.msra.mxu1 %v6319_v12 }
 0xeb0   : > { %5768 = vmatprep.subr.bf16.mxu1 %v7312_v14 }
 0xeb3   : > { %5769 = vmatpush3.bf16.msra.mxu1 %v6320_v13 }
 0xeb4   : > { %5770 = vmatprep.subr.bf16.mxu1 %v7312_v14 }
 0xeb7   : > { %5771 = vmatpush3.bf16.msra.mxu1 %v6321_v15 }
 0xf5a   : > { %v4186_v3 = vpop.f32.mrf.mxu1 }
 0xf5b   : > { %v4187_v5 = vadd.f32 %v5181_v2, %v4186_v3 }
 0xf5c   : > { %v5734_v4 = vpop.f32.mrf.mxu1 }
 0xf5d   : > { %v4193_v9 = vmax.f32 %v4187_v5, 0.0 }
 0xf5e   : > { %v4189_v6 = vpop.f32.mrf.mxu1 }
 0xf5f   : > { %v4190_v7 = vadd.f32 %v5181_v2, %v4189_v6 }
 0xf60   : > { %v5735_v8 = vpop.f32.mrf.mxu1 }
 0xf61   : > { %v4194_v10 = vmax.f32 %v4190_v7, 0.0 }
 0xf63   : > { %v4195_v11 = vpack.c.bf16 %v4194_v10, %v4193_v9 }
 0xf65   : > { %5753 = vmatmul.mubr.bf16.vlgmr.msra.gmra.mxu0 %v4195_v11 }
0x1025   : > { %v4301_v17 = vpop.f32.mrf.mxu0 }
0x1026   : > { %v4302_v19 = vadd.f32 %v5190_v16, %v4301_v17 }
0x1027   : > { %v5754_v18 = vpop.f32.mrf.mxu0 }
0x1028   : > { %v4308_v23 = vmax.f32 %v4302_v19, 0.0 }
0x1029   : > { %v4304_v20 = vpop.f32.mrf.mxu0 }
0x102a   : > { %v4305_v21 = vadd.f32 %v5190_v16, %v4304_v20 }
0x102b   : > { %v5755_v22 = vpop.f32.mrf.mxu0 }
0x102c   : > { %v4309_v24 = vmax.f32 %v4305_v21, 0.0 }
0x102e   : > { %v4310_v25 = vpack.c.bf16 %v4309_v24, %v4308_v23 }
0x1030   : > { %5773 = vmatmul.mubr.bf16.vlgmr.msra.gmra.mxu1 %v4310_v25 }
0x1031   : > { %7071 = shalt.err (!%p7068_p2)
}
0x1032   : > { %s7072_s25 = scalar_lea.hbm %s8258_s23, 128  ;;  %s7076_s19 = scalar_lea.hbm %s7549_s20, 256 }
0x1033   : > { %p7073_p12 = scmp.ne.s32.totalorder %s8258_s23, %s7072_s25  ;;  %p7077_p10 = scmp.lt.s32.totalorder %s8258_s23, %s7549_s20 }
0x1034   : > { %p7078_p1 = scmp.lt.s32.totalorder %s7076_s19, %s7072_s25 }
0x1035   : > { %p7074_p5 = pnand %p7073_p12, %p8508_p7 }
0x1036   : > { %p7079_p3 = por %p7078_p1, %p7077_p10 }
0x1037   : > { %p7075_p8 = pneg %p7074_p5 }
0x1039   : > { %p7080_p6 = pnand %p7079_p3, %p7075_p8 }
0x103b   : > { %7083 = shalt.err (!%p7080_p6)
}
0x103c   : > { %s7315_s27 = smov 64   ;;  %s7316_s22 = smov 4  }
0x103d   : > { %5877 = dma.vmem_to_hbm [thread:$0]  (%p8508_p7), %s8260_s12, 128, %s8258_s23, %s8264_s13, %s7315_s27, %s7315_s27, %s7316_s22  }
0x103e   : > { %s5228_s6 = sshll.u32 %s7577_s18, 8  ;;  %s4450_s29 = sshll.u32 %s8120_s9, 4  ;;  %s8290_s29 = int_to_ptr.vmem [resolvable:$true] %s4450_s29 }
0x103f   : > { %s8288_s17 = scalar_lea.hbm %s7544_s5, %s5228_s6  ;;  %s4426_s25 = scalar_lea.sflag [#allocation4], %s7883_s30 }
0x1040   : > { %s7084_s19 = scalar_lea.vmem %s8290_s29, 256  ;;  %s7317_s1 = smov [#allocation43]  }
0x1041   : > { %p7085_p4 = scmp.ne.s32.totalorder %s8290_s29, %s7084_s19  ;;  %s7088_s2 = sshll.u32 %s7317_s1, 4  ;;  %s7089_s2 = int_to_ptr.vmem [resolvable:$false] %s7088_s2 }
0x1042   : > { %s7090_s12 = scalar_lea.vmem %s7089_s2, 512  ;;  %p7091_p11 = scmp.lt.s32.totalorder %s8290_s29, %s7089_s2 }
0x1043   : > { %p7086_p9 = pnand %p7085_p4, %p8508_p7  ;;  %p7092_p0 = scmp.lt.s32.totalorder %s7090_s12, %s7084_s19 }
0x1045   : > { %p7087_p13 = pneg %p7086_p9  ;;  %p7093_p2 = por %p7092_p0, %p7091_p11 }
0x1047   : > { %p7094_p12 = pnand %p7093_p2, %p7087_p13 }
0x1049   : > { %7097 = shalt.err (!%p7094_p12)
}
0x104a   : > { %s7098_s9 = scalar_lea.hbm %s8288_s17, 256  ;;  %s7102_s23 = scalar_lea.hbm %s7544_s5, 512 }
0x104b   : > { %p7099_p5 = scmp.ne.s32.totalorder %s8288_s17, %s7098_s9  ;;  %p7103_p1 = scmp.lt.s32.totalorder %s8288_s17, %s7544_s5 }
0x104c   : > { %p7104_p3 = scmp.lt.s32.totalorder %s7102_s23, %s7098_s9 }
0x104d   : > { %p7100_p8 = pnand %p7099_p5, %p8508_p7 }
0x104e   : > { %p7105_p6 = por %p7104_p3, %p7103_p1 }
0x104f   : > { %p7101_p10 = pneg %p7100_p8 }
0x1051   : > { %p7106_p4 = pnand %p7105_p6, %p7101_p10 }
0x1053   : > { %7109 = shalt.err (!%p7106_p4)
}
0x1054   : > { %s7318_s2 = smov 128   ;;  %s8509_s1 = sld [smem:[#allocation106_spill]] }
0x1055   : > { %s8510_s27 = sld [smem:[#allocation107_spill]]  ;;  %s7319_s22 = smov 8  }
0x1056   : > { %5876 = dma.vmem_to_hbm [thread:$0]  (%p8508_p7), %s8290_s29, 256, %s8288_s17, %s4426_s25, %s7318_s2, %s7318_s2, %s7319_s22  }
0x1057   : > { %s1757_s19 = scalar_lea.vmem [#allocation46], %s7886_s26  ;;  %s7320_s26 = smov [#allocation46]  }
0x1058   : > { %s4482_s12 = sshll.u32 %s1757_s19, 4  ;;  %s7114_s29 = sshll.u32 %s7320_s26, 4  ;;  %s8316_s12 = int_to_ptr.vmem [resolvable:$true] %s4482_s12  ;;  %s7115_s29 = int_to_ptr.vmem [resolvable:$false] %s7114_s29 }
0x1059   : > { %s7110_s30 = scalar_lea.vmem %s8316_s12, 256  ;;  %s7116_s17 = scalar_lea.vmem %s7115_s29, 512 }
0x105a   : > { %v5199_v14 = vld [vmem:[%s8509_s1] ss:$0 sm:$0xff]  ;;  %p7111_p9 = scmp.ne.s32.totalorder %s8316_s12, %s7110_s30  ;;  %p7117_p0 = scmp.lt.s32.totalorder %s8316_s12, %s7115_s29 }
0x105b   : > { %s8321_s9 = scalar_lea.hbm %s8510_s27, %s5228_s6  ;;  %p7118_p2 = scmp.lt.s32.totalorder %s7116_s17, %s7110_s30 }
0x105c   : > { %p7112_p13 = pnand %p7111_p9, %p8508_p7 }
0x105d   : > { %p7119_p12 = por %p7118_p2, %p7117_p0 }
0x105e   : > { %p7113_p11 = pneg %p7112_p13 }
0x1060   : > { %p7120_p5 = pnand %p7119_p12, %p7113_p11 }
0x10f0   : > { %v4416_v26 = vpop.f32.mrf.mxu1 }
0x10f1   : > { %v4417_v27 = vadd.f32 %v5199_v14, %v4416_v26 }
0x10f2   : > { %v5774_v28 = vpop.f32.mrf.mxu1 }
0x10f3   : > { %4423 = vst [vmem:[%s1757_s19] sm:$0xff] %v4417_v27 }
0x10f4   : > { %v4419_v63 = vpop.f32.mrf.mxu1 }
0x10f5   : > { %v4420_v29 = vadd.f32 %v5199_v14, %v4419_v63 }
0x10f6   : > { %v5775_v30 = vpop.f32.mrf.mxu1 }
0x10f7   : > { %4424 = vst [vmem:[%s1757_s19 + $0x8] sm:$0xff] %v4420_v29 }
0x10f8   : > { %7123 = shalt.err (!%p7120_p5)
}
0x10f9   : > { %s7124_s18 = scalar_lea.hbm %s8321_s9, 256  ;;  %s7128_s6 = scalar_lea.hbm %s8510_s27, 512 }
0x10fa   : > { %p7125_p8 = scmp.ne.s32.totalorder %s8321_s9, %s7124_s18  ;;  %p7129_p3 = scmp.lt.s32.totalorder %s8321_s9, %s8510_s27 }
0x10fb   : > { %p7130_p6 = scmp.lt.s32.totalorder %s7128_s6, %s7124_s18 }
0x10fc   : > { %p7126_p10 = pnand %p7125_p8, %p8508_p7 }
0x10fd   : > { %p7131_p4 = por %p7130_p6, %p7129_p3 }
0x10fe   : > { %p7127_p1 = pneg %p7126_p10 }
0x1100   : > { %p7132_p9 = pnand %p7131_p4, %p7127_p1 }
0x1102   : > { %7135 = shalt.err (!%p7132_p9)
}
0x1103   : > { %5878 = dma.vmem_to_hbm [thread:$0]  (%p8508_p7), %s8316_s12, 256, %s8321_s9, %s8264_s13, %s7318_s2, %s7318_s2, %s7319_s22  }
0x1104 PF: > { %s4497_s25 = sand.u32 1, %s7222_s0   ;;  %p8511_p13 = scmp.ne.s32.totalorder %s8462_s4, 0 }
0x1105   : > { %p8512_p11 = scmp.ge.s32.totalorder %s7234_s11, 2  ;;  %s4498_s23 = scalar_lea.sflag [#allocation4], %s4497_s25 }
0x1107   : > { %p5963_p0 = pnand %p8512_p11, %p8511_p13 }
0x1109   : > { %p5964_p2 = pneg %p5963_p0 }
0x110b   : > { %7213 = dma.done.wait (%p5964_p2), %s4498_s23, 256  }
0x110c   : > { %7215 = vsyncadd (%p5964_p2), %s4498_s23, 4294967040  ;;  %s8513_s3 = sadd.s32 4294967294, %s7234_s11  }
0x110d   : > { %s4506_s1 = sand.u32 1, %s8513_s3  }
0x110e   : > { %s4507_s19 = scalar_lea.sflag [#allocation45], %s4506_s1 }
0x110f   : > { %7217 = dma.done.wait (%p5964_p2), %s4507_s19, 384  }
0x1110   : > { %7219 = vsyncadd (%p5964_p2), %s4507_s19, 4294966912  ;;  %p123_p7 = scmp.ge.s32.totalorder %s7775_s15, 4   ;;  %s8514_s0 = smov %s7226_s7 }
0x1111   : > { %s8515_s7 = smov %s7230_s10  ;;  %s8516_s10 = smov %s7786_s24 }
0x1112   : > { %s8517_s11 = smov %s7775_s15  ;;  %125 = sbr.rel (!%p123_p7) target bundleno = 118 (0x76), region = 423 }
0x1117   :  { %4521 = vsyncpa [#allocation3], 1 }
0x1118   :  { %4523 = vsyncpa [#allocation3 + $0x1], 1 }
0x1119   :  { %4524 = vsyncpa [#allocation6], 1 }
0x111a   :  { %4526 = vsyncpa [#allocation6 + $0x1], 1 }
0x111b   :  { %4527 = vsyncpa [#allocation9], 1 }
0x111c   :  { %4528 = vsyncpa [#allocation12], 1 }
0x111d   :  { %4529 = vsyncpa [#allocation15], 1 }
0x111e   :  { %4530 = vsyncpa [#allocation18], 1 }
0x111f   :  { %4531 = vsyncpa [#allocation21], 1 }
0x1120   :  { %4532 = vsyncpa [#allocation24], 1 }
0x1121   :  { %4533 = vsyncpa [#allocation27], 1 }
0x1122   :  { %4534 = vsyncpa [#allocation30], 1 }
0x1123   :  { %4535 = vsyncpa [#allocation33], 1 }
0x1124   :  { %4536 = vsyncpa [#allocation36], 1 }
0x1125   :  { %4537 = vsyncpa [#allocation39], 1 }
0x1126   :  { %4538 = vsyncpa [#allocation42], 1 }
0x1127   :  { %4539 = vsyncpa [#allocation4], 1 }
0x1128   :  { %4541 = vsyncpa [#allocation4 + $0x1], 1 }
0x1129   :  { %4542 = vsyncpa [#allocation45], 1 }
0x112a   :  { %4544 = vsyncpa [#allocation45 + $0x1], 1 }

</bundles_post_ra>
